<compile_context>
chip_gen: v7x
topology: tpu7x:2x2x1
jax: 0.10.0
libtpu: 0.0.40
codegen_flags: <defaults>
</compile_context>

<pallas_src>
import numpy as np

import jax
import jax.numpy as jnp
from jax.experimental import pallas as pl
from jax.experimental.pallas import tpu as pltpu


# ----------------------------- small ViT config ------------------------------
B = 2            # batch
C_IN = 3         # image channels
IMG = 16         # image height/width
PATCH = 8        # patch size  -> 2x2 = 4 patches
WIDTH = 32       # transformer width
HEADS = 4        # attention heads (head_dim = 8)
LAYERS = 2       # number of residual blocks (ViT-L has 24; kept small)
PROJ = 16        # CLIP visual projection dim
EMBED = 8        # CFG.embed (final linear / BN width)
SEQ = (IMG // PATCH) ** 2 + 1   # class token + patches = 5
SEQ_P = 8                        # padded token count (sublane multiple)
HEAD_DIM = WIDTH // HEADS
K_DIM = C_IN * PATCH * PATCH
LN_EPS = 1e-5
BN_EPS = 1e-5
NEG_INF = -1e9


# ------------------------------ fused kernel ---------------------------------
def _clip_vit_kernel(
    patches_ref, conv_w_ref, embed_bias_ref, key_mask_ref, cls_sel_ref,
    ln_pre_g_ref, ln_pre_b_ref,
    ln1_g_ref, ln1_b_ref, wq_ref, wk_ref, wv_ref, bq_ref, bk_ref, bv_ref,
    wo_ref, bo_ref, ln2_g_ref, ln2_b_ref, wfc_ref, bfc_ref, wpr_ref, bpr_ref,
    ln_post_g_ref, ln_post_b_ref, proj_ref, linear_w_ref, linear_b_ref,
    bn_g_ref, bn_b_ref,
    out_ref,
    x_acc,
):
    f32 = jnp.float32
    bf16 = jnp.bfloat16
    l = pl.program_id(0)
    n_layers = pl.num_programs(0)

    def layer_norm(v, g, b):
        mu = jnp.mean(v, axis=-1, keepdims=True)
        vc = v - mu
        var = jnp.mean(vc * vc, axis=-1, keepdims=True)
        return vc * jax.lax.rsqrt(var + LN_EPS) * g + b

    # ---- patch embedding (conv1 as matmul) + cls/pos bias + ln_pre (once) ----
    @pl.when(l == 0)
    def _init():
        x0 = jnp.dot(patches_ref[...], conv_w_ref[...],
                     preferred_element_type=f32) + embed_bias_ref[...]
        x_acc[...] = layer_norm(x0, ln_pre_g_ref[...], ln_pre_b_ref[...])

    # ---- residual attention block `l` (weights streamed for this step) ----
    wq = wq_ref[0]; wk = wk_ref[0]; wv = wv_ref[0]     # (H, W, Dh) bf16
    bq = bq_ref[0]; bk = bk_ref[0]; bv = bv_ref[0]     # (H, 1, Dh) f32 (scale folded into q)
    wo = wo_ref[0]                                      # (H, Dh, W) bf16
    km = key_mask_ref[...]                              # (1, SEQ_P) additive key-pad mask

    x = x_acc[...]                                      # (B*SEQ_P, W) f32
    h1 = layer_norm(x, ln1_g_ref[0], ln1_b_ref[0])

    # Per-image attention (no cross-batch attention, no block-diag mask); all heads
    # computed with batched (head-major) dot_generals.  At real batch sizes this
    # Python loop would become a "parallel" grid axis.
    for b in range(B):
        rows = pl.ds(b * SEQ_P, SEQ_P)
        h1b = h1[b * SEQ_P:(b + 1) * SEQ_P, :].astype(bf16)          # (S, W)
        h1bh = jnp.broadcast_to(h1b, (HEADS, SEQ_P, WIDTH))          # (H, S, W)

        q = jnp.einsum('hsw,hwd->hsd', h1bh, wq,
                       preferred_element_type=f32) + bq              # (H, S, Dh)
        k = jnp.einsum('hsw,hwd->hsd', h1bh, wk,
                       preferred_element_type=f32) + bk
        v = jnp.einsum('hsw,hwd->hsd', h1bh, wv,
                       preferred_element_type=f32) + bv

        s = jnp.einsum('hsd,htd->hst', q.astype(bf16), k.astype(bf16),
                       preferred_element_type=f32)                   # (H, S, S)
        s = s + km                                                   # mask padded keys
        s = s - jnp.max(s, axis=-1, keepdims=True)
        p = jnp.exp(s)
        p = p / jnp.sum(p, axis=-1, keepdims=True)                   # exact softmax (f32)

        o = jnp.einsum('hst,htd->hsd', p.astype(bf16), v.astype(bf16),
                       preferred_element_type=f32)                   # (H, S, Dh)
        attn_h = jnp.einsum('hsd,hdw->hsw', o.astype(bf16), wo,
                            preferred_element_type=f32)              # (H, S, W)
        attn_b = jnp.sum(attn_h, axis=0) + bo_ref[0]                 # head merge + out bias
        x_acc[rows, :] = x_acc[rows, :] + attn_b                     # residual

    # ---- MLP block (whole slab at once) ----
    x = x_acc[...]
    h2 = layer_norm(x, ln2_g_ref[0], ln2_b_ref[0])
    hfc = jnp.dot(h2.astype(bf16), wfc_ref[0],
                  preferred_element_type=f32) + bfc_ref[0]           # (B*S, 4W)
    hfc = hfc * jax.nn.sigmoid(1.702 * hfc)                          # QuickGELU (f32)
    x_acc[...] = x + jnp.dot(hfc.astype(bf16), wpr_ref[0],
                             preferred_element_type=f32) + bpr_ref[0]

    # ---- final: cls -> ln_post -> proj -> linear -> batchnorm (last step only) ----
    @pl.when(l == n_layers - 1)
    def _final():
        xf = x_acc[...]
        cls = jnp.dot(cls_sel_ref[...], xf, preferred_element_type=f32)   # (B, W)
        cls = layer_norm(cls, ln_post_g_ref[...], ln_post_b_ref[...])
        feat = jnp.dot(cls.astype(jnp.bfloat16), proj_ref[...],
                       preferred_element_type=f32)                        # (B, PROJ)
        # TODO(synk): nn.Dropout(p=0.2) treated as eval-mode identity (torch RNG not reproducible).
        y = jnp.dot(feat.astype(jnp.bfloat16), linear_w_ref[...],
                    preferred_element_type=f32) + linear_b_ref[...]       # (B, EMBED)
        # BatchNorm1d, training-mode batch statistics (biased variance), as in torch forward.
        mu = jnp.mean(y, axis=0, keepdims=True)
        yc = y - mu
        var = jnp.mean(yc * yc, axis=0, keepdims=True)
        out_ref[...] = (yc * jax.lax.rsqrt(var + BN_EPS) * bn_g_ref[...]
                        + bn_b_ref[...]).astype(out_ref.dtype)


# ------------------------------ BlockSpec helpers ------------------------------
def _const_spec(shape):
    nd = len(shape)
    return pl.BlockSpec(tuple(shape), lambda l, _n=nd: (0,) * _n)


def _layer_spec(shape):
    nd = len(shape)
    return pl.BlockSpec((1,) + tuple(shape[1:]),
                        lambda l, _n=nd: (l,) + (0,) * (_n - 1))


def _flop_estimate(b):
    ms = b * SEQ_P
    per_layer = 0
    per_layer += 2 * ms * WIDTH * 3 * WIDTH                        # qkv projections
    per_layer += 2 * b * HEADS * SEQ_P * SEQ_P * HEAD_DIM * 2      # QK^T + PV
    per_layer += 2 * ms * WIDTH * WIDTH                            # out projection
    per_layer += 2 * ms * WIDTH * 4 * WIDTH * 2                    # MLP fc + proj
    flops = LAYERS * per_layer
    flops += 2 * ms * K_DIM * WIDTH                                # conv-as-matmul
    flops += 2 * b * (b * SEQ_P) * WIDTH                           # cls selection
    flops += 2 * b * (WIDTH * PROJ + PROJ * EMBED)                 # proj + linear
    transcendentals = LAYERS * (b * HEADS * SEQ_P * SEQ_P + ms * 4 * WIDTH)
    return int(flops), int(transcendentals)


# ------------------------------ parameter init -------------------------------
def _xavier_normal(key, shape):
    fan_in, fan_out = shape[0], shape[1]
    std = (2.0 / (fan_in + fan_out)) ** 0.5
    return std * jax.random.normal(key, shape, jnp.float32)


def init_params(key):
    ks = iter(jax.random.split(key, 64))
    nrm = lambda shape, s=0.02: s * jax.random.normal(next(ks), shape, jnp.float32)
    return {
        "conv1_w": nrm((WIDTH, C_IN, PATCH, PATCH)),
        "class_embedding": nrm((WIDTH,)),
        "positional_embedding": nrm((SEQ, WIDTH)),
        "ln_pre_g": jnp.ones((1, WIDTH), jnp.float32),
        "ln_pre_b": jnp.zeros((1, WIDTH), jnp.float32),
        "ln_post_g": jnp.ones((1, WIDTH), jnp.float32),
        "ln_post_b": jnp.zeros((1, WIDTH), jnp.float32),
        "proj": nrm((WIDTH, PROJ)),
        # nn.Linear(PROJ -> EMBED): xavier_normal_ weight, zero bias
        "linear_w": _xavier_normal(next(ks), (PROJ, EMBED)),
        "linear_b": jnp.zeros((1, EMBED), jnp.float32),
        # nn.BatchNorm1d(EMBED): weight=1, bias=0
        "bn_g": jnp.ones((1, EMBED), jnp.float32),
        "bn_b": jnp.zeros((1, EMBED), jnp.float32),
        # --- stacked per-layer weights (leading dim = LAYERS), x @ W convention ---
        "ln1_g": jnp.ones((LAYERS, 1, WIDTH), jnp.float32),
        "ln1_b": jnp.zeros((LAYERS, 1, WIDTH), jnp.float32),
        "attn_in_w": nrm((LAYERS, WIDTH, 3 * WIDTH)),
        "attn_in_b": jnp.zeros((LAYERS, 1, 3 * WIDTH), jnp.float32),
        "attn_out_w": nrm((LAYERS, WIDTH, WIDTH)),
        "attn_out_b": jnp.zeros((LAYERS, 1, WIDTH), jnp.float32),
        "ln2_g": jnp.ones((LAYERS, 1, WIDTH), jnp.float32),
        "ln2_b": jnp.zeros((LAYERS, 1, WIDTH), jnp.float32),
        "mlp_fc_w": nrm((LAYERS, WIDTH, 4 * WIDTH)),
        "mlp_fc_b": jnp.zeros((LAYERS, 1, 4 * WIDTH), jnp.float32),
        "mlp_proj_w": nrm((LAYERS, 4 * WIDTH, WIDTH)),
        "mlp_proj_b": jnp.zeros((LAYERS, 1, WIDTH), jnp.float32),
    }


# ------------------------------ model forward --------------------------------
@jax.jit
def create_clip_vit_forward(params, x, label):
    del label  # unused, as in the reference forward
    b, c, h, w = x.shape
    gh, gw = h // PATCH, w // PATCH
    n_patch = gh * gw
    seq = n_patch + 1
    assert b == B and c == C_IN and seq == SEQ
    pad_rows = SEQ_P - seq

    f32 = jnp.float32
    bf16 = jnp.bfloat16

    # --- one-time XLA glue: patch extraction, padding, bf16 param prep ---
    patches = (x.astype(f32)
               .reshape(b, c, gh, PATCH, gw, PATCH)
               .transpose(0, 2, 4, 1, 3, 5)
               .reshape(b, n_patch, K_DIM))
    # per-image rows: [cls(zero patch), n_patch patches, pad rows (zeros)]
    patches_full = jnp.concatenate(
        [jnp.zeros((b, 1, K_DIM), f32), patches,
         jnp.zeros((b, pad_rows, K_DIM), f32)], axis=1
    ).reshape(b * SEQ_P, K_DIM).astype(bf16)

    conv_w = params["conv1_w"].reshape(WIDTH, K_DIM).T.astype(bf16)        # (K, W)

    cls_pos = params["positional_embedding"] + \
        jnp.zeros((SEQ, WIDTH), f32).at[0, :].set(params["class_embedding"])
    embed_bias = jnp.concatenate(
        [cls_pos, jnp.zeros((pad_rows, WIDTH), f32)], axis=0)
    embed_bias = jnp.tile(embed_bias, (b, 1))                              # (B*SEQ_P, W)

    # tiny additive key-padding mask (replaces the old (BS,BS) block-diag mask)
    key_mask = jnp.asarray(
        np.where(np.arange(SEQ_P) < SEQ, 0.0, NEG_INF).astype(np.float32))[None, :]

    # cls-token row selector (rows 0, SEQ_P, 2*SEQ_P, ...)
    cls_sel_np = np.zeros((b, b * SEQ_P), np.float32)
    cls_sel_np[np.arange(b), np.arange(b) * SEQ_P] = 1.0
    cls_sel = jnp.asarray(cls_sel_np)

    # head-major QKV weights, 1/sqrt(Dh) folded into q, all matmul weights bf16
    scale = 1.0 / float(HEAD_DIM) ** 0.5
    win = params["attn_in_w"]                                   # (L, W, 3W)
    bin_ = params["attn_in_b"].reshape(LAYERS, 3 * WIDTH)

    def head_major_w(w2d):                                      # (L, W, W) -> (L, H, W, Dh)
        return w2d.reshape(LAYERS, WIDTH, HEADS, HEAD_DIM).transpose(0, 2, 1, 3)

    def head_major_b(b1d):                                      # (L, W) -> (L, H, 1, Dh)
        return b1d.reshape(LAYERS, HEADS, 1, HEAD_DIM)

    w_q = (head_major_w(win[:, :, :WIDTH]) * scale).astype(bf16)
    w_k = head_major_w(win[:, :, WIDTH:2 * WIDTH]).astype(bf16)
    w_v = head_major_w(win[:, :, 2 * WIDTH:]).astype(bf16)
    b_q = head_major_b(bin_[:, :WIDTH]) * scale
    b_k = head_major_b(bin_[:, WIDTH:2 * WIDTH])
    b_v = head_major_b(bin_[:, 2 * WIDTH:])
    w_o = params["attn_out_w"].reshape(LAYERS, HEADS, HEAD_DIM, WIDTH).astype(bf16)
    w_fc = params["mlp_fc_w"].astype(bf16)
    w_pr = params["mlp_proj_w"].astype(bf16)

    inputs = (
        patches_full, conv_w, embed_bias, key_mask, cls_sel,
        params["ln_pre_g"], params["ln_pre_b"],
        params["ln1_g"], params["ln1_b"], w_q, w_k, w_v, b_q, b_k, b_v,
        w_o, params["attn_out_b"], params["ln2_g"], params["ln2_b"],
        w_fc, params["mlp_fc_b"], w_pr, params["mlp_proj_b"],
        params["ln_post_g"], params["ln_post_b"],
        params["proj"].astype(bf16),
        params["linear_w"].astype(bf16), params["linear_b"],
        params["bn_g"], params["bn_b"],
    )

    in_specs = [
        _const_spec((b * SEQ_P, K_DIM)),                   # patches
        _const_spec((K_DIM, WIDTH)),                       # conv_w
        _const_spec((b * SEQ_P, WIDTH)),                   # embed_bias
        _const_spec((1, SEQ_P)),                           # key_mask
        _const_spec((b, b * SEQ_P)),                       # cls_sel
        _const_spec((1, WIDTH)),                           # ln_pre_g
        _const_spec((1, WIDTH)),                           # ln_pre_b
        _layer_spec((LAYERS, 1, WIDTH)),                   # ln1_g
        _layer_spec((LAYERS, 1, WIDTH)),                   # ln1_b
        _layer_spec((LAYERS, HEADS, WIDTH, HEAD_DIM)),     # w_q
        _layer_spec((LAYERS, HEADS, WIDTH, HEAD_DIM)),     # w_k
        _layer_spec((LAYERS, HEADS, WIDTH, HEAD_DIM)),     # w_v
        _layer_spec((LAYERS, HEADS, 1, HEAD_DIM)),         # b_q
        _layer_spec((LAYERS, HEADS, 1, HEAD_DIM)),         # b_k
        _layer_spec((LAYERS, HEADS, 1, HEAD_DIM)),         # b_v
        _layer_spec((LAYERS, HEADS, HEAD_DIM, WIDTH)),     # w_o
        _layer_spec((LAYERS, 1, WIDTH)),                   # b_o
        _layer_spec((LAYERS, 1, WIDTH)),                   # ln2_g
        _layer_spec((LAYERS, 1, WIDTH)),                   # ln2_b
        _layer_spec((LAYERS, WIDTH, 4 * WIDTH)),           # w_fc
        _layer_spec((LAYERS, 1, 4 * WIDTH)),               # b_fc
        _layer_spec((LAYERS, 4 * WIDTH, WIDTH)),           # w_proj
        _layer_spec((LAYERS, 1, WIDTH)),                   # b_proj
        _const_spec((1, WIDTH)),                           # ln_post_g
        _const_spec((1, WIDTH)),                           # ln_post_b
        _const_spec((WIDTH, PROJ)),                        # proj
        _const_spec((PROJ, EMBED)),                        # linear_w
        _const_spec((1, EMBED)),                           # linear_b
        _const_spec((1, EMBED)),                           # bn_g
        _const_spec((1, EMBED)),                           # bn_b
    ]

    flops, transcendentals = _flop_estimate(b)
    bytes_accessed = int(sum(a.size * a.dtype.itemsize for a in inputs)
                         + b * EMBED * 4)

    out = pl.pallas_call(
        _clip_vit_kernel,
        out_shape=jax.ShapeDtypeStruct((b, EMBED), jnp.float32),
        grid_spec=pltpu.PrefetchScalarGridSpec(
            num_scalar_prefetch=0,
            grid=(LAYERS,),
            in_specs=in_specs,
            out_specs=pl.BlockSpec((b, EMBED), lambda l: (0, 0)),
            scratch_shapes=[pltpu.VMEM((b * SEQ_P, WIDTH), jnp.float32)],
        ),
        compiler_params=pltpu.CompilerParams(
            dimension_semantics=("arbitrary",),
            vmem_limit_bytes=64 << 20),
        cost_estimate=pl.CostEstimate(
            flops=flops, transcendentals=transcendentals,
            bytes_accessed=bytes_accessed),
    )(*inputs)
    return out


# ----------------------------------- main -------------------------------------
if __name__ == "__main__":
    key = jax.random.PRNGKey(0)
    k_param, k_x, k_lbl = jax.random.split(key, 3)
    params = init_params(k_param)
    x = jax.random.normal(k_x, (B, C_IN, IMG, IMG), jnp.float32)
    label = jax.random.randint(k_lbl, (B,), 0, 10)
    out = jax.block_until_ready(create_clip_vit_forward(params, x, label))
    assert out.shape == (B, EMBED) and out.dtype == jnp.float32
    assert bool(jnp.all(jnp.isfinite(out)))
    print("KERNEL_OK")
</pallas_src>

<mosaic_0001>
module attributes {stable_mosaic.version = 11 : i64} {
  func.func @_clip_vit_kernel(%arg0: i32, %arg1: memref<16x192xbf16, #tpu.memory_space<vmem>>, %arg2: memref<192x32xbf16, #tpu.memory_space<vmem>>, %arg3: memref<16x32xf32, #tpu.memory_space<vmem>>, %arg4: memref<1x8xf32, #tpu.memory_space<vmem>>, %arg5: memref<2x16xf32, #tpu.memory_space<vmem>>, %arg6: memref<1x32xf32, #tpu.memory_space<vmem>>, %arg7: memref<1x32xf32, #tpu.memory_space<vmem>>, %arg8: memref<1x1x32xf32, #tpu.memory_space<vmem>>, %arg9: memref<1x1x32xf32, #tpu.memory_space<vmem>>, %arg10: memref<1x4x32x8xbf16, #tpu.memory_space<vmem>>, %arg11: memref<1x4x32x8xbf16, #tpu.memory_space<vmem>>, %arg12: memref<1x4x32x8xbf16, #tpu.memory_space<vmem>>, %arg13: memref<1x4x1x8xf32, #tpu.memory_space<vmem>>, %arg14: memref<1x4x1x8xf32, #tpu.memory_space<vmem>>, %arg15: memref<1x4x1x8xf32, #tpu.memory_space<vmem>>, %arg16: memref<1x4x8x32xbf16, #tpu.memory_space<vmem>>, %arg17: memref<1x1x32xf32, #tpu.memory_space<vmem>>, %arg18: memref<1x1x32xf32, #tpu.memory_space<vmem>>, %arg19: memref<1x1x32xf32, #tpu.memory_space<vmem>>, %arg20: memref<1x32x128xbf16, #tpu.memory_space<vmem>>, %arg21: memref<1x1x128xf32, #tpu.memory_space<vmem>>, %arg22: memref<1x128x32xbf16, #tpu.memory_space<vmem>>, %arg23: memref<1x1x32xf32, #tpu.memory_space<vmem>>, %arg24: memref<1x32xf32, #tpu.memory_space<vmem>>, %arg25: memref<1x32xf32, #tpu.memory_space<vmem>>, %arg26: memref<32x16xbf16, #tpu.memory_space<vmem>>, %arg27: memref<16x8xbf16, #tpu.memory_space<vmem>>, %arg28: memref<1x8xf32, #tpu.memory_space<vmem>>, %arg29: memref<1x8xf32, #tpu.memory_space<vmem>>, %arg30: memref<1x8xf32, #tpu.memory_space<vmem>>, %arg31: memref<2x8xf32, #tpu.memory_space<vmem>>, %arg32: memref<16x32xf32, #tpu.memory_space<vmem>>) attributes {dimension_semantics = [#tpu.dimension_semantics<arbitrary>], iteration_bounds = array<i64: 2>, scalar_prefetch = 0 : i64, scratch_operands = 1 : i64, tpu.core_type = #tpu.core_type<tc>, window_params = [{pipeline_mode = #tpu.pipeline_mode<synchronous>, transform_indices = @transform_0, window_bounds = array<i64: 16, 192>}, {pipeline_mode = #tpu.pipeline_mode<synchronous>, transform_indices = @transform_1, window_bounds = array<i64: 192, 32>}, {pipeline_mode = #tpu.pipeline_mode<synchronous>, transform_indices = @transform_2, window_bounds = array<i64: 16, 32>}, {pipeline_mode = #tpu.pipeline_mode<synchronous>, transform_indices = @transform_3, window_bounds = array<i64: 1, 8>}, {pipeline_mode = #tpu.pipeline_mode<synchronous>, transform_indices = @transform_4, window_bounds = array<i64: 2, 16>}, {pipeline_mode = #tpu.pipeline_mode<synchronous>, transform_indices = @transform_5, window_bounds = array<i64: 1, 32>}, {pipeline_mode = #tpu.pipeline_mode<synchronous>, transform_indices = @transform_6, window_bounds = array<i64: 1, 32>}, {transform_indices = @transform_7, window_bounds = array<i64: 1, 1, 32>}, {transform_indices = @transform_8, window_bounds = array<i64: 1, 1, 32>}, {transform_indices = @transform_9, window_bounds = array<i64: 1, 4, 32, 8>}, {transform_indices = @transform_10, window_bounds = array<i64: 1, 4, 32, 8>}, {transform_indices = @transform_11, window_bounds = array<i64: 1, 4, 32, 8>}, {transform_indices = @transform_12, window_bounds = array<i64: 1, 4, 1, 8>}, {transform_indices = @transform_13, window_bounds = array<i64: 1, 4, 1, 8>}, {transform_indices = @transform_14, window_bounds = array<i64: 1, 4, 1, 8>}, {transform_indices = @transform_15, window_bounds = array<i64: 1, 4, 8, 32>}, {transform_indices = @transform_16, window_bounds = array<i64: 1, 1, 32>}, {transform_indices = @transform_17, window_bounds = array<i64: 1, 1, 32>}, {transform_indices = @transform_18, window_bounds = array<i64: 1, 1, 32>}, {transform_indices = @transform_19, window_bounds = array<i64: 1, 32, 128>}, {transform_indices = @transform_20, window_bounds = array<i64: 1, 1, 128>}, {transform_indices = @transform_21, window_bounds = array<i64: 1, 128, 32>}, {transform_indices = @transform_22, window_bounds = array<i64: 1, 1, 32>}, {pipeline_mode = #tpu.pipeline_mode<synchronous>, transform_indices = @transform_23, window_bounds = array<i64: 1, 32>}, {pipeline_mode = #tpu.pipeline_mode<synchronous>, transform_indices = @transform_24, window_bounds = array<i64: 1, 32>}, {pipeline_mode = #tpu.pipeline_mode<synchronous>, transform_indices = @transform_25, window_bounds = array<i64: 32, 16>}, {pipeline_mode = #tpu.pipeline_mode<synchronous>, transform_indices = @transform_26, window_bounds = array<i64: 16, 8>}, {pipeline_mode = #tpu.pipeline_mode<synchronous>, transform_indices = @transform_27, window_bounds = array<i64: 1, 8>}, {pipeline_mode = #tpu.pipeline_mode<synchronous>, transform_indices = @transform_28, window_bounds = array<i64: 1, 8>}, {pipeline_mode = #tpu.pipeline_mode<synchronous>, transform_indices = @transform_29, window_bounds = array<i64: 1, 8>}, {pipeline_mode = #tpu.pipeline_mode<synchronous>, transform_indices = @transform_30, window_bounds = array<i64: 2, 8>}]} {
    %c0_i32 = arith.constant 0 : i32
    %0 = arith.cmpi eq, %arg0, %c0_i32 : i32
    %1 = arith.extui %0 : i1 to i32
    %c0_i32_0 = arith.constant 0 : i32
    %2 = arith.cmpi ne, %1, %c0_i32_0 : i32
    scf.if %2 {
      %c0_105 = arith.constant 0 : index
      %c0_106 = arith.constant 0 : index
      %179 = vector.load %arg1[%c0_105, %c0_106] : memref<16x192xbf16, #tpu.memory_space<vmem>>, vector<16x192xbf16>
      %c0_107 = arith.constant 0 : index
      %c0_108 = arith.constant 0 : index
      %180 = vector.load %arg2[%c0_107, %c0_108] : memref<192x32xbf16, #tpu.memory_space<vmem>>, vector<192x32xbf16>
      %cst_109 = arith.constant dense<0.000000e+00> : vector<16x32xf32>
      %181 = tpu.matmul %179, %180, %cst_109 {dimension_numbers = #tpu.dot_dimension_numbers<[1], [0], [0], [1], [0, 0, 1, 1], [], []>} : vector<16x192xbf16>, vector<192x32xbf16>, vector<16x32xf32> -> vector<16x32xf32>
      %c0_110 = arith.constant 0 : index
      %c0_111 = arith.constant 0 : index
      %182 = vector.load %arg3[%c0_110, %c0_111] : memref<16x32xf32, #tpu.memory_space<vmem>>, vector<16x32xf32>
      %183 = arith.addf %181, %182 : vector<16x32xf32>
      %c0_112 = arith.constant 0 : index
      %c0_113 = arith.constant 0 : index
      %184 = vector.load %arg6[%c0_112, %c0_113] : memref<1x32xf32, #tpu.memory_space<vmem>>, vector<1x32xf32>
      %c0_114 = arith.constant 0 : index
      %c0_115 = arith.constant 0 : index
      %185 = vector.load %arg7[%c0_114, %c0_115] : memref<1x32xf32, #tpu.memory_space<vmem>>, vector<1x32xf32>
      %cst_116 = arith.constant dense<0.000000e+00> : vector<16xf32>
      %186 = vector.multi_reduction <add>, %183, %cst_116 [1] : vector<16x32xf32> to vector<16xf32>
      %187 = vector.shape_cast %186 : vector<16xf32> to vector<16x1xf32>
      %cst_117 = arith.constant 3.200000e+01 : f32
      %188 = vector.broadcast %cst_117 : f32 to vector<16x1xf32>
      %189 = arith.divf %187, %188 : vector<16x1xf32>
      %190 = vector.broadcast %189 : vector<16x1xf32> to vector<16x32xf32>
      %191 = arith.subf %183, %190 : vector<16x32xf32>
      %192 = arith.mulf %191, %191 : vector<16x32xf32>
      %cst_118 = arith.constant dense<0.000000e+00> : vector<16xf32>
      %193 = vector.multi_reduction <add>, %192, %cst_118 [1] : vector<16x32xf32> to vector<16xf32>
      %194 = vector.shape_cast %193 : vector<16xf32> to vector<16x1xf32>
      %cst_119 = arith.constant 3.200000e+01 : f32
      %195 = vector.broadcast %cst_119 : f32 to vector<16x1xf32>
      %196 = arith.divf %194, %195 : vector<16x1xf32>
      %cst_120 = arith.constant 9.99999974E-6 : f32
      %197 = vector.broadcast %cst_120 : f32 to vector<16x1xf32>
      %198 = arith.addf %196, %197 : vector<16x1xf32>
      %199 = math.rsqrt %198 : vector<16x1xf32>
      %200 = vector.broadcast %199 : vector<16x1xf32> to vector<16x32xf32>
      %201 = arith.mulf %191, %200 : vector<16x32xf32>
      %202 = vector.broadcast %184 : vector<1x32xf32> to vector<16x32xf32>
      %203 = arith.mulf %201, %202 : vector<16x32xf32>
      %204 = vector.broadcast %185 : vector<1x32xf32> to vector<16x32xf32>
      %205 = arith.addf %203, %204 : vector<16x32xf32>
      %c0_121 = arith.constant 0 : index
      %c0_122 = arith.constant 0 : index
      %206 = vector.load %arg32[%c0_121, %c0_122] : memref<16x32xf32, #tpu.memory_space<vmem>>, vector<16x32xf32>
      tpu.vector_store %arg32[%c0_121, %c0_122], %205 {strides = array<i32>} : memref<16x32xf32, #tpu.memory_space<vmem>>, vector<16x32xf32>,
    } else {
    }
    %c0 = arith.constant 0 : index
    %c0_1 = arith.constant 0 : index
    %c0_2 = arith.constant 0 : index
    %c0_3 = arith.constant 0 : index
    %3 = vector.load %arg10[%c0, %c0_1, %c0_2, %c0_3] : memref<1x4x32x8xbf16, #tpu.memory_space<vmem>>, vector<1x4x32x8xbf16>
    %4 = vector.shape_cast %3 : vector<1x4x32x8xbf16> to vector<4x32x8xbf16>
    %c0_4 = arith.constant 0 : index
    %c0_5 = arith.constant 0 : index
    %c0_6 = arith.constant 0 : index
    %c0_7 = arith.constant 0 : index
    %5 = vector.load %arg11[%c0_4, %c0_5, %c0_6, %c0_7] : memref<1x4x32x8xbf16, #tpu.memory_space<vmem>>, vector<1x4x32x8xbf16>
    %6 = vector.shape_cast %5 : vector<1x4x32x8xbf16> to vector<4x32x8xbf16>
    %c0_8 = arith.constant 0 : index
    %c0_9 = arith.constant 0 : index
    %c0_10 = arith.constant 0 : index
    %c0_11 = arith.constant 0 : index
    %7 = vector.load %arg12[%c0_8, %c0_9, %c0_10, %c0_11] : memref<1x4x32x8xbf16, #tpu.memory_space<vmem>>, vector<1x4x32x8xbf16>
    %8 = vector.shape_cast %7 : vector<1x4x32x8xbf16> to vector<4x32x8xbf16>
    %c0_12 = arith.constant 0 : index
    %c0_13 = arith.constant 0 : index
    %c0_14 = arith.constant 0 : index
    %c0_15 = arith.constant 0 : index
    %9 = vector.load %arg13[%c0_12, %c0_13, %c0_14, %c0_15] : memref<1x4x1x8xf32, #tpu.memory_space<vmem>>, vector<1x4x1x8xf32>
    %10 = vector.shape_cast %9 : vector<1x4x1x8xf32> to vector<4x1x8xf32>
    %c0_16 = arith.constant 0 : index
    %c0_17 = arith.constant 0 : index
    %c0_18 = arith.constant 0 : index
    %c0_19 = arith.constant 0 : index
    %11 = vector.load %arg14[%c0_16, %c0_17, %c0_18, %c0_19] : memref<1x4x1x8xf32, #tpu.memory_space<vmem>>, vector<1x4x1x8xf32>
    %12 = vector.shape_cast %11 : vector<1x4x1x8xf32> to vector<4x1x8xf32>
    %c0_20 = arith.constant 0 : index
    %c0_21 = arith.constant 0 : index
    %c0_22 = arith.constant 0 : index
    %c0_23 = arith.constant 0 : index
    %13 = vector.load %arg15[%c0_20, %c0_21, %c0_22, %c0_23] : memref<1x4x1x8xf32, #tpu.memory_space<vmem>>, vector<1x4x1x8xf32>
    %14 = vector.shape_cast %13 : vector<1x4x1x8xf32> to vector<4x1x8xf32>
    %c0_24 = arith.constant 0 : index
    %c0_25 = arith.constant 0 : index
    %c0_26 = arith.constant 0 : index
    %c0_27 = arith.constant 0 : index
    %15 = vector.load %arg16[%c0_24, %c0_25, %c0_26, %c0_27] : memref<1x4x8x32xbf16, #tpu.memory_space<vmem>>, vector<1x4x8x32xbf16>
    %16 = vector.shape_cast %15 : vector<1x4x8x32xbf16> to vector<4x8x32xbf16>
    %c0_28 = arith.constant 0 : index
    %c0_29 = arith.constant 0 : index
    %17 = vector.load %arg4[%c0_28, %c0_29] : memref<1x8xf32, #tpu.memory_space<vmem>>, vector<1x8xf32>
    %c0_30 = arith.constant 0 : index
    %c0_31 = arith.constant 0 : index
    %18 = vector.load %arg32[%c0_30, %c0_31] : memref<16x32xf32, #tpu.memory_space<vmem>>, vector<16x32xf32>
    %c0_32 = arith.constant 0 : index
    %c0_33 = arith.constant 0 : index
    %c0_34 = arith.constant 0 : index
    %19 = vector.load %arg8[%c0_32, %c0_33, %c0_34] : memref<1x1x32xf32, #tpu.memory_space<vmem>>, vector<1x1x32xf32>
    %20 = vector.shape_cast %19 : vector<1x1x32xf32> to vector<1x32xf32>
    %c0_35 = arith.constant 0 : index
    %c0_36 = arith.constant 0 : index
    %c0_37 = arith.constant 0 : index
    %21 = vector.load %arg9[%c0_35, %c0_36, %c0_37] : memref<1x1x32xf32, #tpu.memory_space<vmem>>, vector<1x1x32xf32>
    %22 = vector.shape_cast %21 : vector<1x1x32xf32> to vector<1x32xf32>
    %cst = arith.constant dense<0.000000e+00> : vector<16xf32>
    %23 = vector.multi_reduction <add>, %18, %cst [1] : vector<16x32xf32> to vector<16xf32>
    %24 = vector.shape_cast %23 : vector<16xf32> to vector<16x1xf32>
    %cst_38 = arith.constant 3.200000e+01 : f32
    %25 = vector.broadcast %cst_38 : f32 to vector<16x1xf32>
    %26 = arith.divf %24, %25 : vector<16x1xf32>
    %27 = vector.broadcast %26 : vector<16x1xf32> to vector<16x32xf32>
    %28 = arith.subf %18, %27 : vector<16x32xf32>
    %29 = arith.mulf %28, %28 : vector<16x32xf32>
    %cst_39 = arith.constant dense<0.000000e+00> : vector<16xf32>
    %30 = vector.multi_reduction <add>, %29, %cst_39 [1] : vector<16x32xf32> to vector<16xf32>
    %31 = vector.shape_cast %30 : vector<16xf32> to vector<16x1xf32>
    %cst_40 = arith.constant 3.200000e+01 : f32
    %32 = vector.broadcast %cst_40 : f32 to vector<16x1xf32>
    %33 = arith.divf %31, %32 : vector<16x1xf32>
    %cst_41 = arith.constant 9.99999974E-6 : f32
    %34 = vector.broadcast %cst_41 : f32 to vector<16x1xf32>
    %35 = arith.addf %33, %34 : vector<16x1xf32>
    %36 = math.rsqrt %35 : vector<16x1xf32>
    %37 = vector.broadcast %36 : vector<16x1xf32> to vector<16x32xf32>
    %38 = arith.mulf %28, %37 : vector<16x32xf32>
    %39 = vector.broadcast %20 : vector<1x32xf32> to vector<16x32xf32>
    %40 = arith.mulf %38, %39 : vector<16x32xf32>
    %41 = vector.broadcast %22 : vector<1x32xf32> to vector<16x32xf32>
    %42 = arith.addf %40, %41 : vector<16x32xf32>
    %43 = vector.extract_strided_slice %42 {offsets = [0, 0], sizes = [8, 32], strides = [1, 1]} : vector<16x32xf32> to vector<8x32xf32>
    %44 = arith.truncf %43 : vector<8x32xf32> to vector<8x32xbf16>
    %45 = vector.shape_cast %44 : vector<8x32xbf16> to vector<1x8x32xbf16>
    %46 = vector.broadcast %45 : vector<1x8x32xbf16> to vector<4x8x32xbf16>
    "tpu.trace_start"() <{level = 10 : i32, message = "hsw,hwd->hsd"}> : () -> ()
    %cst_42 = arith.constant dense<0.000000e+00> : vector<4x8x8xf32>
    %47 = tpu.matmul %46, %4, %cst_42 {dimension_numbers = #tpu.dot_dimension_numbers<[2], [1], [1], [2], [0, 0, 0, 1, 1, 2], [0], [0]>} : vector<4x8x32xbf16>, vector<4x32x8xbf16>, vector<4x8x8xf32> -> vector<4x8x8xf32>
    "tpu.trace_stop"() : () -> ()
    %48 = vector.broadcast %10 : vector<4x1x8xf32> to vector<4x8x8xf32>
    %49 = arith.addf %47, %48 : vector<4x8x8xf32>
    "tpu.trace_start"() <{level = 10 : i32, message = "hsw,hwd->hsd"}> : () -> ()
    %cst_43 = arith.constant dense<0.000000e+00> : vector<4x8x8xf32>
    %50 = tpu.matmul %46, %6, %cst_43 {dimension_numbers = #tpu.dot_dimension_numbers<[2], [1], [1], [2], [0, 0, 0, 1, 1, 2], [0], [0]>} : vector<4x8x32xbf16>, vector<4x32x8xbf16>, vector<4x8x8xf32> -> vector<4x8x8xf32>
    "tpu.trace_stop"() : () -> ()
    %51 = vector.broadcast %12 : vector<4x1x8xf32> to vector<4x8x8xf32>
    %52 = arith.addf %50, %51 : vector<4x8x8xf32>
    "tpu.trace_start"() <{level = 10 : i32, message = "hsw,hwd->hsd"}> : () -> ()
    %cst_44 = arith.constant dense<0.000000e+00> : vector<4x8x8xf32>
    %53 = tpu.matmul %46, %8, %cst_44 {dimension_numbers = #tpu.dot_dimension_numbers<[2], [1], [1], [2], [0, 0, 0, 1, 1, 2], [0], [0]>} : vector<4x8x32xbf16>, vector<4x32x8xbf16>, vector<4x8x8xf32> -> vector<4x8x8xf32>
    "tpu.trace_stop"() : () -> ()
    %54 = vector.broadcast %14 : vector<4x1x8xf32> to vector<4x8x8xf32>
    %55 = arith.addf %53, %54 : vector<4x8x8xf32>
    %56 = arith.truncf %49 : vector<4x8x8xf32> to vector<4x8x8xbf16>
    %57 = arith.truncf %52 : vector<4x8x8xf32> to vector<4x8x8xbf16>
    "tpu.trace_start"() <{level = 10 : i32, message = "hsd,htd->hst"}> : () -> ()
    %cst_45 = arith.constant dense<0.000000e+00> : vector<4x8x8xf32>
    %58 = tpu.matmul %56, %57, %cst_45 {dimension_numbers = #tpu.dot_dimension_numbers<[2], [2], [1], [1], [0, 0, 0, 1, 1, 1], [0], [0]>} : vector<4x8x8xbf16>, vector<4x8x8xbf16>, vector<4x8x8xf32> -> vector<4x8x8xf32>
    "tpu.trace_stop"() : () -> ()
    %59 = vector.shape_cast %17 : vector<1x8xf32> to vector<1x1x8xf32>
    %60 = vector.broadcast %59 : vector<1x1x8xf32> to vector<4x8x8xf32>
    %61 = arith.addf %58, %60 : vector<4x8x8xf32>
    %cst_46 = arith.constant dense<0xFF800000> : vector<4x8xf32>
    %62 = vector.multi_reduction <maximumf>, %61, %cst_46 [2] : vector<4x8x8xf32> to vector<4x8xf32>
    %63 = vector.shape_cast %62 : vector<4x8xf32> to vector<4x8x1xf32>
    %64 = vector.broadcast %63 : vector<4x8x1xf32> to vector<4x8x8xf32>
    %65 = arith.subf %61, %64 : vector<4x8x8xf32>
    %66 = math.exp %65 : vector<4x8x8xf32>
    %cst_47 = arith.constant dense<0.000000e+00> : vector<4x8xf32>
    %67 = vector.multi_reduction <add>, %66, %cst_47 [2] : vector<4x8x8xf32> to vector<4x8xf32>
    %68 = vector.shape_cast %67 : vector<4x8xf32> to vector<4x8x1xf32>
    %69 = vector.broadcast %68 : vector<4x8x1xf32> to vector<4x8x8xf32>
    %70 = arith.divf %66, %69 : vector<4x8x8xf32>
    %71 = arith.truncf %70 : vector<4x8x8xf32> to vector<4x8x8xbf16>
    %72 = arith.truncf %55 : vector<4x8x8xf32> to vector<4x8x8xbf16>
    "tpu.trace_start"() <{level = 10 : i32, message = "hst,htd->hsd"}> : () -> ()
    %cst_48 = arith.constant dense<0.000000e+00> : vector<4x8x8xf32>
    %73 = tpu.matmul %71, %72, %cst_48 {dimension_numbers = #tpu.dot_dimension_numbers<[2], [1], [1], [2], [0, 0, 0, 1, 1, 2], [0], [0]>} : vector<4x8x8xbf16>, vector<4x8x8xbf16>, vector<4x8x8xf32> -> vector<4x8x8xf32>
    "tpu.trace_stop"() : () -> ()
    %74 = arith.truncf %73 : vector<4x8x8xf32> to vector<4x8x8xbf16>
    "tpu.trace_start"() <{level = 10 : i32, message = "hsd,hdw->hsw"}> : () -> ()
    %cst_49 = arith.constant dense<0.000000e+00> : vector<4x8x32xf32>
    %75 = tpu.matmul %74, %16, %cst_49 {dimension_numbers = #tpu.dot_dimension_numbers<[2], [1], [1], [2], [0, 0, 0, 1, 1, 2], [0], [0]>} : vector<4x8x8xbf16>, vector<4x8x32xbf16>, vector<4x8x32xf32> -> vector<4x8x32xf32>
    "tpu.trace_stop"() : () -> ()
    %cst_50 = arith.constant dense<0.000000e+00> : vector<8x32xf32>
    %76 = vector.multi_reduction <add>, %75, %cst_50 [0] : vector<4x8x32xf32> to vector<8x32xf32>
    %c0_51 = arith.constant 0 : index
    %c0_52 = arith.constant 0 : index
    %c0_53 = arith.constant 0 : index
    %77 = vector.load %arg17[%c0_51, %c0_52, %c0_53] : memref<1x1x32xf32, #tpu.memory_space<vmem>>, vector<1x1x32xf32>
    %78 = vector.shape_cast %77 : vector<1x1x32xf32> to vector<1x32xf32>
    %79 = vector.broadcast %78 : vector<1x32xf32> to vector<8x32xf32>
    %80 = arith.addf %76, %79 : vector<8x32xf32>
    %c0_54 = arith.constant 0 : index
    %c0_55 = arith.constant 0 : index
    %81 = vector.load %arg32[%c0_54, %c0_55] : memref<16x32xf32, #tpu.memory_space<vmem>>, vector<8x32xf32>
    %82 = arith.addf %81, %80 : vector<8x32xf32>
    %c0_56 = arith.constant 0 : index
    %c0_57 = arith.constant 0 : index
    %83 = vector.load %arg32[%c0_56, %c0_57] : memref<16x32xf32, #tpu.memory_space<vmem>>, vector<8x32xf32>
    tpu.vector_store %arg32[%c0_56, %c0_57], %82 {strides = array<i32>} : memref<16x32xf32, #tpu.memory_space<vmem>>, vector<8x32xf32>,
    %84 = vector.extract_strided_slice %42 {offsets = [8, 0], sizes = [8, 32], strides = [1, 1]} : vector<16x32xf32> to vector<8x32xf32>
    %85 = arith.truncf %84 : vector<8x32xf32> to vector<8x32xbf16>
    %86 = vector.shape_cast %85 : vector<8x32xbf16> to vector<1x8x32xbf16>
    %87 = vector.broadcast %86 : vector<1x8x32xbf16> to vector<4x8x32xbf16>
    "tpu.trace_start"() <{level = 10 : i32, message = "hsw,hwd->hsd"}> : () -> ()
    %cst_58 = arith.constant dense<0.000000e+00> : vector<4x8x8xf32>
    %88 = tpu.matmul %87, %4, %cst_58 {dimension_numbers = #tpu.dot_dimension_numbers<[2], [1], [1], [2], [0, 0, 0, 1, 1, 2], [0], [0]>} : vector<4x8x32xbf16>, vector<4x32x8xbf16>, vector<4x8x8xf32> -> vector<4x8x8xf32>
    "tpu.trace_stop"() : () -> ()
    %89 = vector.broadcast %10 : vector<4x1x8xf32> to vector<4x8x8xf32>
    %90 = arith.addf %88, %89 : vector<4x8x8xf32>
    "tpu.trace_start"() <{level = 10 : i32, message = "hsw,hwd->hsd"}> : () -> ()
    %cst_59 = arith.constant dense<0.000000e+00> : vector<4x8x8xf32>
    %91 = tpu.matmul %87, %6, %cst_59 {dimension_numbers = #tpu.dot_dimension_numbers<[2], [1], [1], [2], [0, 0, 0, 1, 1, 2], [0], [0]>} : vector<4x8x32xbf16>, vector<4x32x8xbf16>, vector<4x8x8xf32> -> vector<4x8x8xf32>
    "tpu.trace_stop"() : () -> ()
    %92 = vector.broadcast %12 : vector<4x1x8xf32> to vector<4x8x8xf32>
    %93 = arith.addf %91, %92 : vector<4x8x8xf32>
    "tpu.trace_start"() <{level = 10 : i32, message = "hsw,hwd->hsd"}> : () -> ()
    %cst_60 = arith.constant dense<0.000000e+00> : vector<4x8x8xf32>
    %94 = tpu.matmul %87, %8, %cst_60 {dimension_numbers = #tpu.dot_dimension_numbers<[2], [1], [1], [2], [0, 0, 0, 1, 1, 2], [0], [0]>} : vector<4x8x32xbf16>, vector<4x32x8xbf16>, vector<4x8x8xf32> -> vector<4x8x8xf32>
    "tpu.trace_stop"() : () -> ()
    %95 = vector.broadcast %14 : vector<4x1x8xf32> to vector<4x8x8xf32>
    %96 = arith.addf %94, %95 : vector<4x8x8xf32>
    %97 = arith.truncf %90 : vector<4x8x8xf32> to vector<4x8x8xbf16>
    %98 = arith.truncf %93 : vector<4x8x8xf32> to vector<4x8x8xbf16>
    "tpu.trace_start"() <{level = 10 : i32, message = "hsd,htd->hst"}> : () -> ()
    %cst_61 = arith.constant dense<0.000000e+00> : vector<4x8x8xf32>
    %99 = tpu.matmul %97, %98, %cst_61 {dimension_numbers = #tpu.dot_dimension_numbers<[2], [2], [1], [1], [0, 0, 0, 1, 1, 1], [0], [0]>} : vector<4x8x8xbf16>, vector<4x8x8xbf16>, vector<4x8x8xf32> -> vector<4x8x8xf32>
    "tpu.trace_stop"() : () -> ()
    %100 = vector.shape_cast %17 : vector<1x8xf32> to vector<1x1x8xf32>
    %101 = vector.broadcast %100 : vector<1x1x8xf32> to vector<4x8x8xf32>
    %102 = arith.addf %99, %101 : vector<4x8x8xf32>
    %cst_62 = arith.constant dense<0xFF800000> : vector<4x8xf32>
    %103 = vector.multi_reduction <maximumf>, %102, %cst_62 [2] : vector<4x8x8xf32> to vector<4x8xf32>
    %104 = vector.shape_cast %103 : vector<4x8xf32> to vector<4x8x1xf32>
    %105 = vector.broadcast %104 : vector<4x8x1xf32> to vector<4x8x8xf32>
    %106 = arith.subf %102, %105 : vector<4x8x8xf32>
    %107 = math.exp %106 : vector<4x8x8xf32>
    %cst_63 = arith.constant dense<0.000000e+00> : vector<4x8xf32>
    %108 = vector.multi_reduction <add>, %107, %cst_63 [2] : vector<4x8x8xf32> to vector<4x8xf32>
    %109 = vector.shape_cast %108 : vector<4x8xf32> to vector<4x8x1xf32>
    %110 = vector.broadcast %109 : vector<4x8x1xf32> to vector<4x8x8xf32>
    %111 = arith.divf %107, %110 : vector<4x8x8xf32>
    %112 = arith.truncf %111 : vector<4x8x8xf32> to vector<4x8x8xbf16>
    %113 = arith.truncf %96 : vector<4x8x8xf32> to vector<4x8x8xbf16>
    "tpu.trace_start"() <{level = 10 : i32, message = "hst,htd->hsd"}> : () -> ()
    %cst_64 = arith.constant dense<0.000000e+00> : vector<4x8x8xf32>
    %114 = tpu.matmul %112, %113, %cst_64 {dimension_numbers = #tpu.dot_dimension_numbers<[2], [1], [1], [2], [0, 0, 0, 1, 1, 2], [0], [0]>} : vector<4x8x8xbf16>, vector<4x8x8xbf16>, vector<4x8x8xf32> -> vector<4x8x8xf32>
    "tpu.trace_stop"() : () -> ()
    %115 = arith.truncf %114 : vector<4x8x8xf32> to vector<4x8x8xbf16>
    "tpu.trace_start"() <{level = 10 : i32, message = "hsd,hdw->hsw"}> : () -> ()
    %cst_65 = arith.constant dense<0.000000e+00> : vector<4x8x32xf32>
    %116 = tpu.matmul %115, %16, %cst_65 {dimension_numbers = #tpu.dot_dimension_numbers<[2], [1], [1], [2], [0, 0, 0, 1, 1, 2], [0], [0]>} : vector<4x8x8xbf16>, vector<4x8x32xbf16>, vector<4x8x32xf32> -> vector<4x8x32xf32>
    "tpu.trace_stop"() : () -> ()
    %cst_66 = arith.constant dense<0.000000e+00> : vector<8x32xf32>
    %117 = vector.multi_reduction <add>, %116, %cst_66 [0] : vector<4x8x32xf32> to vector<8x32xf32>
    %c0_67 = arith.constant 0 : index
    %c0_68 = arith.constant 0 : index
    %c0_69 = arith.constant 0 : index
    %118 = vector.load %arg17[%c0_67, %c0_68, %c0_69] : memref<1x1x32xf32, #tpu.memory_space<vmem>>, vector<1x1x32xf32>
    %119 = vector.shape_cast %118 : vector<1x1x32xf32> to vector<1x32xf32>
    %120 = vector.broadcast %119 : vector<1x32xf32> to vector<8x32xf32>
    %121 = arith.addf %117, %120 : vector<8x32xf32>
    %c8 = arith.constant 8 : index
    %c0_70 = arith.constant 0 : index
    %122 = vector.load %arg32[%c8, %c0_70] : memref<16x32xf32, #tpu.memory_space<vmem>>, vector<8x32xf32>
    %123 = arith.addf %122, %121 : vector<8x32xf32>
    %c8_71 = arith.constant 8 : index
    %c0_72 = arith.constant 0 : index
    %124 = vector.load %arg32[%c8_71, %c0_72] : memref<16x32xf32, #tpu.memory_space<vmem>>, vector<8x32xf32>
    tpu.vector_store %arg32[%c8_71, %c0_72], %123 {strides = array<i32>} : memref<16x32xf32, #tpu.memory_space<vmem>>, vector<8x32xf32>,
    %c0_73 = arith.constant 0 : index
    %c0_74 = arith.constant 0 : index
    %125 = vector.load %arg32[%c0_73, %c0_74] : memref<16x32xf32, #tpu.memory_space<vmem>>, vector<16x32xf32>
    %c0_75 = arith.constant 0 : index
    %c0_76 = arith.constant 0 : index
    %c0_77 = arith.constant 0 : index
    %126 = vector.load %arg18[%c0_75, %c0_76, %c0_77] : memref<1x1x32xf32, #tpu.memory_space<vmem>>, vector<1x1x32xf32>
    %127 = vector.shape_cast %126 : vector<1x1x32xf32> to vector<1x32xf32>
    %c0_78 = arith.constant 0 : index
    %c0_79 = arith.constant 0 : index
    %c0_80 = arith.constant 0 : index
    %128 = vector.load %arg19[%c0_78, %c0_79, %c0_80] : memref<1x1x32xf32, #tpu.memory_space<vmem>>, vector<1x1x32xf32>
    %129 = vector.shape_cast %128 : vector<1x1x32xf32> to vector<1x32xf32>
    %cst_81 = arith.constant dense<0.000000e+00> : vector<16xf32>
    %130 = vector.multi_reduction <add>, %125, %cst_81 [1] : vector<16x32xf32> to vector<16xf32>
    %131 = vector.shape_cast %130 : vector<16xf32> to vector<16x1xf32>
    %cst_82 = arith.constant 3.200000e+01 : f32
    %132 = vector.broadcast %cst_82 : f32 to vector<16x1xf32>
    %133 = arith.divf %131, %132 : vector<16x1xf32>
    %134 = vector.broadcast %133 : vector<16x1xf32> to vector<16x32xf32>
    %135 = arith.subf %125, %134 : vector<16x32xf32>
    %136 = arith.mulf %135, %135 : vector<16x32xf32>
    %cst_83 = arith.constant dense<0.000000e+00> : vector<16xf32>
    %137 = vector.multi_reduction <add>, %136, %cst_83 [1] : vector<16x32xf32> to vector<16xf32>
    %138 = vector.shape_cast %137 : vector<16xf32> to vector<16x1xf32>
    %cst_84 = arith.constant 3.200000e+01 : f32
    %139 = vector.broadcast %cst_84 : f32 to vector<16x1xf32>
    %140 = arith.divf %138, %139 : vector<16x1xf32>
    %cst_85 = arith.constant 9.99999974E-6 : f32
    %141 = vector.broadcast %cst_85 : f32 to vector<16x1xf32>
    %142 = arith.addf %140, %141 : vector<16x1xf32>
    %143 = math.rsqrt %142 : vector<16x1xf32>
    %144 = vector.broadcast %143 : vector<16x1xf32> to vector<16x32xf32>
    %145 = arith.mulf %135, %144 : vector<16x32xf32>
    %146 = vector.broadcast %127 : vector<1x32xf32> to vector<16x32xf32>
    %147 = arith.mulf %145, %146 : vector<16x32xf32>
    %148 = vector.broadcast %129 : vector<1x32xf32> to vector<16x32xf32>
    %149 = arith.addf %147, %148 : vector<16x32xf32>
    %150 = arith.truncf %149 : vector<16x32xf32> to vector<16x32xbf16>
    %c0_86 = arith.constant 0 : index
    %c0_87 = arith.constant 0 : index
    %c0_88 = arith.constant 0 : index
    %151 = vector.load %arg20[%c0_86, %c0_87, %c0_88] : memref<1x32x128xbf16, #tpu.memory_space<vmem>>, vector<1x32x128xbf16>
    %152 = vector.shape_cast %151 : vector<1x32x128xbf16> to vector<32x128xbf16>
    %cst_89 = arith.constant dense<0.000000e+00> : vector<16x128xf32>
    %153 = tpu.matmul %150, %152, %cst_89 {dimension_numbers = #tpu.dot_dimension_numbers<[1], [0], [0], [1], [0, 0, 1, 1], [], []>} : vector<16x32xbf16>, vector<32x128xbf16>, vector<16x128xf32> -> vector<16x128xf32>
    %c0_90 = arith.constant 0 : index
    %c0_91 = arith.constant 0 : index
    %c0_92 = arith.constant 0 : index
    %154 = vector.load %arg21[%c0_90, %c0_91, %c0_92] : memref<1x1x128xf32, #tpu.memory_space<vmem>>, vector<1x1x128xf32>
    %155 = vector.shape_cast %154 : vector<1x1x128xf32> to vector<1x128xf32>
    %156 = vector.broadcast %155 : vector<1x128xf32> to vector<16x128xf32>
    %157 = arith.addf %153, %156 : vector<16x128xf32>
    %cst_93 = arith.constant 1.702000e+00 : f32
    %158 = vector.broadcast %cst_93 : f32 to vector<16x128xf32>
    %159 = arith.mulf %158, %157 : vector<16x128xf32>
    %160 = arith.negf %159 : vector<16x128xf32>
    %161 = math.exp %160 : vector<16x128xf32>
    %cst_94 = arith.constant 1.000000e+00 : f32
    %162 = vector.broadcast %cst_94 : f32 to vector<16x128xf32>
    %163 = arith.addf %162, %161 : vector<16x128xf32>
    %164 = arith.divf %162, %163 : vector<16x128xf32>
    %165 = arith.mulf %157, %164 : vector<16x128xf32>
    %166 = arith.truncf %165 : vector<16x128xf32> to vector<16x128xbf16>
    %c0_95 = arith.constant 0 : index
    %c0_96 = arith.constant 0 : index
    %c0_97 = arith.constant 0 : index
    %167 = vector.load %arg22[%c0_95, %c0_96, %c0_97] : memref<1x128x32xbf16, #tpu.memory_space<vmem>>, vector<1x128x32xbf16>
    %168 = vector.shape_cast %167 : vector<1x128x32xbf16> to vector<128x32xbf16>
    %cst_98 = arith.constant dense<0.000000e+00> : vector<16x32xf32>
    %169 = tpu.matmul %166, %168, %cst_98 {dimension_numbers = #tpu.dot_dimension_numbers<[1], [0], [0], [1], [0, 0, 1, 1], [], []>} : vector<16x128xbf16>, vector<128x32xbf16>, vector<16x32xf32> -> vector<16x32xf32>
    %170 = arith.addf %125, %169 : vector<16x32xf32>
    %c0_99 = arith.constant 0 : index
    %c0_100 = arith.constant 0 : index
    %c0_101 = arith.constant 0 : index
    %171 = vector.load %arg23[%c0_99, %c0_100, %c0_101] : memref<1x1x32xf32, #tpu.memory_space<vmem>>, vector<1x1x32xf32>
    %172 = vector.shape_cast %171 : vector<1x1x32xf32> to vector<1x32xf32>
    %173 = vector.broadcast %172 : vector<1x32xf32> to vector<16x32xf32>
    %174 = arith.addf %170, %173 : vector<16x32xf32>
    %c0_102 = arith.constant 0 : index
    %c0_103 = arith.constant 0 : index
    %175 = vector.load %arg32[%c0_102, %c0_103] : memref<16x32xf32, #tpu.memory_space<vmem>>, vector<16x32xf32>
    tpu.vector_store %arg32[%c0_102, %c0_103], %174 {strides = array<i32>} : memref<16x32xf32, #tpu.memory_space<vmem>>, vector<16x32xf32>,
    %c1_i32 = arith.constant 1 : i32
    %176 = arith.cmpi eq, %arg0, %c1_i32 : i32
    %177 = arith.extui %176 : i1 to i32
    %c0_i32_104 = arith.constant 0 : i32
    %178 = arith.cmpi ne, %177, %c0_i32_104 : i32
    scf.if %178 {
      %c0_105 = arith.constant 0 : index
      %c0_106 = arith.constant 0 : index
      %179 = vector.load %arg32[%c0_105, %c0_106] : memref<16x32xf32, #tpu.memory_space<vmem>>, vector<16x32xf32>
      %c0_107 = arith.constant 0 : index
      %c0_108 = arith.constant 0 : index
      %180 = vector.load %arg5[%c0_107, %c0_108] : memref<2x16xf32, #tpu.memory_space<vmem>>, vector<2x16xf32>
      %cst_109 = arith.constant dense<0.000000e+00> : vector<2x32xf32>
      %181 = tpu.matmul %180, %179, %cst_109 {dimension_numbers = #tpu.dot_dimension_numbers<[1], [0], [0], [1], [0, 0, 1, 1], [], []>} : vector<2x16xf32>, vector<16x32xf32>, vector<2x32xf32> -> vector<2x32xf32>
      %c0_110 = arith.constant 0 : index
      %c0_111 = arith.constant 0 : index
      %182 = vector.load %arg24[%c0_110, %c0_111] : memref<1x32xf32, #tpu.memory_space<vmem>>, vector<1x32xf32>
      %c0_112 = arith.constant 0 : index
      %c0_113 = arith.constant 0 : index
      %183 = vector.load %arg25[%c0_112, %c0_113] : memref<1x32xf32, #tpu.memory_space<vmem>>, vector<1x32xf32>
      %cst_114 = arith.constant dense<0.000000e+00> : vector<2xf32>
      %184 = vector.multi_reduction <add>, %181, %cst_114 [1] : vector<2x32xf32> to vector<2xf32>
      %185 = vector.shape_cast %184 : vector<2xf32> to vector<2x1xf32>
      %cst_115 = arith.constant 3.200000e+01 : f32
      %186 = vector.broadcast %cst_115 : f32 to vector<2x1xf32>
      %187 = arith.divf %185, %186 : vector<2x1xf32>
      %188 = vector.broadcast %187 : vector<2x1xf32> to vector<2x32xf32>
      %189 = arith.subf %181, %188 : vector<2x32xf32>
      %190 = arith.mulf %189, %189 : vector<2x32xf32>
      %cst_116 = arith.constant dense<0.000000e+00> : vector<2xf32>
      %191 = vector.multi_reduction <add>, %190, %cst_116 [1] : vector<2x32xf32> to vector<2xf32>
      %192 = vector.shape_cast %191 : vector<2xf32> to vector<2x1xf32>
      %cst_117 = arith.constant 3.200000e+01 : f32
      %193 = vector.broadcast %cst_117 : f32 to vector<2x1xf32>
      %194 = arith.divf %192, %193 : vector<2x1xf32>
      %cst_118 = arith.constant 9.99999974E-6 : f32
      %195 = vector.broadcast %cst_118 : f32 to vector<2x1xf32>
      %196 = arith.addf %194, %195 : vector<2x1xf32>
      %197 = math.rsqrt %196 : vector<2x1xf32>
      %198 = vector.broadcast %197 : vector<2x1xf32> to vector<2x32xf32>
      %199 = arith.mulf %189, %198 : vector<2x32xf32>
      %200 = vector.broadcast %182 : vector<1x32xf32> to vector<2x32xf32>
      %201 = arith.mulf %199, %200 : vector<2x32xf32>
      %202 = vector.broadcast %183 : vector<1x32xf32> to vector<2x32xf32>
      %203 = arith.addf %201, %202 : vector<2x32xf32>
      %204 = arith.truncf %203 : vector<2x32xf32> to vector<2x32xbf16>
      %c0_119 = arith.constant 0 : index
      %c0_120 = arith.constant 0 : index
      %205 = vector.load %arg26[%c0_119, %c0_120] : memref<32x16xbf16, #tpu.memory_space<vmem>>, vector<32x16xbf16>
      %cst_121 = arith.constant dense<0.000000e+00> : vector<2x16xf32>
      %206 = tpu.matmul %204, %205, %cst_121 {dimension_numbers = #tpu.dot_dimension_numbers<[1], [0], [0], [1], [0, 0, 1, 1], [], []>} : vector<2x32xbf16>, vector<32x16xbf16>, vector<2x16xf32> -> vector<2x16xf32>
      %207 = arith.truncf %206 : vector<2x16xf32> to vector<2x16xbf16>
      %c0_122 = arith.constant 0 : index
      %c0_123 = arith.constant 0 : index
      %208 = vector.load %arg27[%c0_122, %c0_123] : memref<16x8xbf16, #tpu.memory_space<vmem>>, vector<16x8xbf16>
      %cst_124 = arith.constant dense<0.000000e+00> : vector<2x8xf32>
      %209 = tpu.matmul %207, %208, %cst_124 {dimension_numbers = #tpu.dot_dimension_numbers<[1], [0], [0], [1], [0, 0, 1, 1], [], []>} : vector<2x16xbf16>, vector<16x8xbf16>, vector<2x8xf32> -> vector<2x8xf32>
      %c0_125 = arith.constant 0 : index
      %c0_126 = arith.constant 0 : index
      %210 = vector.load %arg28[%c0_125, %c0_126] : memref<1x8xf32, #tpu.memory_space<vmem>>, vector<1x8xf32>
      %211 = vector.broadcast %210 : vector<1x8xf32> to vector<2x8xf32>
      %212 = arith.addf %209, %211 : vector<2x8xf32>
      %cst_127 = arith.constant dense<0.000000e+00> : vector<8xf32>
      %213 = vector.multi_reduction <add>, %212, %cst_127 [0] : vector<2x8xf32> to vector<8xf32>
      %214 = vector.shape_cast %213 : vector<8xf32> to vector<1x8xf32>
      %cst_128 = arith.constant 2.000000e+00 : f32
      %215 = vector.broadcast %cst_128 : f32 to vector<1x8xf32>
      %216 = arith.divf %214, %215 : vector<1x8xf32>
      %217 = vector.broadcast %216 : vector<1x8xf32> to vector<2x8xf32>
      %218 = arith.subf %212, %217 : vector<2x8xf32>
      %219 = arith.mulf %218, %218 : vector<2x8xf32>
      %cst_129 = arith.constant dense<0.000000e+00> : vector<8xf32>
      %220 = vector.multi_reduction <add>, %219, %cst_129 [0] : vector<2x8xf32> to vector<8xf32>
      %221 = vector.shape_cast %220 : vector<8xf32> to vector<1x8xf32>
      %cst_130 = arith.constant 2.000000e+00 : f32
      %222 = vector.broadcast %cst_130 : f32 to vector<1x8xf32>
      %223 = arith.divf %221, %222 : vector<1x8xf32>
      %cst_131 = arith.constant 9.99999974E-6 : f32
      %224 = vector.broadcast %cst_131 : f32 to vector<1x8xf32>
      %225 = arith.addf %223, %224 : vector<1x8xf32>
      %226 = math.rsqrt %225 : vector<1x8xf32>
      %227 = vector.broadcast %226 : vector<1x8xf32> to vector<2x8xf32>
      %228 = arith.mulf %218, %227 : vector<2x8xf32>
      %c0_132 = arith.constant 0 : index
      %c0_133 = arith.constant 0 : index
      %229 = vector.load %arg29[%c0_132, %c0_133] : memref<1x8xf32, #tpu.memory_space<vmem>>, vector<1x8xf32>
      %230 = vector.broadcast %229 : vector<1x8xf32> to vector<2x8xf32>
      %231 = arith.mulf %228, %230 : vector<2x8xf32>
      %c0_134 = arith.constant 0 : index
      %c0_135 = arith.constant 0 : index
      %232 = vector.load %arg30[%c0_134, %c0_135] : memref<1x8xf32, #tpu.memory_space<vmem>>, vector<1x8xf32>
      %233 = vector.broadcast %232 : vector<1x8xf32> to vector<2x8xf32>
      %234 = arith.addf %231, %233 : vector<2x8xf32>
      %c0_136 = arith.constant 0 : index
      %c0_137 = arith.constant 0 : index
      %235 = vector.load %arg31[%c0_136, %c0_137] : memref<2x8xf32, #tpu.memory_space<vmem>>, vector<2x8xf32>
      tpu.vector_store %arg31[%c0_136, %c0_137], %234 {strides = array<i32>} : memref<2x8xf32, #tpu.memory_space<vmem>>, vector<2x8xf32>,
    } else {
    }
    return
  }
  func.func @transform_0(%arg0: i32) -> (i32, i32) {
    %c0_i32 = arith.constant 0 : i32
    %c0_i32_0 = arith.constant 0 : i32
    %c0_i32_1 = arith.constant 0 : i32
    return %c0_i32, %c0_i32_0 : i32, i32
  }
  func.func @transform_1(%arg0: i32) -> (i32, i32) {
    %c0_i32 = arith.constant 0 : i32
    %c0_i32_0 = arith.constant 0 : i32
    %c0_i32_1 = arith.constant 0 : i32
    return %c0_i32, %c0_i32_0 : i32, i32
  }
  func.func @transform_2(%arg0: i32) -> (i32, i32) {
    %c0_i32 = arith.constant 0 : i32
    %c0_i32_0 = arith.constant 0 : i32
    %c0_i32_1 = arith.constant 0 : i32
    return %c0_i32, %c0_i32_0 : i32, i32
  }
  func.func @transform_3(%arg0: i32) -> (i32, i32) {
    %c0_i32 = arith.constant 0 : i32
    %c0_i32_0 = arith.constant 0 : i32
    %c0_i32_1 = arith.constant 0 : i32
    return %c0_i32, %c0_i32_0 : i32, i32
  }
  func.func @transform_4(%arg0: i32) -> (i32, i32) {
    %c0_i32 = arith.constant 0 : i32
    %c0_i32_0 = arith.constant 0 : i32
    %c0_i32_1 = arith.constant 0 : i32
    return %c0_i32, %c0_i32_0 : i32, i32
  }
  func.func @transform_5(%arg0: i32) -> (i32, i32) {
    %c0_i32 = arith.constant 0 : i32
    %c0_i32_0 = arith.constant 0 : i32
    %c0_i32_1 = arith.constant 0 : i32
    return %c0_i32, %c0_i32_0 : i32, i32
  }
  func.func @transform_6(%arg0: i32) -> (i32, i32) {
    %c0_i32 = arith.constant 0 : i32
    %c0_i32_0 = arith.constant 0 : i32
    %c0_i32_1 = arith.constant 0 : i32
    return %c0_i32, %c0_i32_0 : i32, i32
  }
  func.func @transform_7(%arg0: i32) -> (i32, i32, i32) {
    %c0_i32 = arith.constant 0 : i32
    %c0_i32_0 = arith.constant 0 : i32
    %c0_i32_1 = arith.constant 0 : i32
    return %arg0, %c0_i32, %c0_i32_0 : i32, i32, i32
  }
  func.func @transform_8(%arg0: i32) -> (i32, i32, i32) {
    %c0_i32 = arith.constant 0 : i32
    %c0_i32_0 = arith.constant 0 : i32
    %c0_i32_1 = arith.constant 0 : i32
    return %arg0, %c0_i32, %c0_i32_0 : i32, i32, i32
  }
  func.func @transform_9(%arg0: i32) -> (i32, i32, i32, i32) {
    %c0_i32 = arith.constant 0 : i32
    %c0_i32_0 = arith.constant 0 : i32
    %c0_i32_1 = arith.constant 0 : i32
    %c0_i32_2 = arith.constant 0 : i32
    return %arg0, %c0_i32, %c0_i32_0, %c0_i32_1 : i32, i32, i32, i32
  }
  func.func @transform_10(%arg0: i32) -> (i32, i32, i32, i32) {
    %c0_i32 = arith.constant 0 : i32
    %c0_i32_0 = arith.constant 0 : i32
    %c0_i32_1 = arith.constant 0 : i32
    %c0_i32_2 = arith.constant 0 : i32
    return %arg0, %c0_i32, %c0_i32_0, %c0_i32_1 : i32, i32, i32, i32
  }
  func.func @transform_11(%arg0: i32) -> (i32, i32, i32, i32) {
    %c0_i32 = arith.constant 0 : i32
    %c0_i32_0 = arith.constant 0 : i32
    %c0_i32_1 = arith.constant 0 : i32
    %c0_i32_2 = arith.constant 0 : i32
    return %arg0, %c0_i32, %c0_i32_0, %c0_i32_1 : i32, i32, i32, i32
  }
  func.func @transform_12(%arg0: i32) -> (i32, i32, i32, i32) {
    %c0_i32 = arith.constant 0 : i32
    %c0_i32_0 = arith.constant 0 : i32
    %c0_i32_1 = arith.constant 0 : i32
    %c0_i32_2 = arith.constant 0 : i32
    return %arg0, %c0_i32, %c0_i32_0, %c0_i32_1 : i32, i32, i32, i32
  }
  func.func @transform_13(%arg0: i32) -> (i32, i32, i32, i32) {
    %c0_i32 = arith.constant 0 : i32
    %c0_i32_0 = arith.constant 0 : i32
    %c0_i32_1 = arith.constant 0 : i32
    %c0_i32_2 = arith.constant 0 : i32
    return %arg0, %c0_i32, %c0_i32_0, %c0_i32_1 : i32, i32, i32, i32
  }
  func.func @transform_14(%arg0: i32) -> (i32, i32, i32, i32) {
    %c0_i32 = arith.constant 0 : i32
    %c0_i32_0 = arith.constant 0 : i32
    %c0_i32_1 = arith.constant 0 : i32
    %c0_i32_2 = arith.constant 0 : i32
    return %arg0, %c0_i32, %c0_i32_0, %c0_i32_1 : i32, i32, i32, i32
  }
  func.func @transform_15(%arg0: i32) -> (i32, i32, i32, i32) {
    %c0_i32 = arith.constant 0 : i32
    %c0_i32_0 = arith.constant 0 : i32
    %c0_i32_1 = arith.constant 0 : i32
    %c0_i32_2 = arith.constant 0 : i32
    return %arg0, %c0_i32, %c0_i32_0, %c0_i32_1 : i32, i32, i32, i32
  }
  func.func @transform_16(%arg0: i32) -> (i32, i32, i32) {
    %c0_i32 = arith.constant 0 : i32
    %c0_i32_0 = arith.constant 0 : i32
    %c0_i32_1 = arith.constant 0 : i32
    return %arg0, %c0_i32, %c0_i32_0 : i32, i32, i32
  }
  func.func @transform_17(%arg0: i32) -> (i32, i32, i32) {
    %c0_i32 = arith.constant 0 : i32
    %c0_i32_0 = arith.constant 0 : i32
    %c0_i32_1 = arith.constant 0 : i32
    return %arg0, %c0_i32, %c0_i32_0 : i32, i32, i32
  }
  func.func @transform_18(%arg0: i32) -> (i32, i32, i32) {
    %c0_i32 = arith.constant 0 : i32
    %c0_i32_0 = arith.constant 0 : i32
    %c0_i32_1 = arith.constant 0 : i32
    return %arg0, %c0_i32, %c0_i32_0 : i32, i32, i32
  }
  func.func @transform_19(%arg0: i32) -> (i32, i32, i32) {
    %c0_i32 = arith.constant 0 : i32
    %c0_i32_0 = arith.constant 0 : i32
    %c0_i32_1 = arith.constant 0 : i32
    return %arg0, %c0_i32, %c0_i32_0 : i32, i32, i32
  }
  func.func @transform_20(%arg0: i32) -> (i32, i32, i32) {
    %c0_i32 = arith.constant 0 : i32
    %c0_i32_0 = arith.constant 0 : i32
    %c0_i32_1 = arith.constant 0 : i32
    return %arg0, %c0_i32, %c0_i32_0 : i32, i32, i32
  }
  func.func @transform_21(%arg0: i32) -> (i32, i32, i32) {
    %c0_i32 = arith.constant 0 : i32
    %c0_i32_0 = arith.constant 0 : i32
    %c0_i32_1 = arith.constant 0 : i32
    return %arg0, %c0_i32, %c0_i32_0 : i32, i32, i32
  }
  func.func @transform_22(%arg0: i32) -> (i32, i32, i32) {
    %c0_i32 = arith.constant 0 : i32
    %c0_i32_0 = arith.constant 0 : i32
    %c0_i32_1 = arith.constant 0 : i32
    return %arg0, %c0_i32, %c0_i32_0 : i32, i32, i32
  }
  func.func @transform_23(%arg0: i32) -> (i32, i32) {
    %c0_i32 = arith.constant 0 : i32
    %c0_i32_0 = arith.constant 0 : i32
    %c0_i32_1 = arith.constant 0 : i32
    return %c0_i32, %c0_i32_0 : i32, i32
  }
  func.func @transform_24(%arg0: i32) -> (i32, i32) {
    %c0_i32 = arith.constant 0 : i32
    %c0_i32_0 = arith.constant 0 : i32
    %c0_i32_1 = arith.constant 0 : i32
    return %c0_i32, %c0_i32_0 : i32, i32
  }
  func.func @transform_25(%arg0: i32) -> (i32, i32) {
    %c0_i32 = arith.constant 0 : i32
    %c0_i32_0 = arith.constant 0 : i32
    %c0_i32_1 = arith.constant 0 : i32
    return %c0_i32, %c0_i32_0 : i32, i32
  }
  func.func @transform_26(%arg0: i32) -> (i32, i32) {
    %c0_i32 = arith.constant 0 : i32
    %c0_i32_0 = arith.constant 0 : i32
    %c0_i32_1 = arith.constant 0 : i32
    return %c0_i32, %c0_i32_0 : i32, i32
  }
  func.func @transform_27(%arg0: i32) -> (i32, i32) {
    %c0_i32 = arith.constant 0 : i32
    %c0_i32_0 = arith.constant 0 : i32
    %c0_i32_1 = arith.constant 0 : i32
    return %c0_i32, %c0_i32_0 : i32, i32
  }
  func.func @transform_28(%arg0: i32) -> (i32, i32) {
    %c0_i32 = arith.constant 0 : i32
    %c0_i32_0 = arith.constant 0 : i32
    %c0_i32_1 = arith.constant 0 : i32
    return %c0_i32, %c0_i32_0 : i32, i32
  }
  func.func @transform_29(%arg0: i32) -> (i32, i32) {
    %c0_i32 = arith.constant 0 : i32
    %c0_i32_0 = arith.constant 0 : i32
    %c0_i32_1 = arith.constant 0 : i32
    return %c0_i32, %c0_i32_0 : i32, i32
  }
  func.func @transform_30(%arg0: i32) -> (i32, i32) {
    %c0_i32 = arith.constant 0 : i32
    %c0_i32_0 = arith.constant 0 : i32
    %c0_i32_1 = arith.constant 0 : i32
    return %c0_i32, %c0_i32_0 : i32, i32
  }
}

</mosaic_0001>

<bundles_post_ra>
// kernel: create_clip_vit_forward.1
= control target key start
LH: loop header
LB: loop body
LE: loop exit
PB: predicated region body
PF: predicated region fallthrough
CT: control target
= control target key end

     0   :  { %s7549_s6 = smov 1   ;;  %s7550_s10 = smov 2   ;;  %s9207_s0 = inlined_call_operand.smem [shape: u32[31], index: -1, kind: input, shape index: {}] }
   0x1   :  { %s7632_s5 = sld [smem:[%s9207_s0]]   ;;  %s7551_s14 = smov 3  }
   0x2   :  { %s7637_s9 = sld [smem:[%s9207_s0 + %s7549_s6]]   ;;  %s7552_s18 = smov 4  }
   0x3   :  { %s7642_s13 = sld [smem:[%s9207_s0 + %s7550_s10]]   ;;  %s7553_s22 = smov 5  }
   0x4   :  { %s7647_s17 = sld [smem:[%s9207_s0 + %s7551_s14]]   ;;  %s7554_s26 = smov 6  }
   0x5   :  { %s7652_s21 = sld [smem:[%s9207_s0 + %s7552_s18]]   ;;  %s7555_s30 = smov 7  }
   0x6   :  { %s7657_s25 = sld [smem:[%s9207_s0 + %s7553_s22]]   ;;  %s7556_s4 = smov 8  }
   0x7   :  { %9273 = sst [smem:[#allocation68_spill]] %s7632_s5  ;;  %s7557_s10 = smov 9  }
   0x8   :  { %9274 = sst [smem:[#allocation69_spill]] %s7637_s9  ;;  %s7558_s15 = smov 10  }
   0x9   :  { %9275 = sst [smem:[#allocation70_spill]] %s7642_s13  ;;  %s7559_s20 = smov 11  }
   0xa   :  { %9276 = sst [smem:[#allocation71_spill]] %s7647_s17  ;;  %s7561_s1 = smov 13  }
   0xb   :  { %9277 = sst [smem:[#allocation72_spill]] %s7652_s21  ;;  %s7562_s7 = smov 14  }
   0xc   :  { %s7662_s29 = sld [smem:[%s9207_s0 + %s7554_s26]]   ;;  %s7560_s26 = smov 12  }
   0xd   :  { %s7667_s3 = sld [smem:[%s9207_s0 + %s7555_s30]]   ;;  %s7564_s22 = smov 16  }
   0xe   :  { %s7672_s8 = sld [smem:[%s9207_s0 + %s7556_s4]]   ;;  %s7565_s28 = smov 17  }
   0xf   :  { %s7677_s14 = sld [smem:[%s9207_s0 + %s7557_s10]]  }
  0x10   :  { %s7682_s19 = sld [smem:[%s9207_s0 + %s7558_s15]]   ;;  %s7563_s15 = smov 15  }
  0x11   :  { %s7687_s24 = sld [smem:[%s9207_s0 + %s7559_s20]]  }
  0x12   :  { %s7692_s30 = sld [smem:[%s9207_s0 + %s7560_s26]]  }
  0x13   :  { %9278 = sst [smem:[#allocation73_spill]] %s7667_s3 }
  0x14   :  { %9279 = sst [smem:[#allocation74_spill]] %s7672_s8 }
  0x15   :  { %9280 = sst [smem:[#allocation75_spill]] %s7677_s14 }
  0x16   :  { %9281 = sst [smem:[#allocation76_spill]] %s7682_s19 }
  0x17   :  { %s7697_s6 = sld [smem:[%s9207_s0 + %s7561_s1]]  }
  0x18   :  { %9282 = sst [smem:[#allocation77_spill]] %s7692_s30 }
  0x19   :  { %s7702_s12 = sld [smem:[%s9207_s0 + %s7562_s7]]   ;;  %s7566_s7 = smov 18  }
  0x1a   :  { %s7707_s20 = sld [smem:[%s9207_s0 + %s7563_s15]]   ;;  %s7567_s15 = smov 19  }
  0x1b   :  { %s7712_s27 = sld [smem:[%s9207_s0 + %s7564_s22]]   ;;  %s7568_s22 = smov 20  }
  0x1c   :  { %s7717_s4 = sld [smem:[%s9207_s0 + %s7565_s28]]   ;;  %s7569_s28 = smov 21  }
  0x1d   :  { %9283 = sst [smem:[#allocation78_spill]] %s7697_s6 }
  0x1e   :  { %s7727_s30 = sld [smem:[%s9207_s0 + %s7567_s15]]   ;;  %s7571_s15 = smov 23  }
  0x1f   :  { %9284 = sst [smem:[#allocation79_spill]] %s7702_s12 }
  0x20   :  { %9285 = sst [smem:[#allocation80_spill]] %s7707_s20 }
  0x21   :  { %9286 = sst [smem:[#allocation81_spill]] %s7712_s27 }
  0x22   :  { %9287 = sst [smem:[#allocation82_spill]] %s7717_s4 }
  0x23   :  { %s7722_s12 = sld [smem:[%s9207_s0 + %s7566_s7]]   ;;  %s7570_s7 = smov 22  }
  0x24   :  { %9289 = sst [smem:[#allocation84_spill]] %s7727_s30 }
  0x25   :  { %s7732_s27 = sld [smem:[%s9207_s0 + %s7568_s22]]   ;;  %s7572_s22 = smov 24  }
  0x26   :  { %s7737_s19 = sld [smem:[%s9207_s0 + %s7569_s28]]   ;;  %s7573_s28 = smov 25  }
  0x27   :  { %s7747_s8 = sld [smem:[%s9207_s0 + %s7571_s15]]   ;;  %s7575_s15 = smov 27  }
  0x28   :  { %s7767_s30 = sld [smem:[%s9207_s0 + %s7575_s15]]  }
  0x29   :  { %9288 = sst [smem:[#allocation83_spill]] %s7722_s12 }
  0x2a   :  { %s7742_s12 = sld [smem:[%s9207_s0 + %s7570_s7]]   ;;  %s7574_s7 = smov 26  }
  0x2b   :  { %9290 = sst [smem:[#allocation85_spill]] %s7732_s27 }
  0x2c   :  { %9291 = sst [smem:[#allocation86_spill]] %s7737_s19 }
  0x2d   :  { %9293 = sst [smem:[#allocation88_spill]] %s7747_s8 }
  0x2e   :  { %s7752_s27 = sld [smem:[%s9207_s0 + %s7572_s22]]   ;;  %s7576_s22 = smov 28  }
  0x2f   :  { %s7757_s19 = sld [smem:[%s9207_s0 + %s7573_s28]]   ;;  %s7577_s28 = smov 29  }
  0x30   :  { %9292 = sst [smem:[#allocation87_spill]] %s7742_s12 }
  0x31   :  { %s7762_s12 = sld [smem:[%s9207_s0 + %s7574_s7]]   ;;  %s7578_s7 = smov 30  }
  0x32   :  { %s7772_s4 = sld [smem:[%s9207_s0 + %s7576_s22]]  }
  0x33   :  { %s7777_s20 = sld [smem:[%s9207_s0 + %s7577_s28]]  }
  0x34   :  { %s7782_s6 = sld [smem:[%s9207_s0 + %s7578_s7]]  }
  0x35   :  { %9294 = sst [smem:[#allocation89_spill]] %s7757_s19 }
  0x37   :  { %9295 = sst [smem:[#allocation90_spill]] %s7762_s12 }
  0x38   :  { %9296 = sst [smem:[#allocation91_spill]] %s7772_s4 }
  0x39   :  { %9297 = sst [smem:[#allocation92_spill]] %s7777_s20 }
  0x3a   :  { %9298 = sst [smem:[#allocation93_spill]] %s7782_s6 }
  0x3b   :  { %66 = vsyncpa [#allocation4], 0 }
  0x3c   :  { %67 = vsyncpa [#allocation7], 0 }
  0x3d   :  { %68 = vsyncpa [#allocation10], 0 }
  0x3e   :  { %69 = vsyncpa [#allocation13], 0 }
  0x3f   :  { %70 = vsyncpa [#allocation16], 0 }
  0x40   :  { %72 = vsyncpa [#allocation16 + $0x1], 0 }
  0x41   :  { %73 = vsyncpa [#allocation19], 0 }
  0x42   :  { %75 = vsyncpa [#allocation19 + $0x1], 0 }
  0x43   :  { %76 = vsyncpa [#allocation22], 0 }
  0x44   :  { %78 = vsyncpa [#allocation22 + $0x1], 0 }
  0x45   :  { %79 = vsyncpa [#allocation25], 0 }
  0x46   :  { %81 = vsyncpa [#allocation25 + $0x1], 0 }
  0x47   :  { %82 = vsyncpa [#allocation28], 0 }
  0x48   :  { %84 = vsyncpa [#allocation28 + $0x1], 0 }
  0x49   :  { %85 = vsyncpa [#allocation31], 0 }
  0x4a   :  { %87 = vsyncpa [#allocation31 + $0x1], 0 }
  0x4b   :  { %88 = vsyncpa [#allocation34], 0 }
  0x4c   :  { %90 = vsyncpa [#allocation34 + $0x1], 0 }
  0x4d   :  { %91 = vsyncpa [#allocation37], 0 }
  0x4e   :  { %93 = vsyncpa [#allocation37 + $0x1], 0 }
  0x4f   :  { %94 = vsyncpa [#allocation40], 0 }
  0x50   :  { %95 = vsyncpa [#allocation43], 0 }
  0x51   :  { %96 = vsyncpa [#allocation46], 0 }
  0x52   :  { %97 = vsyncpa [#allocation49], 0 }
  0x53   :  { %98 = vsyncpa [#allocation5], 0  ;;  %s7784_s0 = smov 0   ;;  %s7786_s15 = smov 0  }
  0x54   :  { %s7788_s16 = smov 0   ;;  %s7790_s18 = smov 0  }
  0x55 LB: > { %s9299_s21 = sld [smem:[#allocation72_spill]]  ;;  %s9300_s20 = sld [smem:[#allocation92_spill]]  ;;  %s7547_s18 = sphi %s7790_s18, %s9384_s18   ;;  %s7543_s16 = sphi %s7788_s16, %s9388_s16   ;;  %s7539_s15 = sphi %s7786_s15, %s9387_s15   ;;  %s7535_s0 = sphi %s7784_s0, %s9385_s0  }
  0x56   : > { %s9301_s19 = sld [smem:[#allocation89_spill]]  ;;  %s9302_s14 = sld [smem:[#allocation75_spill]] }
  0x57   : > { %s9303_s13 = sld [smem:[#allocation70_spill]]  ;;  %s9304_s12 = sld [smem:[#allocation90_spill]] }
  0x58   : > { %s9305_s5 = sld [smem:[#allocation68_spill]]  ;;  %s9306_s4 = sld [smem:[#allocation91_spill]] }
  0x59   : > { %s9307_s3 = sld [smem:[#allocation73_spill]]  ;;  %s9308_s17 = sld [smem:[#allocation71_spill]] }
  0x5a   : > { %s9309_s9 = sld [smem:[#allocation69_spill]]  ;;  %s9310_s8 = sld [smem:[#allocation88_spill]] }
  0x5b   : > { %9311 = sst [smem:[#allocation94_spill]] %s7539_s15  ;;  %s7803_s22 = sadd.s32 4294967295, %s7547_s18  }
  0x5c   : > { %9312 = sst [smem:[#allocation95_spill]] %s7803_s22  ;;  %s7806_s23 = sadd.s32 1, %s7547_s18  }
  0x5d   : > { %9313 = sst [smem:[#allocation96_spill]] %s7806_s23  ;;  %s255_s26 = ssub.s32 %s7547_s18, %s7806_s23 }
  0x5e   : > { %s258_s28 = sadd.s32 1, %s7543_s16  ;;  %p256_p0 = scmp.eq.s32.totalorder %s255_s26, 0 }
  0x5f   : > { %p265_p1 = scmp.ne.s32.totalorder %s7543_s16, %s7539_s15  ;;  %p266_p2 = scmp.eq.s32.totalorder %s7547_s18, 0 }
  0x60   : > { %p271_p3 = scmp.ne.s32.totalorder %s7539_s15, %s7535_s0  ;;  %p9226_p5 = scmp.eq.s32.totalorder %s7803_s22, 0 }
  0x61   : > { %s7816_s1 = scalar_select %p256_p0, %s7543_s16, %s258_s28  }
  0x62   : > { %p7818_p4 = por %p266_p2, %p265_p1  ;;  %p5468_p6 = scmp.ge.s32.totalorder %s7547_s18, 1 }
  0x63   : > { %9314 = sst [smem:[#allocation97_spill]] %s7816_s1  ;;  %p840_p7 = scmp.lt.s32.totalorder %s7547_s18, 3 }
  0x64   : > { %s9315_s2 = scalar_select %p7818_p4, 1, 0 }
  0x65   : > { %p7827_p8 = por %p9226_p5, %p271_p3  ;;  %p7832_p10 = pnand %p5468_p6, %p840_p7 }
  0x66   : > { %s7579_s11 = smov [#allocation6]   ;;  %s7580_s28 = smov [#allocation9]  }
  0x67   : > { %s9316_s7 = scalar_select %p7827_p8, 1, 0 }
  0x68   : > { %s9318_s10 = scalar_select %p7832_p10, 1, 0 }
  0x69   : > { %9317 = sst [smem:[#allocation98_spill]] %s9316_s7  ;;  %s865_s0 = sshll.u32 %s7579_s11, 4  ;;  %s7838_s0 = int_to_ptr.vmem [resolvable:$true] %s865_s0 }
  0x6a   : > { %p6311_p11 = pneg %p7832_p10  ;;  %s892_s1 = sshll.u32 %s7580_s28, 4  ;;  %s7846_s1 = int_to_ptr.vmem [resolvable:$true] %s892_s1 }
  0x6b   : > { %s7581_s23 = smov [#allocation12]   ;;  %s6583_s7 = scalar_lea.hbm %s9309_s9, 1536 }
  0x6c   : > { %p7842_p12 = pnand %p6311_p11, %p9226_p5  ;;  %s7848_s6 = sshll.u32 %s7581_s23, 4  ;;  %s915_s6 = int_to_ptr.vmem [resolvable:$true] %s7848_s6 }
  0x6d   : > { %p6584_p13 = scmp.ne.s32.totalorder %s9309_s9, %s6583_s7  ;;  %p6590_p3 = scmp.lt.u32.totalorder %s6583_s7, %s9309_s9 }
  0x6e   : > { %p7854_p0 = pneg %p7842_p12 }
  0x70   : > { %p6586_p1 = pnand %p7854_p0, %p6584_p13 }
  0x72   : > { %p6587_p2 = pneg %p6586_p1 }
  0x74   : > { %p6592_p6 = pnand %p6590_p3, %p6587_p2 }
  0x76   : > { %6595 = shalt.err (!%p6592_p6)
}
  0x77   : > { %s6596_s23 = scalar_lea.vmem %s7838_s0, 1536  ;;  %p6604_p5 = scmp.lt.s32.totalorder %s7838_s0, %s7838_s0 }
  0x78   : > { %p6597_p7 = scmp.ne.s32.totalorder %s7838_s0, %s6596_s23  ;;  %p6605_p8 = scmp.lt.s32.totalorder %s6596_s23, %s6596_s23 }
  0x7a   : > { %p6599_p11 = pnand %p6597_p7, %p7854_p0  ;;  %p6606_p10 = por %p6605_p8, %p6604_p5 }
  0x7c   : > { %p6600_p9 = pneg %p6599_p11 }
  0x7e   : > { %p6607_p4 = pnand %p6606_p10, %p6600_p9 }
  0x80   : > { %6610 = shalt.err (!%p6607_p4)
}
  0x81   : > { %s9234_s28 = smov 64   ;;  %s9236_s7 = smov 4  }
  0x82   : > { %6317 = dma.hbm_to_vmem [thread:$0]  (!%p7842_p12), %s9309_s9, 1536, %s7838_s0, [#allocation7], %s9234_s28, %s9234_s28, %s9236_s7  }
  0x83   : > { %s6611_s15 = scalar_lea.hbm %s9308_s17, 16 }
  0x84   : > { %p6612_p13 = scmp.ne.s32.totalorder %s9308_s17, %s6611_s15  ;;  %p6618_p4 = scmp.lt.u32.totalorder %s6611_s15, %s9308_s17 }
  0x86   : > { %p6614_p5 = pnand %p6612_p13, %p7854_p0 }
  0x88   : > { %p6615_p8 = pneg %p6614_p5 }
  0x8a   : > { %p6620_p9 = pnand %p6618_p4, %p6615_p8 }
  0x8c   : > { %6623 = shalt.err (!%p6620_p9)
}
  0x8d   : > { %s6624_s23 = scalar_lea.vmem %s7846_s1, 16  ;;  %s6631_s22 = scalar_lea.vmem %s7846_s1, 32 }
  0x8e   : > { %p6625_p10 = scmp.ne.s32.totalorder %s7846_s1, %s6624_s23  ;;  %p6632_p3 = scmp.lt.s32.totalorder %s7846_s1, %s7846_s1 }
  0x8f   : > { %p6633_p6 = scmp.lt.s32.totalorder %s6631_s22, %s6624_s23 }
  0x90   : > { %p6627_p1 = pnand %p6625_p10, %p7854_p0 }
  0x91   : > { %p6634_p7 = por %p6633_p6, %p6632_p3 }
  0x92   : > { %p6628_p2 = pneg %p6627_p1 }
  0x94   : > { %p6635_p11 = pnand %p6634_p7, %p6628_p2 }
  0x96   : > { %6638 = shalt.err (!%p6635_p11)
}
  0x97   : > { %6323 = dma.hbm_to_vmem [thread:$0]  (!%p7842_p12), %s9308_s17, 16, %s7846_s1, [#allocation10]  }
  0x98   : > { %s6639_s15 = scalar_lea.hbm %s7657_s25, 16 }
  0x99   : > { %p6640_p13 = scmp.ne.s32.totalorder %s7657_s25, %s6639_s15  ;;  %p6646_p4 = scmp.lt.u32.totalorder %s6639_s15, %s7657_s25 }
  0x9b   : > { %p6642_p5 = pnand %p6640_p13, %p7854_p0 }
  0x9d   : > { %p6643_p8 = pneg %p6642_p5 }
  0x9f   : > { %p6648_p9 = pnand %p6646_p4, %p6643_p8 }
  0xa1   : > { %6651 = shalt.err (!%p6648_p9)
}
  0xa2   : > { %s6652_s22 = scalar_lea.vmem %s915_s6, 16  ;;  %s6659_s0 = scalar_lea.vmem %s915_s6, 32 }
  0xa3   : > { %p6653_p10 = scmp.ne.s32.totalorder %s915_s6, %s6652_s22  ;;  %p6660_p3 = scmp.lt.s32.totalorder %s915_s6, %s915_s6 }
  0xa4   : > { %p6661_p6 = scmp.lt.s32.totalorder %s6659_s0, %s6652_s22 }
  0xa5   : > { %p6655_p1 = pnand %p6653_p10, %p7854_p0 }
  0xa6   : > { %p6662_p7 = por %p6661_p6, %p6660_p3 }
  0xa7   : > { %p6656_p2 = pneg %p6655_p1 }
  0xa9   : > { %p6663_p11 = pnand %p6662_p7, %p6656_p2 }
  0xab   : > { %6666 = shalt.err (!%p6663_p11)
}
  0xac   : > { %6329 = dma.hbm_to_vmem [thread:$0]  (!%p7842_p12), %s7657_s25, 16, %s915_s6, [#allocation13]  }
  0xad   : > { %s7584_s1 = smov [#allocation39]   ;;  %s7585_s15 = smov [#allocation42]  }
  0xae   : > { %s936_s23 = sshll.u32 %s7584_s1, 4  ;;  %s957_s28 = sshll.u32 %s7585_s15, 4  ;;  %s937_s23 = int_to_ptr.vmem [resolvable:$true] %s936_s23  ;;  %s958_s28 = int_to_ptr.vmem [resolvable:$true] %s957_s28 }
  0xaf   : > { %s6667_s7 = scalar_lea.hbm %s9310_s8, 16 }
  0xb0   : > { %p6668_p13 = scmp.ne.s32.totalorder %s9310_s8, %s6667_s7  ;;  %p6674_p4 = scmp.lt.u32.totalorder %s6667_s7, %s9310_s8 }
  0xb2   : > { %p6670_p5 = pnand %p6668_p13, %p7854_p0 }
  0xb4   : > { %p6671_p8 = pneg %p6670_p5 }
  0xb6   : > { %p6676_p9 = pnand %p6674_p4, %p6671_p8 }
  0xb8   : > { %6679 = shalt.err (!%p6676_p9)
}
  0xb9   : > { %s6680_s22 = scalar_lea.vmem %s937_s23, 16  ;;  %s6687_s6 = scalar_lea.vmem %s937_s23, 32 }
  0xba   : > { %p6681_p10 = scmp.ne.s32.totalorder %s937_s23, %s6680_s22  ;;  %p6688_p3 = scmp.lt.s32.totalorder %s937_s23, %s937_s23 }
  0xbb   : > { %p6689_p6 = scmp.lt.s32.totalorder %s6687_s6, %s6680_s22 }
  0xbc   : > { %p6683_p1 = pnand %p6681_p10, %p7854_p0 }
  0xbd   : > { %p6690_p7 = por %p6689_p6, %p6688_p3 }
  0xbe   : > { %p6684_p2 = pneg %p6683_p1 }
  0xc0   : > { %p6691_p11 = pnand %p6690_p7, %p6684_p2 }
  0xc2   : > { %6694 = shalt.err (!%p6691_p11)
}
  0xc3   : > { %6335 = dma.hbm_to_vmem [thread:$0]  (!%p7842_p12), %s9310_s8, 16, %s937_s23, [#allocation40]  }
  0xc4   : > { %s6695_s7 = scalar_lea.hbm %s9301_s19, 256 }
  0xc5   : > { %p6696_p13 = scmp.ne.s32.totalorder %s9301_s19, %s6695_s7  ;;  %p6702_p4 = scmp.lt.u32.totalorder %s6695_s7, %s9301_s19 }
  0xc7   : > { %p6698_p5 = pnand %p6696_p13, %p7854_p0 }
  0xc9   : > { %p6699_p8 = pneg %p6698_p5 }
  0xcb   : > { %p6704_p9 = pnand %p6702_p4, %p6699_p8 }
  0xcd   : > { %6707 = shalt.err (!%p6704_p9)
}
  0xce   : > { %s6708_s0 = scalar_lea.vmem %s958_s28, 256  ;;  %p6716_p3 = scmp.lt.s32.totalorder %s958_s28, %s958_s28 }
  0xcf   : > { %p6709_p10 = scmp.ne.s32.totalorder %s958_s28, %s6708_s0  ;;  %p6717_p6 = scmp.lt.s32.totalorder %s6708_s0, %s6708_s0 }
  0xd1   : > { %p6711_p1 = pnand %p6709_p10, %p7854_p0  ;;  %p6718_p7 = por %p6717_p6, %p6716_p3 }
  0xd3   : > { %p6712_p2 = pneg %p6711_p1 }
  0xd5   : > { %p6719_p11 = pnand %p6718_p7, %p6712_p2 }
  0xd7   : > { %6722 = shalt.err (!%p6719_p11)
}
  0xd8   : > { %s9321_s1 = smov 4   ;;  %s9322_s23 = smov 64  }
  0xd9   : > { %6341 = dma.hbm_to_vmem [thread:$0]  (!%p7842_p12), %s9301_s19, 256, %s958_s28, [#allocation43], %s9322_s23, %s9322_s23, %s9321_s1  }
  0xda   : > { %s7586_s15 = smov [#allocation45]   ;;  %s7587_s6 = smov [#allocation3]  }
  0xdb   : > { %s984_s22 = sshll.u32 %s7586_s15, 4  ;;  %s852_s7 = sshll.u32 %s7587_s6, 4  ;;  %s985_s22 = int_to_ptr.vmem [resolvable:$true] %s984_s22  ;;  %s853_s7 = int_to_ptr.vmem [resolvable:$true] %s852_s7 }
  0xdc   : > { %s6723_s0 = scalar_lea.hbm %s7767_s30, 16 }
  0xdd   : > { %p6724_p13 = scmp.ne.s32.totalorder %s7767_s30, %s6723_s0  ;;  %p6730_p4 = scmp.lt.u32.totalorder %s6723_s0, %s7767_s30 }
  0xdf   : > { %p6726_p5 = pnand %p6724_p13, %p7854_p0 }
  0xe1   : > { %p6727_p8 = pneg %p6726_p5 }
  0xe3   : > { %p6732_p9 = pnand %p6730_p4, %p6727_p8 }
  0xe5   : > { %6735 = shalt.err (!%p6732_p9)
}
  0xe6   : > { %s6736_s8 = scalar_lea.vmem %s985_s22, 16  ;;  %s6743_s28 = scalar_lea.vmem %s985_s22, 32 }
  0xe7   : > { %p6737_p10 = scmp.ne.s32.totalorder %s985_s22, %s6736_s8  ;;  %p6744_p3 = scmp.lt.s32.totalorder %s985_s22, %s985_s22 }
  0xe8   : > { %p6745_p6 = scmp.lt.s32.totalorder %s6743_s28, %s6736_s8 }
  0xe9   : > { %p6739_p1 = pnand %p6737_p10, %p7854_p0 }
  0xea   : > { %p6746_p7 = por %p6745_p6, %p6744_p3 }
  0xeb   : > { %p6740_p2 = pneg %p6739_p1 }
  0xed   : > { %p6747_p11 = pnand %p6746_p7, %p6740_p2 }
  0xef   : > { %6750 = shalt.err (!%p6747_p11)
}
  0xf0   : > { %6347 = dma.hbm_to_vmem [thread:$0]  (!%p7842_p12), %s7767_s30, 16, %s985_s22, [#allocation46]  }
  0xf1   : > { %s6751_s15 = scalar_lea.hbm %s9305_s5, 256 }
  0xf2   : > { %p6752_p13 = scmp.ne.s32.totalorder %s9305_s5, %s6751_s15  ;;  %p6758_p4 = scmp.lt.u32.totalorder %s6751_s15, %s9305_s5 }
  0xf4   : > { %p6754_p5 = pnand %p6752_p13, %p7854_p0 }
  0xf6   : > { %p6755_p8 = pneg %p6754_p5 }
  0xf8   : > { %p6760_p9 = pnand %p6758_p4, %p6755_p8 }
  0xfa   : > { %6763 = shalt.err (!%p6760_p9)
}
  0xfb   : > { %s6764_s8 = scalar_lea.vmem %s853_s7, 256  ;;  %p6772_p3 = scmp.lt.s32.totalorder %s853_s7, %s853_s7 }
  0xfc   : > { %p6765_p10 = scmp.ne.s32.totalorder %s853_s7, %s6764_s8  ;;  %p6773_p6 = scmp.lt.s32.totalorder %s6764_s8, %s6764_s8 }
  0xfe   : > { %p6767_p1 = pnand %p6765_p10, %p7854_p0  ;;  %p6774_p7 = por %p6773_p6, %p6772_p3 }
 0x100   : > { %p6768_p2 = pneg %p6767_p1 }
 0x102   : > { %p6775_p11 = pnand %p6774_p7, %p6768_p2 }
 0x104   : > { %6778 = shalt.err (!%p6775_p11)
}
 0x105   : > { %s7588_s22 = smov 128   ;;  %s7589_s6 = smov 8  }
 0x106   : > { %6314 = dma.hbm_to_vmem [thread:$0]  (!%p7842_p12), %s9305_s5, 256, %s853_s7, [#allocation4], %s7588_s22, %s7588_s22, %s7589_s6  }
 0x107   : > { %s7590_s0 = smov [#allocation8]   ;;  %s7591_s15 = smov [#allocation11]  }
 0x108   : > { %s878_s28 = sshll.u32 %s7590_s0, 4  ;;  %s903_s9 = sshll.u32 %s7591_s15, 4  ;;  %s879_s28 = int_to_ptr.vmem [resolvable:$true] %s878_s28  ;;  %s904_s9 = int_to_ptr.vmem [resolvable:$true] %s903_s9 }
 0x109   : > { %s6779_s17 = scalar_lea.hbm %s9303_s13, 256 }
 0x10a   : > { %p6780_p13 = scmp.ne.s32.totalorder %s9303_s13, %s6779_s17  ;;  %p6786_p4 = scmp.lt.u32.totalorder %s6779_s17, %s9303_s13 }
 0x10c   : > { %p6782_p5 = pnand %p6780_p13, %p7854_p0 }
 0x10e   : > { %p6783_p8 = pneg %p6782_p5 }
 0x110   : > { %p6788_p9 = pnand %p6786_p4, %p6783_p8 }
 0x112   : > { %6791 = shalt.err (!%p6788_p9)
}
 0x113   : > { %s6792_s8 = scalar_lea.vmem %s879_s28, 256  ;;  %p6800_p3 = scmp.lt.s32.totalorder %s879_s28, %s879_s28 }
 0x114   : > { %p6793_p10 = scmp.ne.s32.totalorder %s879_s28, %s6792_s8  ;;  %p6801_p6 = scmp.lt.s32.totalorder %s6792_s8, %s6792_s8 }
 0x116   : > { %p6795_p1 = pnand %p6793_p10, %p7854_p0  ;;  %p6802_p7 = por %p6801_p6, %p6800_p3 }
 0x118   : > { %p6796_p2 = pneg %p6795_p1 }
 0x11a   : > { %p6803_p11 = pnand %p6802_p7, %p6796_p2 }
 0x11c   : > { %6806 = shalt.err (!%p6803_p11)
}
 0x11d   : > { %6320 = dma.hbm_to_vmem [thread:$0]  (!%p7842_p12), %s9303_s13, 256, %s879_s28, [#allocation7], %s7588_s22, %s7588_s22, %s7589_s6  }
 0x11e   : > { %s6807_s17 = scalar_lea.hbm %s9299_s21, 32 }
 0x11f   : > { %p6808_p13 = scmp.ne.s32.totalorder %s9299_s21, %s6807_s17  ;;  %p6814_p4 = scmp.lt.u32.totalorder %s6807_s17, %s9299_s21 }
 0x121   : > { %p6810_p5 = pnand %p6808_p13, %p7854_p0 }
 0x123   : > { %p6811_p8 = pneg %p6810_p5 }
 0x125   : > { %p6816_p9 = pnand %p6814_p4, %p6811_p8 }
 0x127   : > { %6819 = shalt.err (!%p6816_p9)
}
 0x128   : > { %s6820_s7 = scalar_lea.vmem %s904_s9, 32  ;;  %p6828_p3 = scmp.lt.s32.totalorder %s904_s9, %s904_s9 }
 0x129   : > { %p6821_p10 = scmp.ne.s32.totalorder %s904_s9, %s6820_s7  ;;  %p6829_p6 = scmp.lt.s32.totalorder %s6820_s7, %s6820_s7 }
 0x12b   : > { %p6823_p1 = pnand %p6821_p10, %p7854_p0  ;;  %p6830_p7 = por %p6829_p6, %p6828_p3 }
 0x12d   : > { %p6824_p2 = pneg %p6823_p1 }
 0x12f   : > { %p6831_p11 = pnand %p6830_p7, %p6824_p2 }
 0x131   : > { %6834 = shalt.err (!%p6831_p11)
}
 0x132   : > { %6326 = dma.hbm_to_vmem [thread:$0]  (!%p7842_p12), %s9299_s21, 32, %s904_s9, [#allocation10]  }
 0x133   : > { %s7592_s22 = smov [#allocation14]   ;;  %s7593_s0 = smov [#allocation41]  }
 0x134   : > { %s925_s6 = sshll.u32 %s7592_s22, 4  ;;  %s947_s28 = sshll.u32 %s7593_s0, 4  ;;  %s926_s6 = int_to_ptr.vmem [resolvable:$true] %s925_s6  ;;  %s948_s28 = int_to_ptr.vmem [resolvable:$true] %s947_s28 }
 0x135   : > { %s6835_s15 = scalar_lea.hbm %s7662_s29, 16 }
 0x136   : > { %p6836_p13 = scmp.ne.s32.totalorder %s7662_s29, %s6835_s15  ;;  %p6842_p4 = scmp.lt.u32.totalorder %s6835_s15, %s7662_s29 }
 0x138   : > { %p6838_p5 = pnand %p6836_p13, %p7854_p0 }
 0x13a   : > { %p6839_p8 = pneg %p6838_p5 }
 0x13c   : > { %p6844_p9 = pnand %p6842_p4, %p6839_p8 }
 0x13e   : > { %6847 = shalt.err (!%p6844_p9)
}
 0x13f   : > { %s6848_s8 = scalar_lea.vmem %s926_s6, 16  ;;  %s6855_s9 = scalar_lea.vmem %s926_s6, 32 }
 0x140   : > { %p6849_p10 = scmp.ne.s32.totalorder %s926_s6, %s6848_s8  ;;  %p6856_p3 = scmp.lt.s32.totalorder %s926_s6, %s926_s6 }
 0x141   : > { %p6857_p6 = scmp.lt.s32.totalorder %s6855_s9, %s6848_s8 }
 0x142   : > { %p6851_p1 = pnand %p6849_p10, %p7854_p0 }
 0x143   : > { %p6858_p7 = por %p6857_p6, %p6856_p3 }
 0x144   : > { %p6852_p2 = pneg %p6851_p1 }
 0x146   : > { %p6859_p11 = pnand %p6858_p7, %p6852_p2 }
 0x148   : > { %6862 = shalt.err (!%p6859_p11)
}
 0x149   : > { %6332 = dma.hbm_to_vmem [thread:$0]  (!%p7842_p12), %s7662_s29, 16, %s926_s6, [#allocation13]  }
 0x14a   : > { %s6863_s17 = scalar_lea.hbm %s7752_s27, 16 }
 0x14b   : > { %p6864_p13 = scmp.ne.s32.totalorder %s7752_s27, %s6863_s17  ;;  %p6870_p4 = scmp.lt.u32.totalorder %s6863_s17, %s7752_s27 }
 0x14d   : > { %p6866_p5 = pnand %p6864_p13, %p7854_p0 }
 0x14f   : > { %p6867_p8 = pneg %p6866_p5 }
 0x151   : > { %p6872_p9 = pnand %p6870_p4, %p6867_p8 }
 0x153   : > { %6875 = shalt.err (!%p6872_p9)
}
 0x154   : > { %s6876_s7 = scalar_lea.vmem %s948_s28, 16  ;;  %s6883_s22 = scalar_lea.vmem %s948_s28, 32 }
 0x155   : > { %p6877_p10 = scmp.ne.s32.totalorder %s948_s28, %s6876_s7  ;;  %p6884_p3 = scmp.lt.s32.totalorder %s948_s28, %s948_s28 }
 0x156   : > { %p6885_p6 = scmp.lt.s32.totalorder %s6883_s22, %s6876_s7 }
 0x157   : > { %p6879_p1 = pnand %p6877_p10, %p7854_p0 }
 0x158   : > { %p6886_p7 = por %p6885_p6, %p6884_p3 }
 0x159   : > { %p6880_p2 = pneg %p6879_p1 }
 0x15b   : > { %p6887_p11 = pnand %p6886_p7, %p6880_p2 }
 0x15d   : > { %6890 = shalt.err (!%p6887_p11)
}
 0x15e   : > { %6338 = dma.hbm_to_vmem [thread:$0]  (!%p7842_p12), %s7752_s27, 16, %s948_s28, [#allocation40]  }
 0x15f   : > { %s7594_s6 = smov [#allocation44]   ;;  %s7595_s15 = smov [#allocation47]  }
 0x160   : > { %s970_s0 = sshll.u32 %s7594_s6, 4  ;;  %s995_s8 = sshll.u32 %s7595_s15, 4  ;;  %s971_s0 = int_to_ptr.vmem [resolvable:$true] %s970_s0  ;;  %s996_s8 = int_to_ptr.vmem [resolvable:$true] %s995_s8 }
 0x161   : > { %s6891_s9 = scalar_lea.hbm %s9304_s12, 128 }
 0x162   : > { %p6892_p13 = scmp.ne.s32.totalorder %s9304_s12, %s6891_s9  ;;  %p6898_p4 = scmp.lt.u32.totalorder %s6891_s9, %s9304_s12 }
 0x164   : > { %p6894_p5 = pnand %p6892_p13, %p7854_p0 }
 0x166   : > { %p6895_p8 = pneg %p6894_p5 }
 0x168   : > { %p6900_p9 = pnand %p6898_p4, %p6895_p8 }
 0x16a   : > { %6903 = shalt.err (!%p6900_p9)
}
 0x16b   : > { %s6904_s17 = scalar_lea.vmem %s971_s0, 128  ;;  %p6912_p3 = scmp.lt.s32.totalorder %s971_s0, %s971_s0 }
 0x16c   : > { %p6905_p10 = scmp.ne.s32.totalorder %s971_s0, %s6904_s17  ;;  %p6913_p6 = scmp.lt.s32.totalorder %s6904_s17, %s6904_s17 }
 0x16e   : > { %p6907_p1 = pnand %p6905_p10, %p7854_p0  ;;  %p6914_p7 = por %p6913_p6, %p6912_p3 }
 0x170   : > { %p6908_p2 = pneg %p6907_p1 }
 0x172   : > { %p6915_p11 = pnand %p6914_p7, %p6908_p2 }
 0x174   : > { %6918 = shalt.err (!%p6915_p11)
}
 0x175   : > { %6344 = dma.hbm_to_vmem [thread:$0]  (!%p7842_p12), %s9304_s12, 128, %s971_s0, [#allocation43], %s9322_s23, %s9322_s23, %s9321_s1  }
 0x176   : > { %s6919_s28 = scalar_lea.hbm %s9306_s4, 16 }
 0x177   : > { %p6920_p13 = scmp.ne.s32.totalorder %s9306_s4, %s6919_s28  ;;  %p6926_p4 = scmp.lt.u32.totalorder %s6919_s28, %s9306_s4 }
 0x179   : > { %p6922_p5 = pnand %p6920_p13, %p7854_p0 }
 0x17b   : > { %p6923_p8 = pneg %p6922_p5 }
 0x17d   : > { %p6928_p9 = pnand %p6926_p4, %p6923_p8 }
 0x17f   : > { %6931 = shalt.err (!%p6928_p9)
}
 0x180   : > { %s6932_s7 = scalar_lea.vmem %s996_s8, 16  ;;  %s6939_s22 = scalar_lea.vmem %s996_s8, 32 }
 0x181   : > { %p6933_p10 = scmp.ne.s32.totalorder %s996_s8, %s6932_s7  ;;  %p6940_p3 = scmp.lt.s32.totalorder %s996_s8, %s996_s8 }
 0x182   : > { %p6941_p6 = scmp.lt.s32.totalorder %s6939_s22, %s6932_s7 }
 0x183   : > { %p6935_p1 = pnand %p6933_p10, %p7854_p0 }
 0x184   : > { %p6942_p7 = por %p6941_p6, %p6940_p3 }
 0x185   : > { %p6936_p2 = pneg %p6935_p1 }
 0x187   : > { %p6943_p11 = pnand %p6942_p7, %p6936_p2 }
 0x189   : > { %6946 = shalt.err (!%p6943_p11)
}
 0x18a   : > { %6350 = dma.hbm_to_vmem [thread:$0]  (!%p7842_p12), %s9306_s4, 16, %s996_s8, [#allocation46]  }
 0x18b   : > { %s7596_s1 = smov [#allocation48]   ;;  %s6947_s6 = scalar_lea.hbm %s9300_s20, 16 }
 0x18c   : > { %s1006_s23 = sshll.u32 %s7596_s1, 4  ;;  %p6948_p13 = scmp.ne.s32.totalorder %s9300_s20, %s6947_s6  ;;  %s1007_s23 = int_to_ptr.vmem [resolvable:$true] %s1006_s23 }
 0x18d   : > { %p6954_p4 = scmp.lt.u32.totalorder %s6947_s6, %s9300_s20 }
 0x18e   : > { %p6950_p5 = pnand %p6948_p13, %p7854_p0 }
 0x190   : > { %p6951_p8 = pneg %p6950_p5 }
 0x192   : > { %p6956_p9 = pnand %p6954_p4, %p6951_p8 }
 0x194   : > { %6959 = shalt.err (!%p6956_p9)
}
 0x195   : > { %s6960_s0 = scalar_lea.vmem %s1007_s23, 16  ;;  %s6967_s15 = scalar_lea.vmem %s1007_s23, 32 }
 0x196   : > { %p6961_p10 = scmp.ne.s32.totalorder %s1007_s23, %s6960_s0  ;;  %p6968_p3 = scmp.lt.s32.totalorder %s1007_s23, %s1007_s23 }
 0x197   : > { %p6969_p6 = scmp.lt.s32.totalorder %s6967_s15, %s6960_s0 }
 0x198   : > { %p6963_p1 = pnand %p6961_p10, %p7854_p0 }
 0x199   : > { %p6970_p7 = por %p6969_p6, %p6968_p3 }
 0x19a   : > { %p6964_p2 = pneg %p6963_p1 }
 0x19c   : > { %p6971_p11 = pnand %p6970_p7, %p6964_p2 }
 0x19e   : > { %6974 = shalt.err (!%p6971_p11)
}
 0x19f   : > { %6353 = dma.hbm_to_vmem [thread:$0]  (!%p7842_p12), %s9300_s20, 16, %s1007_s23, [#allocation49]  }
 0x1a0   : > { %p5483_p13 = scmp.ge.s32.totalorder %s7547_s18, 2 }
 0x1a1   : > { %s8019_s11 = sand.u32 (!%p5483_p13), 1, %s7547_s18   ;;  %s8022_s8 = sand.u32 (!%p5483_p13), 1, %s7543_s16  }
 0x1a2   : > { %1013 = sbr.rel (%p5483_p13) target bundleno = 849 (0x351), region = 72  ;;  %s8025_s9 = sshll.u32 (!%p5483_p13), %s7547_s18, 4 }
 0x1a3   : > { %s1020_s26 = scalar_lea.vmem (!%p5483_p13), [#allocation15], %s8022_s8  ;;  %s8030_s28 = scalar_lea.hbm (!%p5483_p13), %s9307_s3, %s8025_s9 }
 0x1a4   : > { %s1027_s17 = sshll.u32 (!%p5483_p13), %s1020_s26, 4  ;;  %s9241_s7 = scalar_lea.sflag (!%p5483_p13), [#allocation16], %s8019_s11  ;;  %s1028_s17 = int_to_ptr.vmem [resolvable:$true] %s1027_s17 }
 0x1a5   : > { %s6975_s22 = scalar_lea.hbm (!%p5483_p13), %s8030_s28, 16  ;;  %p9323_p0 = scmp.ne.s32.totalorder (!%p5483_p13), %s9315_s2, 0 }
 0x1a6   : > { %p6976_p12 = scmp.ne.s32.totalorder (!%p5483_p13), %s8030_s28, %s6975_s22  ;;  %s6979_s1 = scalar_lea.hbm (!%p5483_p13), %s9307_s3, 32 }
 0x1a7   : > { %p6980_p4 = scmp.lt.u32.totalorder (!%p5483_p13), %s8030_s28, %s9307_s3  ;;  %p6981_p9 = scmp.lt.u32.totalorder (!%p5483_p13), %s6979_s1, %s6975_s22 }
 0x1a8   : > { %p6977_p5 = pnand (!%p5483_p13), %p6976_p12, %p9323_p0  ;;  %p6983_p1 = scmp.lt.u32.totalorder (!%p5483_p13), %s6975_s22, %s8030_s28 }
 0x1a9   : > { %p6982_p10 = por %p6981_p9, %p6980_p4 }
 0x1aa   : > { %p6978_p8 = pneg %p6977_p5 }
 0x1ab   : > { %p6984_p2 = por %p6983_p1, %p6982_p10 }
 0x1ad   : > { %p6985_p3 = pnand %p6984_p2, %p6978_p8 }
 0x1af   : > { %6988 = shalt.err (!%p6985_p3)
}
 0x1b0   : > { %s6989_s23 = scalar_lea.vmem %s1028_s17, 16  ;;  %s7597_s6 = smov [#allocation15]  }
 0x1b1   : > { %p6990_p6 = scmp.ne.s32.totalorder %s1028_s17, %s6989_s23  ;;  %s6993_s0 = sshll.u32 %s7597_s6, 4  ;;  %s6994_s0 = int_to_ptr.vmem [resolvable:$false] %s6993_s0 }
 0x1b2   : > { %s6995_s15 = scalar_lea.vmem %s6994_s0, 32  ;;  %p6996_p13 = scmp.lt.s32.totalorder %s1028_s17, %s6994_s0 }
 0x1b3   : > { %p6991_p7 = pnand %p6990_p6, %p9323_p0  ;;  %p6997_p12 = scmp.lt.s32.totalorder %s6995_s15, %s6989_s23 }
 0x1b5   : > { %p6992_p11 = pneg %p6991_p7  ;;  %p6998_p5 = por %p6997_p12, %p6996_p13 }
 0x1b7   : > { %p6999_p4 = pnand %p6998_p5, %p6992_p11 }
 0x1b9   : > { %7002 = shalt.err (!%p6999_p4)
}
 0x1ba   : > { %6247 = dma.hbm_to_vmem [thread:$0]  (%p9323_p0), %s8030_s28, 16, %s1028_s17, %s9241_s7  }
 0x1bb   : > { %s8049_s26 = sshll.u32 %s8022_s8, 6  ;;  %s8052_s22 = sshll.u32 %s7547_s18, 10 }
 0x1bc   : > { %s8056_s1 = scalar_lea.hbm %s9302_s14, %s8052_s22  ;;  %s1055_s23 = scalar_lea.vmem [#allocation18], %s8049_s26 }
 0x1bd   : > { %s1062_s6 = sshll.u32 %s1055_s23, 4  ;;  %s7003_s15 = scalar_lea.hbm %s8056_s1, 1024  ;;  %s8059_s6 = int_to_ptr.vmem [resolvable:$true] %s1062_s6 }
 0x1be   : > { %p7004_p8 = scmp.ne.s32.totalorder %s8056_s1, %s7003_s15  ;;  %s7007_s17 = scalar_lea.hbm %s9302_s14, 2048 }
 0x1bf   : > { %p7008_p1 = scmp.lt.u32.totalorder %s8056_s1, %s9302_s14  ;;  %p7009_p2 = scmp.lt.u32.totalorder %s7007_s17, %s7003_s15 }
 0x1c0   : > { %p7005_p9 = pnand %p7004_p8, %p9323_p0  ;;  %p7011_p6 = scmp.lt.u32.totalorder %s7003_s15, %s8056_s1 }
 0x1c1   : > { %p7010_p3 = por %p7009_p2, %p7008_p1 }
 0x1c2   : > { %p7006_p10 = pneg %p7005_p9 }
 0x1c3   : > { %p7012_p7 = por %p7011_p6, %p7010_p3 }
 0x1c5   : > { %p7013_p11 = pnand %p7012_p7, %p7006_p10 }
 0x1c7   : > { %7016 = shalt.err (!%p7013_p11)
}
 0x1c8   : > { %s7017_s28 = scalar_lea.vmem %s8059_s6, 1024  ;;  %s7598_s23 = smov [#allocation18]  }
 0x1c9   : > { %p7018_p13 = scmp.ne.s32.totalorder %s8059_s6, %s7017_s28  ;;  %s7021_s7 = sshll.u32 %s7598_s23, 4  ;;  %s7022_s7 = int_to_ptr.vmem [resolvable:$false] %s7021_s7 }
 0x1ca   : > { %s7023_s0 = scalar_lea.vmem %s7022_s7, 2048  ;;  %p7024_p4 = scmp.lt.s32.totalorder %s8059_s6, %s7022_s7 }
 0x1cb   : > { %p7019_p12 = pnand %p7018_p13, %p9323_p0  ;;  %p7025_p8 = scmp.lt.s32.totalorder %s7023_s0, %s7017_s28 }
 0x1cd   : > { %p7020_p5 = pneg %p7019_p12  ;;  %p7026_p9 = por %p7025_p8, %p7024_p4 }
 0x1cf   : > { %p7027_p1 = pnand %p7026_p9, %p7020_p5 }
 0x1d1   : > { %7030 = shalt.err (!%p7027_p1)
}
 0x1d2   : > { %s9248_s15 = smov 64   ;;  %s9250_s17 = smov 4  }
 0x1d3   : > { %s9324_s7 = scalar_lea.sflag [#allocation19], %s8019_s11  ;;  %s8086_s0 = scalar_lea.hbm %s7687_s24, %s8052_s22 }
 0x1d4   : > { %6249 = dma.hbm_to_vmem [thread:$0]  (%p9323_p0), %s8056_s1, 1024, %s8059_s6, %s9324_s7, %s9248_s15, %s9248_s15, %s9250_s17  }
 0x1d5   : > { %s1097_s28 = scalar_lea.vmem [#allocation21], %s8049_s26  ;;  %s8090_s3 = sshll.u32 %s8022_s8, 2 }
 0x1d6   : > { %s1104_s23 = sshll.u32 %s1097_s28, 4  ;;  %s8095_s4 = sshll.u32 %s7547_s18, 6  ;;  %s8092_s23 = int_to_ptr.vmem [resolvable:$true] %s1104_s23 }
 0x1d7   : > { %s7031_s12 = scalar_lea.hbm %s8086_s0, 1024  ;;  %s7035_s1 = scalar_lea.hbm %s7687_s24, 2048 }
 0x1d8   : > { %p7032_p10 = scmp.ne.s32.totalorder %s8086_s0, %s7031_s12  ;;  %p7036_p6 = scmp.lt.u32.totalorder %s8086_s0, %s7687_s24 }
 0x1d9   : > { %p7037_p7 = scmp.lt.u32.totalorder %s7035_s1, %s7031_s12  ;;  %p7039_p13 = scmp.lt.u32.totalorder %s7031_s12, %s8086_s0 }
 0x1da   : > { %p7033_p2 = pnand %p7032_p10, %p9323_p0 }
 0x1db   : > { %p7038_p11 = por %p7037_p7, %p7036_p6 }
 0x1dc   : > { %p7034_p3 = pneg %p7033_p2 }
 0x1dd   : > { %p7040_p12 = por %p7039_p13, %p7038_p11 }
 0x1df   : > { %p7041_p5 = pnand %p7040_p12, %p7034_p3 }
 0x1e1   : > { %7044 = shalt.err (!%p7041_p5)
}
 0x1e2   : > { %s7045_s6 = scalar_lea.vmem %s8092_s23, 1024  ;;  %s7601_s7 = smov [#allocation21]  }
 0x1e3   : > { %p7046_p4 = scmp.ne.s32.totalorder %s8092_s23, %s7045_s6  ;;  %s7049_s28 = sshll.u32 %s7601_s7, 4  ;;  %s7050_s28 = int_to_ptr.vmem [resolvable:$false] %s7049_s28 }
 0x1e4   : > { %s7051_s5 = scalar_lea.vmem %s7050_s28, 2048  ;;  %p7052_p1 = scmp.lt.s32.totalorder %s8092_s23, %s7050_s28 }
 0x1e5   : > { %p7047_p8 = pnand %p7046_p4, %p9323_p0  ;;  %p7053_p10 = scmp.lt.s32.totalorder %s7051_s5, %s7045_s6 }
 0x1e7   : > { %p7048_p9 = pneg %p7047_p8  ;;  %p7054_p2 = por %p7053_p10, %p7052_p1 }
 0x1e9   : > { %p7055_p6 = pnand %p7054_p2, %p7048_p9 }
 0x1eb   : > { %7058 = shalt.err (!%p7055_p6)
}
 0x1ec   : > { %s9325_s12 = scalar_lea.sflag [#allocation22], %s8019_s11  ;;  %s9326_s1 = sld [smem:[#allocation78_spill]] }
 0x1ed   : > { %6251 = dma.hbm_to_vmem [thread:$0]  (%p9323_p0), %s8086_s0, 1024, %s8092_s23, %s9325_s12, %s9248_s15, %s9248_s15, %s9250_s17  }
 0x1ee   : > { %s1139_s6 = scalar_lea.vmem [#allocation24], %s8090_s3  ;;  %s9254_s28 = scalar_lea.sflag [#allocation25], %s8019_s11 }
 0x1ef   : > { %s1146_s7 = sshll.u32 %s1139_s6, 4  ;;  %s8125_s7 = int_to_ptr.vmem [resolvable:$true] %s1146_s7 }
 0x1f2   : > { %s8122_s5 = scalar_lea.hbm %s9326_s1, %s8095_s4  ;;  %s7063_s14 = scalar_lea.hbm %s9326_s1, 128 }
 0x1f3   : > { %s7059_s13 = scalar_lea.hbm %s8122_s5, 64  ;;  %p7064_p13 = scmp.lt.u32.totalorder %s8122_s5, %s9326_s1 }
 0x1f4   : > { %p7060_p3 = scmp.ne.s32.totalorder %s8122_s5, %s7059_s13  ;;  %p7065_p12 = scmp.lt.u32.totalorder %s7063_s14, %s7059_s13 }
 0x1f5   : > { %p7067_p4 = scmp.lt.u32.totalorder %s7059_s13, %s8122_s5 }
 0x1f6   : > { %p7061_p7 = pnand %p7060_p3, %p9323_p0  ;;  %p7066_p5 = por %p7065_p12, %p7064_p13 }
 0x1f8   : > { %p7062_p11 = pneg %p7061_p7  ;;  %p7068_p8 = por %p7067_p4, %p7066_p5 }
 0x1fa   : > { %p7069_p9 = pnand %p7068_p8, %p7062_p11 }
 0x1fc   : > { %7072 = shalt.err (!%p7069_p9)
}
 0x1fd   : > { %s7073_s0 = scalar_lea.vmem %s8125_s7, 64  ;;  %s7602_s23 = smov [#allocation24]  }
 0x1fe   : > { %p7074_p1 = scmp.ne.s32.totalorder %s8125_s7, %s7073_s0  ;;  %s7077_s12 = sshll.u32 %s7602_s23, 4  ;;  %s7078_s12 = int_to_ptr.vmem [resolvable:$false] %s7077_s12 }
 0x1ff   : > { %s7079_s6 = scalar_lea.vmem %s7078_s12, 128  ;;  %p7080_p6 = scmp.lt.s32.totalorder %s8125_s7, %s7078_s12 }
 0x200   : > { %p7075_p10 = pnand %p7074_p1, %p9323_p0  ;;  %p7081_p3 = scmp.lt.s32.totalorder %s7079_s6, %s7073_s0 }
 0x202   : > { %p7076_p2 = pneg %p7075_p10  ;;  %p7082_p7 = por %p7081_p3, %p7080_p6 }
 0x204   : > { %p7083_p13 = pnand %p7082_p7, %p7076_p2 }
 0x206   : > { %7086 = shalt.err (!%p7083_p13)
}
 0x207   : > { %s9255_s13 = smov 16   ;;  %s9327_s14 = sld [smem:[#allocation80_spill]] }
 0x208   : > { %s9257_s23 = smov 1   ;;  %s9259_s0 = sshll.u32 %s8022_s8, 4 }
 0x209   : > { %6253 = dma.hbm_to_vmem [thread:$0]  (%p9323_p0), %s8122_s5, 64, %s8125_s7, %s9254_s28, %s9255_s13, %s9255_s13, %s9257_s23  }
 0x20a   : > { %s9260_s12 = sshll.u32 %s7547_s18, 8  ;;  %s1181_s15 = scalar_lea.vmem [#allocation27], %s9259_s0 }
 0x20b   : > { %s1188_s17 = sshll.u32 %s1181_s15, 4  ;;  %s9261_s1 = scalar_lea.sflag [#allocation28], %s8019_s11  ;;  %s8159_s17 = int_to_ptr.vmem [resolvable:$true] %s1188_s17 }
 0x20d   : > { %s8155_s6 = scalar_lea.hbm %s9327_s14, %s9260_s12  ;;  %s7091_s5 = scalar_lea.hbm %s9327_s14, 512 }
 0x20e   : > { %s7087_s19 = scalar_lea.hbm %s8155_s6, 256  ;;  %p7092_p4 = scmp.lt.u32.totalorder %s8155_s6, %s9327_s14 }
 0x20f   : > { %p7088_p11 = scmp.ne.s32.totalorder %s8155_s6, %s7087_s19  ;;  %p7093_p8 = scmp.lt.u32.totalorder %s7091_s5, %s7087_s19 }
 0x210   : > { %p7095_p1 = scmp.lt.u32.totalorder %s7087_s19, %s8155_s6 }
 0x211   : > { %p7089_p12 = pnand %p7088_p11, %p9323_p0  ;;  %p7094_p9 = por %p7093_p8, %p7092_p4 }
 0x213   : > { %p7090_p5 = pneg %p7089_p12  ;;  %p7096_p10 = por %p7095_p1, %p7094_p9 }
 0x215   : > { %p7097_p2 = pnand %p7096_p10, %p7090_p5 }
 0x217   : > { %7100 = shalt.err (!%p7097_p2)
}
 0x218   : > { %s7101_s15 = scalar_lea.vmem %s8159_s17, 256  ;;  %s7605_s7 = smov [#allocation27]  }
 0x219   : > { %p7102_p6 = scmp.ne.s32.totalorder %s8159_s17, %s7101_s15  ;;  %s7105_s28 = sshll.u32 %s7605_s7, 4  ;;  %s7106_s28 = int_to_ptr.vmem [resolvable:$false] %s7105_s28 }
 0x21a   : > { %s7107_s13 = scalar_lea.vmem %s7106_s28, 512  ;;  %p7108_p13 = scmp.lt.s32.totalorder %s8159_s17, %s7106_s28 }
 0x21b   : > { %p7103_p3 = pnand %p7102_p6, %p9323_p0  ;;  %p7109_p11 = scmp.lt.s32.totalorder %s7107_s13, %s7101_s15 }
 0x21d   : > { %p7104_p7 = pneg %p7103_p3  ;;  %p7110_p12 = por %p7109_p11, %p7108_p13 }
 0x21f   : > { %p7111_p4 = pnand %p7110_p12, %p7104_p7 }
 0x221   : > { %7114 = shalt.err (!%p7111_p4)
}
 0x222   : > { %s9328_s19 = smov 4   ;;  %s9329_s5 = smov 64  }
 0x223   : > { %s9330_s23 = sld [smem:[#allocation82_spill]]  ;;  %s1218_s13 = scalar_lea.vmem [#allocation30], %s8022_s8 }
 0x224   : > { %6255 = dma.hbm_to_vmem [thread:$0]  (%p9323_p0), %s8155_s6, 256, %s8159_s17, %s9261_s1, %s9329_s5, %s9329_s5, %s9328_s19  }
 0x225   : > { %s1225_s15 = sshll.u32 %s1218_s13, 4  ;;  %s1216_s7 = scalar_lea.sflag [#allocation31], %s8019_s11  ;;  %s1226_s15 = int_to_ptr.vmem [resolvable:$true] %s1225_s15 }
 0x229   : > { %s8186_s28 = scalar_lea.hbm %s9330_s23, %s8025_s9  ;;  %s7119_s12 = scalar_lea.hbm %s9330_s23, 32 }
 0x22a   : > { %s7115_s0 = scalar_lea.hbm %s8186_s28, 16  ;;  %p7120_p1 = scmp.lt.u32.totalorder %s8186_s28, %s9330_s23 }
 0x22b   : > { %p7116_p5 = scmp.ne.s32.totalorder %s8186_s28, %s7115_s0  ;;  %p7121_p10 = scmp.lt.u32.totalorder %s7119_s12, %s7115_s0 }
 0x22c   : > { %p7123_p6 = scmp.lt.u32.totalorder %s7115_s0, %s8186_s28 }
 0x22d   : > { %p7117_p8 = pnand %p7116_p5, %p9323_p0  ;;  %p7122_p2 = por %p7121_p10, %p7120_p1 }
 0x22f   : > { %p7118_p9 = pneg %p7117_p8  ;;  %p7124_p3 = por %p7123_p6, %p7122_p2 }
 0x231   : > { %p7125_p7 = pnand %p7124_p3, %p7118_p9 }
 0x233   : > { %7128 = shalt.err (!%p7125_p7)
}
 0x234   : > { %s7129_s17 = scalar_lea.vmem %s1226_s15, 16  ;;  %s7606_s6 = smov [#allocation30]  }
 0x235   : > { %p7130_p13 = scmp.ne.s32.totalorder %s1226_s15, %s7129_s17  ;;  %s7133_s13 = sshll.u32 %s7606_s6, 4  ;;  %s7134_s13 = int_to_ptr.vmem [resolvable:$false] %s7133_s13 }
 0x236   : > { %s7135_s1 = scalar_lea.vmem %s7134_s13, 32  ;;  %p7136_p4 = scmp.lt.s32.totalorder %s1226_s15, %s7134_s13 }
 0x237   : > { %p7131_p11 = pnand %p7130_p13, %p9323_p0  ;;  %p7137_p5 = scmp.lt.s32.totalorder %s7135_s1, %s7129_s17 }
 0x239   : > { %p7132_p12 = pneg %p7131_p11  ;;  %p7138_p8 = por %p7137_p5, %p7136_p4 }
 0x23b   : > { %p7139_p1 = pnand %p7138_p8, %p7132_p12 }
 0x23d   : > { %7142 = shalt.err (!%p7139_p1)
}
 0x23e   : > { %s9331_s0 = sld [smem:[#allocation84_spill]]  ;;  %s9333_s6 = sshll.u32 %s7547_s18, 8 }
 0x23f   : > { %6257 = dma.hbm_to_vmem [thread:$0]  (%p9323_p0), %s8186_s28, 16, %s1226_s15, %s1216_s7  }
 0x240   : > { %s9334_s1 = sshll.u32 %s8022_s8, 4  ;;  %s9267_s20 = scalar_lea.sflag [#allocation34], %s8019_s11 }
 0x241   : > { %s1253_s17 = scalar_lea.vmem [#allocation33], %s9334_s1 }
 0x242   : > { %s1260_s13 = sshll.u32 %s1253_s17, 4  ;;  %s8212_s13 = int_to_ptr.vmem [resolvable:$true] %s1260_s13 }
 0x244   : > { %s9332_s12 = smov %s9331_s0  ;;  %s8208_s14 = scalar_lea.hbm %s9331_s0, %s9333_s6 }
 0x245   : > { %s7143_s21 = scalar_lea.hbm %s8208_s14, 256  ;;  %s7147_s23 = scalar_lea.hbm %s9332_s12, 512 }
 0x246   : > { %p7144_p9 = scmp.ne.s32.totalorder %s8208_s14, %s7143_s21  ;;  %p7148_p6 = scmp.lt.u32.totalorder %s8208_s14, %s9332_s12 }
 0x247   : > { %p7149_p3 = scmp.lt.u32.totalorder %s7147_s23, %s7143_s21  ;;  %p7151_p13 = scmp.lt.u32.totalorder %s7143_s21, %s8208_s14 }
 0x248   : > { %p7145_p10 = pnand %p7144_p9, %p9323_p0 }
 0x249   : > { %p7150_p7 = por %p7149_p3, %p7148_p6 }
 0x24a   : > { %p7146_p2 = pneg %p7145_p10 }
 0x24b   : > { %p7152_p11 = por %p7151_p13, %p7150_p7 }
 0x24d   : > { %p7153_p12 = pnand %p7152_p11, %p7146_p2 }
 0x24f   : > { %7156 = shalt.err (!%p7153_p12)
}
 0x250   : > { %s7157_s18 = scalar_lea.vmem %s8212_s13, 256  ;;  %s7607_s28 = smov [#allocation33]  }
 0x251   : > { %p7158_p4 = scmp.ne.s32.totalorder %s8212_s13, %s7157_s18  ;;  %s7161_s15 = sshll.u32 %s7607_s28, 4  ;;  %s7162_s15 = int_to_ptr.vmem [resolvable:$false] %s7161_s15 }
 0x252   : > { %s7163_s0 = scalar_lea.vmem %s7162_s15, 512  ;;  %p7164_p1 = scmp.lt.s32.totalorder %s8212_s13, %s7162_s15 }
 0x253   : > { %p7159_p5 = pnand %p7158_p4, %p9323_p0  ;;  %p7165_p9 = scmp.lt.s32.totalorder %s7163_s0, %s7157_s18 }
 0x255   : > { %p7160_p8 = pneg %p7159_p5  ;;  %p7166_p10 = por %p7165_p9, %p7164_p1 }
 0x257   : > { %p7167_p6 = pnand %p7166_p10, %p7160_p8 }
 0x259   : > { %7170 = shalt.err (!%p7167_p6)
}
 0x25a   : > { %s9335_s21 = sld [smem:[#allocation86_spill]]  ;;  %s1291_s6 = scalar_lea.vmem [#allocation36], %s8049_s26 }
 0x25b   : > { %6259 = dma.hbm_to_vmem [thread:$0]  (%p9323_p0), %s8208_s14, 256, %s8212_s13, %s9267_s20, %s9329_s5, %s9329_s5, %s9328_s19  }
 0x25c   : > { %s1298_s1 = sshll.u32 %s1291_s6, 4  ;;  %s9266_s17 = scalar_lea.sflag [#allocation37], %s8019_s11  ;;  %s8242_s1 = int_to_ptr.vmem [resolvable:$true] %s1298_s1 }
 0x260   : > { %s8239_s23 = scalar_lea.hbm %s9335_s21, %s8052_s22  ;;  %s7175_s28 = scalar_lea.hbm %s9335_s21, 2048 }
 0x261   : > { %s7171_s18 = scalar_lea.hbm %s8239_s23, 1024  ;;  %p7176_p13 = scmp.lt.u32.totalorder %s8239_s23, %s9335_s21 }
 0x262   : > { %p7172_p2 = scmp.ne.s32.totalorder %s8239_s23, %s7171_s18  ;;  %p7177_p11 = scmp.lt.u32.totalorder %s7175_s28, %s7171_s18 }
 0x263   : > { %p7179_p4 = scmp.lt.u32.totalorder %s7171_s18, %s8239_s23 }
 0x264   : > { %p7173_p3 = pnand %p7172_p2, %p9323_p0  ;;  %p7178_p12 = por %p7177_p11, %p7176_p13 }
 0x266   : > { %p7174_p7 = pneg %p7173_p3  ;;  %p7180_p5 = por %p7179_p4, %p7178_p12 }
 0x268   : > { %p7181_p8 = pnand %p7180_p5, %p7174_p7 }
 0x26a   : > { %7184 = shalt.err (!%p7181_p8)
}
 0x26b   : > { %s7185_s14 = scalar_lea.vmem %s8242_s1, 1024  ;;  %s7608_s13 = smov [#allocation36]  }
 0x26c   : > { %p7186_p1 = scmp.ne.s32.totalorder %s8242_s1, %s7185_s14  ;;  %s7189_s15 = sshll.u32 %s7608_s13, 4  ;;  %s7190_s15 = int_to_ptr.vmem [resolvable:$false] %s7189_s15 }
 0x26d   : > { %s7191_s0 = scalar_lea.vmem %s7190_s15, 2048  ;;  %p7192_p6 = scmp.lt.s32.totalorder %s8242_s1, %s7190_s15 }
 0x26e   : > { %p7187_p9 = pnand %p7186_p1, %p9323_p0  ;;  %p7193_p2 = scmp.lt.s32.totalorder %s7191_s0, %s7185_s14 }
 0x270   : > { %p7188_p10 = pneg %p7187_p9  ;;  %p7194_p3 = por %p7193_p2, %p7192_p6 }
 0x272   : > { %p7195_p13 = pnand %p7194_p3, %p7188_p10 }
 0x274   : > { %7198 = shalt.err (!%p7195_p13)
}
 0x275   : > { %s9336_s6 = sld [smem:[#allocation74_spill]]  ;;  %s1037_s28 = scalar_lea.vmem [#allocation17], %s8022_s8 }
 0x276   : > { %6261 = dma.hbm_to_vmem [thread:$0]  (%p9323_p0), %s8239_s23, 1024, %s8242_s1, %s9266_s17, %s9329_s5, %s9329_s5, %s9328_s19  }
 0x277   : > { %s1044_s14 = sshll.u32 %s1037_s28, 4  ;;  %s1045_s14 = int_to_ptr.vmem [resolvable:$true] %s1044_s14 }
 0x27b   : > { %s8269_s18 = scalar_lea.hbm %s9336_s6, %s8025_s9  ;;  %s7203_s15 = scalar_lea.hbm %s9336_s6, 32 }
 0x27c   : > { %s7199_s13 = scalar_lea.hbm %s8269_s18, 16  ;;  %p7204_p4 = scmp.lt.u32.totalorder %s8269_s18, %s9336_s6 }
 0x27d   : > { %p7200_p7 = scmp.ne.s32.totalorder %s8269_s18, %s7199_s13  ;;  %p7205_p5 = scmp.lt.u32.totalorder %s7203_s15, %s7199_s13 }
 0x27e   : > { %p7207_p1 = scmp.lt.u32.totalorder %s7199_s13, %s8269_s18 }
 0x27f   : > { %p7201_p11 = pnand %p7200_p7, %p9323_p0  ;;  %p7206_p8 = por %p7205_p5, %p7204_p4 }
 0x281   : > { %p7202_p12 = pneg %p7201_p11  ;;  %p7208_p9 = por %p7207_p1, %p7206_p8 }
 0x283   : > { %p7209_p10 = pnand %p7208_p9, %p7202_p12 }
 0x285   : > { %7212 = shalt.err (!%p7209_p10)
}
 0x286   : > { %s7213_s23 = scalar_lea.vmem %s1045_s14, 16  ;;  %s7609_s1 = smov [#allocation17]  }
 0x287   : > { %p7214_p6 = scmp.ne.s32.totalorder %s1045_s14, %s7213_s23  ;;  %s7217_s0 = sshll.u32 %s7609_s1, 4  ;;  %s7218_s0 = int_to_ptr.vmem [resolvable:$false] %s7217_s0 }
 0x288   : > { %s7219_s28 = scalar_lea.vmem %s7218_s0, 32  ;;  %p7220_p13 = scmp.lt.s32.totalorder %s1045_s14, %s7218_s0 }
 0x289   : > { %p7215_p2 = pnand %p7214_p6, %p9323_p0  ;;  %p7221_p7 = scmp.lt.s32.totalorder %s7219_s28, %s7213_s23 }
 0x28b   : > { %p7216_p3 = pneg %p7215_p2  ;;  %p7222_p11 = por %p7221_p7, %p7220_p13 }
 0x28d   : > { %p7223_p4 = pnand %p7222_p11, %p7216_p3 }
 0x28f   : > { %7226 = shalt.err (!%p7223_p4)
}
 0x290   : > { %s9337_s13 = scalar_lea.sflag [#allocation16], %s8019_s11  ;;  %s9338_s15 = sld [smem:[#allocation76_spill]] }
 0x291   : > { %6248 = dma.hbm_to_vmem [thread:$0]  (%p9323_p0), %s8269_s18, 16, %s1045_s14, %s9337_s13  }
 0x292   : > { %s1076_s23 = scalar_lea.vmem [#allocation20], %s8049_s26 }
 0x293   : > { %s1083_s0 = sshll.u32 %s1076_s23, 4  ;;  %s8292_s0 = int_to_ptr.vmem [resolvable:$true] %s1083_s0 }
 0x296   : > { %s9339_s17 = smov %s9338_s15  ;;  %s8289_s1 = scalar_lea.hbm %s9338_s15, %s8052_s22 }
 0x297   : > { %s7227_s28 = scalar_lea.hbm %s8289_s1, 1024  ;;  %s7231_s20 = scalar_lea.hbm %s9339_s17, 2048 }
 0x298   : > { %p7228_p12 = scmp.ne.s32.totalorder %s8289_s1, %s7227_s28  ;;  %p7232_p1 = scmp.lt.u32.totalorder %s8289_s1, %s9339_s17 }
 0x299   : > { %p7233_p9 = scmp.lt.u32.totalorder %s7231_s20, %s7227_s28  ;;  %p7235_p6 = scmp.lt.u32.totalorder %s7227_s28, %s8289_s1 }
 0x29a   : > { %p7229_p5 = pnand %p7228_p12, %p9323_p0 }
 0x29b   : > { %p7234_p10 = por %p7233_p9, %p7232_p1 }
 0x29c   : > { %p7230_p8 = pneg %p7229_p5 }
 0x29d   : > { %p7236_p2 = por %p7235_p6, %p7234_p10 }
 0x29f   : > { %p7237_p3 = pnand %p7236_p2, %p7230_p8 }
 0x2a1   : > { %7240 = shalt.err (!%p7237_p3)
}
 0x2a2   : > { %s7241_s26 = scalar_lea.vmem %s8292_s0, 1024  ;;  %s7610_s22 = smov [#allocation20]  }
 0x2a3   : > { %p7242_p13 = scmp.ne.s32.totalorder %s8292_s0, %s7241_s26  ;;  %s7245_s18 = sshll.u32 %s7610_s22, 4  ;;  %s7246_s18 = int_to_ptr.vmem [resolvable:$false] %s7245_s18 }
 0x2a4   : > { %s7247_s14 = scalar_lea.vmem %s7246_s18, 2048  ;;  %p7248_p4 = scmp.lt.s32.totalorder %s8292_s0, %s7246_s18 }
 0x2a5   : > { %p7243_p7 = pnand %p7242_p13, %p9323_p0  ;;  %p7249_p12 = scmp.lt.s32.totalorder %s7247_s14, %s7241_s26 }
 0x2a7   : > { %p7244_p11 = pneg %p7243_p7  ;;  %p7250_p5 = por %p7249_p12, %p7248_p4 }
 0x2a9   : > { %p7251_p1 = pnand %p7250_p5, %p7244_p11 }
 0x2ab   : > { %7254 = shalt.err (!%p7251_p1)
}
 0x2ac   : > { %s9340_s20 = scalar_lea.sflag [#allocation19], %s8019_s11  ;;  %s9341_s13 = sld [smem:[#allocation77_spill]] }
 0x2ad   : > { %6250 = dma.hbm_to_vmem [thread:$0]  (%p9323_p0), %s8289_s1, 1024, %s8292_s0, %s9340_s20, %s9329_s5, %s9329_s5, %s9328_s19  }
 0x2ae   : > { %s1118_s23 = scalar_lea.vmem [#allocation23], %s8090_s3 }
 0x2af   : > { %s1125_s28 = sshll.u32 %s1118_s23, 4  ;;  %s8321_s28 = int_to_ptr.vmem [resolvable:$true] %s1125_s28 }
 0x2b2   : > { %s8318_s15 = scalar_lea.hbm %s9341_s13, %s8095_s4  ;;  %s7259_s22 = scalar_lea.hbm %s9341_s13, 128 }
 0x2b3   : > { %s7255_s26 = scalar_lea.hbm %s8318_s15, 64  ;;  %p7260_p6 = scmp.lt.u32.totalorder %s8318_s15, %s9341_s13 }
 0x2b4   : > { %p7256_p8 = scmp.ne.s32.totalorder %s8318_s15, %s7255_s26  ;;  %p7261_p2 = scmp.lt.u32.totalorder %s7259_s22, %s7255_s26 }
 0x2b5   : > { %p7263_p13 = scmp.lt.u32.totalorder %s7255_s26, %s8318_s15 }
 0x2b6   : > { %p7257_p9 = pnand %p7256_p8, %p9323_p0  ;;  %p7262_p3 = por %p7261_p2, %p7260_p6 }
 0x2b8   : > { %p7258_p10 = pneg %p7257_p9  ;;  %p7264_p7 = por %p7263_p13, %p7262_p3 }
 0x2ba   : > { %p7265_p11 = pnand %p7264_p7, %p7258_p10 }
 0x2bc   : > { %7268 = shalt.err (!%p7265_p11)
}
 0x2bd   : > { %s7269_s19 = scalar_lea.vmem %s8321_s28, 64  ;;  %s7611_s5 = smov [#allocation23]  }
 0x2be   : > { %p7270_p4 = scmp.ne.s32.totalorder %s8321_s28, %s7269_s19  ;;  %s7273_s1 = sshll.u32 %s7611_s5, 4  ;;  %s7274_s1 = int_to_ptr.vmem [resolvable:$false] %s7273_s1 }
 0x2bf   : > { %s7275_s0 = scalar_lea.vmem %s7274_s1, 128  ;;  %p7276_p1 = scmp.lt.s32.totalorder %s8321_s28, %s7274_s1 }
 0x2c0   : > { %p7271_p12 = pnand %p7270_p4, %p9323_p0  ;;  %p7277_p8 = scmp.lt.s32.totalorder %s7275_s0, %s7269_s19 }
 0x2c2   : > { %p7272_p5 = pneg %p7271_p12  ;;  %p7278_p9 = por %p7277_p8, %p7276_p1 }
 0x2c4   : > { %p7279_p6 = pnand %p7278_p9, %p7272_p5 }
 0x2c6   : > { %7282 = shalt.err (!%p7279_p6)
}
 0x2c7   : > { %s9342_s18 = smov 1   ;;  %s9343_s14 = smov 16  }
 0x2c8   : > { %s9344_s20 = scalar_lea.sflag [#allocation22], %s8019_s11  ;;  %s9345_s23 = sld [smem:[#allocation79_spill]] }
 0x2c9   : > { %6252 = dma.hbm_to_vmem [thread:$0]  (%p9323_p0), %s8318_s15, 64, %s8321_s28, %s9344_s20, %s9343_s14, %s9343_s14, %s9342_s18  }
 0x2ca   : > { %s1160_s22 = scalar_lea.vmem [#allocation26], %s8090_s3 }
 0x2cb   : > { %s1167_s19 = sshll.u32 %s1160_s22, 4  ;;  %s8350_s19 = int_to_ptr.vmem [resolvable:$true] %s1167_s19 }
 0x2ce   : > { %s8347_s26 = scalar_lea.hbm %s9345_s23, %s8095_s4  ;;  %s7287_s1 = scalar_lea.hbm %s9345_s23, 128 }
 0x2cf   : > { %s7283_s5 = scalar_lea.hbm %s8347_s26, 64  ;;  %p7288_p13 = scmp.lt.u32.totalorder %s8347_s26, %s9345_s23 }
 0x2d0   : > { %p7284_p10 = scmp.ne.s32.totalorder %s8347_s26, %s7283_s5  ;;  %p7289_p7 = scmp.lt.u32.totalorder %s7287_s1, %s7283_s5 }
 0x2d1   : > { %p7291_p4 = scmp.lt.u32.totalorder %s7283_s5, %s8347_s26 }
 0x2d2   : > { %p7285_p2 = pnand %p7284_p10, %p9323_p0  ;;  %p7290_p11 = por %p7289_p7, %p7288_p13 }
 0x2d4   : > { %p7286_p3 = pneg %p7285_p2  ;;  %p7292_p12 = por %p7291_p4, %p7290_p11 }
 0x2d6   : > { %p7293_p5 = pnand %p7292_p12, %p7286_p3 }
 0x2d8   : > { %7296 = shalt.err (!%p7293_p5)
}
 0x2d9   : > { %s7297_s3 = scalar_lea.vmem %s8350_s19, 64  ;;  %s7612_s4 = smov [#allocation26]  }
 0x2da   : > { %p7298_p1 = scmp.ne.s32.totalorder %s8350_s19, %s7297_s3  ;;  %s7301_s15 = sshll.u32 %s7612_s4, 4  ;;  %s7302_s15 = int_to_ptr.vmem [resolvable:$false] %s7301_s15 }
 0x2db   : > { %s7303_s28 = scalar_lea.vmem %s7302_s15, 128  ;;  %p7304_p6 = scmp.lt.s32.totalorder %s8350_s19, %s7302_s15 }
 0x2dc   : > { %p7299_p8 = pnand %p7298_p1, %p9323_p0  ;;  %p7305_p10 = scmp.lt.s32.totalorder %s7303_s28, %s7297_s3 }
 0x2de   : > { %p7300_p9 = pneg %p7299_p8  ;;  %p7306_p2 = por %p7305_p10, %p7304_p6 }
 0x2e0   : > { %p7307_p13 = pnand %p7306_p2, %p7300_p9 }
 0x2e2   : > { %7310 = shalt.err (!%p7307_p13)
}
 0x2e3   : > { %s9346_s0 = scalar_lea.sflag [#allocation25], %s8019_s11  ;;  %s9347_s20 = sld [smem:[#allocation81_spill]] }
 0x2e4   : > { %6254 = dma.hbm_to_vmem [thread:$0]  (%p9323_p0), %s8347_s26, 64, %s8350_s19, %s9346_s0, %s9343_s14, %s9343_s14, %s9342_s18  }
 0x2e5   : > { %s1201_s5 = scalar_lea.vmem [#allocation29], %s8022_s8 }
 0x2e6   : > { %s1208_s1 = sshll.u32 %s1201_s5, 4  ;;  %s1209_s1 = int_to_ptr.vmem [resolvable:$true] %s1208_s1 }
 0x2e9   : > { %s8376_s22 = scalar_lea.hbm %s9347_s20, %s8025_s9  ;;  %s7315_s4 = scalar_lea.hbm %s9347_s20, 32 }
 0x2ea   : > { %s7311_s3 = scalar_lea.hbm %s8376_s22, 16  ;;  %p7316_p4 = scmp.lt.u32.totalorder %s8376_s22, %s9347_s20 }
 0x2eb   : > { %p7312_p3 = scmp.ne.s32.totalorder %s8376_s22, %s7311_s3  ;;  %p7317_p12 = scmp.lt.u32.totalorder %s7315_s4, %s7311_s3 }
 0x2ec   : > { %p7319_p1 = scmp.lt.u32.totalorder %s7311_s3, %s8376_s22 }
 0x2ed   : > { %p7313_p7 = pnand %p7312_p3, %p9323_p0  ;;  %p7318_p5 = por %p7317_p12, %p7316_p4 }
 0x2ef   : > { %p7314_p11 = pneg %p7313_p7  ;;  %p7320_p8 = por %p7319_p1, %p7318_p5 }
 0x2f1   : > { %p7321_p9 = pnand %p7320_p8, %p7314_p11 }
 0x2f3   : > { %7324 = shalt.err (!%p7321_p9)
}
 0x2f4   : > { %s7325_s18 = scalar_lea.vmem %s1209_s1, 16  ;;  %s7613_s14 = smov [#allocation29]  }
 0x2f5   : > { %p7326_p6 = scmp.ne.s32.totalorder %s1209_s1, %s7325_s18  ;;  %s7329_s26 = sshll.u32 %s7613_s14, 4  ;;  %s7330_s26 = int_to_ptr.vmem [resolvable:$false] %s7329_s26 }
 0x2f6   : > { %s7331_s19 = scalar_lea.vmem %s7330_s26, 32  ;;  %p7332_p13 = scmp.lt.s32.totalorder %s1209_s1, %s7330_s26 }
 0x2f7   : > { %p7327_p10 = pnand %p7326_p6, %p9323_p0  ;;  %p7333_p3 = scmp.lt.s32.totalorder %s7331_s19, %s7325_s18 }
 0x2f9   : > { %p7328_p2 = pneg %p7327_p10  ;;  %p7334_p7 = por %p7333_p3, %p7332_p13 }
 0x2fb   : > { %p7335_p4 = pnand %p7334_p7, %p7328_p2 }
 0x2fd   : > { %7338 = shalt.err (!%p7335_p4)
}
 0x2fe   : > { %s9348_s15 = scalar_lea.sflag [#allocation28], %s8019_s11  ;;  %s9349_s28 = sld [smem:[#allocation83_spill]] }
 0x2ff   : > { %6256 = dma.hbm_to_vmem [thread:$0]  (%p9323_p0), %s8376_s22, 16, %s1209_s1, %s9348_s15  }
 0x300   : > { %s1235_s5 = scalar_lea.vmem [#allocation32], %s8022_s8 }
 0x301   : > { %s1242_s3 = sshll.u32 %s1235_s5, 4  ;;  %s1243_s3 = int_to_ptr.vmem [resolvable:$true] %s1242_s3 }
 0x304   : > { %s8396_s0 = scalar_lea.hbm %s9349_s28, %s8025_s9  ;;  %s7343_s18 = scalar_lea.hbm %s9349_s28, 32 }
 0x305   : > { %s7339_s4 = scalar_lea.hbm %s8396_s0, 16  ;;  %p7344_p1 = scmp.lt.u32.totalorder %s8396_s0, %s9349_s28 }
 0x306   : > { %p7340_p11 = scmp.ne.s32.totalorder %s8396_s0, %s7339_s4  ;;  %p7345_p8 = scmp.lt.u32.totalorder %s7343_s18, %s7339_s4 }
 0x307   : > { %p7347_p6 = scmp.lt.u32.totalorder %s7339_s4, %s8396_s0 }
 0x308   : > { %p7341_p12 = pnand %p7340_p11, %p9323_p0  ;;  %p7346_p9 = por %p7345_p8, %p7344_p1 }
 0x30a   : > { %p7342_p5 = pneg %p7341_p12  ;;  %p7348_p10 = por %p7347_p6, %p7346_p9 }
 0x30c   : > { %p7349_p2 = pnand %p7348_p10, %p7342_p5 }
 0x30e   : > { %7352 = shalt.err (!%p7349_p2)
}
 0x30f   : > { %s7353_s22 = scalar_lea.vmem %s1243_s3, 16  ;;  %s7614_s1 = smov [#allocation32]  }
 0x310   : > { %p7354_p13 = scmp.ne.s32.totalorder %s1243_s3, %s7353_s22  ;;  %s7357_s14 = sshll.u32 %s7614_s1, 4  ;;  %s7358_s14 = int_to_ptr.vmem [resolvable:$false] %s7357_s14 }
 0x311   : > { %s7359_s26 = scalar_lea.vmem %s7358_s14, 32  ;;  %p7360_p4 = scmp.lt.s32.totalorder %s1243_s3, %s7358_s14 }
 0x312   : > { %p7355_p3 = pnand %p7354_p13, %p9323_p0  ;;  %p7361_p11 = scmp.lt.s32.totalorder %s7359_s26, %s7353_s22 }
 0x314   : > { %p7356_p7 = pneg %p7355_p3  ;;  %p7362_p12 = por %p7361_p11, %p7360_p4 }
 0x316   : > { %p7363_p1 = pnand %p7362_p12, %p7356_p7 }
 0x318   : > { %7366 = shalt.err (!%p7363_p1)
}
 0x319   : > { %s9350_s19 = sld [smem:[#allocation85_spill]]  ;;  %s1273_s5 = scalar_lea.vmem [#allocation35], %s8022_s8 }
 0x31a   : > { %6258 = dma.hbm_to_vmem [thread:$0]  (%p9323_p0), %s8396_s0, 16, %s1243_s3, %s1216_s7  }
 0x31b   : > { %s1280_s4 = sshll.u32 %s1273_s5, 4  ;;  %s1281_s4 = int_to_ptr.vmem [resolvable:$true] %s1280_s4 }
 0x31f   : > { %s8416_s15 = scalar_lea.hbm %s9350_s19, %s8025_s9  ;;  %s7371_s22 = scalar_lea.hbm %s9350_s19, 32 }
 0x320   : > { %s7367_s18 = scalar_lea.hbm %s8416_s15, 16  ;;  %p7372_p6 = scmp.lt.u32.totalorder %s8416_s15, %s9350_s19 }
 0x321   : > { %p7368_p5 = scmp.ne.s32.totalorder %s8416_s15, %s7367_s18  ;;  %p7373_p10 = scmp.lt.u32.totalorder %s7371_s22, %s7367_s18 }
 0x322   : > { %p7375_p13 = scmp.lt.u32.totalorder %s7367_s18, %s8416_s15 }
 0x323   : > { %p7369_p8 = pnand %p7368_p5, %p9323_p0  ;;  %p7374_p2 = por %p7373_p10, %p7372_p6 }
 0x325   : > { %p7370_p9 = pneg %p7369_p8  ;;  %p7376_p3 = por %p7375_p13, %p7374_p2 }
 0x327   : > { %p7377_p7 = pnand %p7376_p3, %p7370_p9 }
 0x329   : > { %7380 = shalt.err (!%p7377_p7)
}
 0x32a   : > { %s7381_s7 = scalar_lea.vmem %s1281_s4, 16  ;;  %s7615_s0 = smov [#allocation35]  }
 0x32b   : > { %p7382_p4 = scmp.ne.s32.totalorder %s1281_s4, %s7381_s7  ;;  %s7385_s3 = sshll.u32 %s7615_s0, 4  ;;  %s7386_s3 = int_to_ptr.vmem [resolvable:$false] %s7385_s3 }
 0x32c   : > { %s7387_s1 = scalar_lea.vmem %s7386_s3, 32  ;;  %p7388_p1 = scmp.lt.s32.totalorder %s1281_s4, %s7386_s3 }
 0x32d   : > { %p7383_p11 = pnand %p7382_p4, %p9323_p0  ;;  %p7389_p5 = scmp.lt.s32.totalorder %s7387_s1, %s7381_s7 }
 0x32f   : > { %p7384_p12 = pneg %p7383_p11  ;;  %p7390_p8 = por %p7389_p5, %p7388_p1 }
 0x331   : > { %p7391_p6 = pnand %p7390_p8, %p7384_p12 }
 0x333   : > { %7394 = shalt.err (!%p7391_p6)
}
 0x334   : > { %s9351_s14 = scalar_lea.sflag [#allocation34], %s8019_s11  ;;  %s9352_s26 = sld [smem:[#allocation87_spill]] }
 0x335   : > { %6260 = dma.hbm_to_vmem [thread:$0]  (%p9323_p0), %s8416_s15, 16, %s1281_s4, %s9351_s14  }
 0x336   : > { %s1311_s18 = scalar_lea.vmem [#allocation38], %s8022_s8 }
 0x337   : > { %s1318_s22 = sshll.u32 %s1311_s18, 4  ;;  %s1319_s22 = int_to_ptr.vmem [resolvable:$true] %s1318_s22 }
 0x33a   : > { %s8436_s5 = scalar_lea.hbm %s9352_s26, %s8025_s9  ;;  %s7399_s0 = scalar_lea.hbm %s9352_s26, 32 }
 0x33b   : > { %s7395_s7 = scalar_lea.hbm %s8436_s5, 16  ;;  %p7400_p13 = scmp.lt.u32.totalorder %s8436_s5, %s9352_s26 }
 0x33c   : > { %p7396_p9 = scmp.ne.s32.totalorder %s8436_s5, %s7395_s7  ;;  %p7401_p3 = scmp.lt.u32.totalorder %s7399_s0, %s7395_s7 }
 0x33d   : > { %p7403_p4 = scmp.lt.u32.totalorder %s7395_s7, %s8436_s5 }
 0x33e   : > { %p7397_p10 = pnand %p7396_p9, %p9323_p0  ;;  %p7402_p7 = por %p7401_p3, %p7400_p13 }
 0x340   : > { %p7398_p2 = pneg %p7397_p10  ;;  %p7404_p11 = por %p7403_p4, %p7402_p7 }
 0x342   : > { %p7405_p12 = pnand %p7404_p11, %p7398_p2 }
 0x344   : > { %7408 = shalt.err (!%p7405_p12)
}
 0x345   : > { %s7409_s9 = scalar_lea.vmem %s1319_s22, 16  ;;  %s7616_s8 = smov [#allocation38]  }
 0x346   : > { %p7410_p1 = scmp.ne.s32.totalorder %s1319_s22, %s7409_s9  ;;  %s7413_s15 = sshll.u32 %s7616_s8, 4  ;;  %s7414_s15 = int_to_ptr.vmem [resolvable:$false] %s7413_s15 }
 0x347   : > { %s7415_s4 = scalar_lea.vmem %s7414_s15, 32  ;;  %p7416_p6 = scmp.lt.s32.totalorder %s1319_s22, %s7414_s15 }
 0x348   : > { %p7411_p5 = pnand %p7410_p1, %p9323_p0  ;;  %p7417_p9 = scmp.lt.s32.totalorder %s7415_s4, %s7409_s9 }
 0x34a   : > { %p7412_p8 = pneg %p7411_p5  ;;  %p7418_p10 = por %p7417_p9, %p7416_p6 }
 0x34c   : > { %p7419_p3 = pnand %p7418_p10, %p7412_p8 }
 0x34e   : > { %7422 = shalt.err (!%p7419_p3)
}
 0x34f   : > { %s9353_s3 = scalar_lea.sflag [#allocation37], %s8019_s11 }
 0x350   : > { %6262 = dma.hbm_to_vmem [thread:$0]  (%p9323_p0), %s8436_s5, 16, %s1319_s22, %s9353_s3  }
 0x351 PF: > { %p9354_p2 = scmp.ne.s32.totalorder %s9318_s10, 0 }
 0x352   : > { %s9355_s1 = sld [smem:[#allocation95_spill]] (!%p9354_p2) }
 0x353   : > { %1327 = sbr.rel (%p9354_p2) target bundleno = 5879 (0x16f7), region = 140 }
 0x358   : > { %p9356_p13 = scmp.eq.s32.totalorder (!%p9354_p2), %s9355_s1, 0 }
 0x35a   : > { %7466 = dma.done.wait (%p9356_p13), [#allocation4], 256   ;;  %p9357_p7 = pmov %p9356_p13 }
 0x35c   : > { %7468 = vsyncadd (%p9357_p7), [#allocation4], 4294967040  ;;  %p9358_p4 = pmov %p9357_p7 }
 0x35e   : > { %7470 = dma.done.wait (%p9358_p4), [#allocation7], 1792   ;;  %p9359_p11 = pmov %p9358_p4 }
 0x35f   : > { %p9360_p12 = pmov %p9358_p4 }
 0x360   : > { %7472 = vsyncadd (%p9359_p11), [#allocation7], 4294965504 }
 0x361   : > { %7474 = dma.done.wait (%p9360_p12), [#allocation10], 48   ;;  %p9361_p0 = pmov %p9358_p4 }
 0x363   : > { %7476 = vsyncadd (%p9361_p0), [#allocation10], 4294967248  ;;  %p9362_p1 = pmov %p9361_p0 }
 0x364   : > { %p9363_p5 = pmov %p9361_p0 }
 0x365   : > { %7478 = dma.done.wait (%p9362_p1), [#allocation13], 32  }
 0x366   : > { %7480 = vsyncadd (%p9363_p5), [#allocation13], 4294967264  ;;  %s9364_s2 = sld [smem:[#allocation94_spill]]  ;;  %s9365_s10 = sld [smem:[#allocation98_spill]] }
 0x367   : > { %s8473_s11 = sand.u32 1, %s9355_s1  }
 0x368   : > { %s1358_s5 = scalar_lea.sflag [#allocation16], %s8473_s11 }
 0x36c   : > { %s8476_s14 = sand.u32 1, %s9364_s2   ;;  %p9366_p8 = scmp.ne.s32.totalorder %s9365_s10, 0 }
 0x36e   : > { %7482 = dma.done.wait (%p9366_p8), %s1358_s5, 32  }
 0x36f   : > { %7484 = vsyncadd (%p9366_p8), %s1358_s5, 4294967264  ;;  %s8485_s22 = sshll.u32 %s8476_s14, 6  ;;  %s1374_s0 = scalar_lea.sflag [#allocation19], %s8473_s11 }
 0x370   : > { %s8490_s9 = scalar_lea.vmem [#allocation18], %s8485_s22 }
 0x371   : > { %7486 = dma.done.wait (%p9366_p8), %s1374_s0, 2048  }
 0x372   : > { %7488 = vsyncadd (%p9366_p8), %s1374_s0, 4294965248  ;;  %s8497_s8 = scalar_lea.vmem [#allocation20], %s8485_s22  ;;  %s1392_s15 = scalar_lea.sflag [#allocation22], %s8473_s11 }
 0x373   : > { %s8501_s4 = scalar_lea.vmem [#allocation21], %s8485_s22 }
 0x374   : > { %7490 = dma.done.wait (%p9366_p8), %s1392_s15, 1088  }
 0x375   : > { %7492 = vsyncadd (%p9366_p8), %s1392_s15, 4294966208  ;;  %s5529_s3 = sshll.u32 %s8476_s14, 2  ;;  %s1410_s5 = scalar_lea.sflag [#allocation25], %s8473_s11 }
 0x376   : > { %s8508_s2 = scalar_lea.vmem [#allocation23], %s5529_s3  ;;  %s8511_s0 = scalar_lea.vmem [#allocation24], %s5529_s3 }
 0x377   : > { %7494 = dma.done.wait (%p9366_p8), %s1410_s5, 128  }
 0x378   : > { %7496 = vsyncadd (%p9366_p8), %s1410_s5, 4294967168  ;;  %s5532_s7 = sshll.u32 %s8476_s14, 4  ;;  %s8518_s18 = scalar_lea.vmem [#allocation26], %s5529_s3 }
 0x379   : > { %s1428_s15 = scalar_lea.sflag [#allocation28], %s8473_s11  ;;  %s8521_s6 = scalar_lea.vmem [#allocation27], %s5532_s7 }
 0x37a   : > { %7498 = dma.done.wait (%p9366_p8), %s1428_s15, 272  }
 0x37b   : > { %7500 = vsyncadd (%p9366_p8), %s1428_s15, 4294967024  ;;  %s1445_s5 = scalar_lea.sflag [#allocation31], %s8473_s11 }
 0x37c   : > { %7502 = dma.done.wait (%p9366_p8), %s1445_s5, 32  }
 0x37d   : > { %7504 = vsyncadd (%p9366_p8), %s1445_s5, 4294967264  ;;  %s1455_s3 = scalar_lea.vmem [#allocation32], %s8476_s14  ;;  %s1461_s17 = scalar_lea.sflag [#allocation34], %s8473_s11 }
 0x37e   : > { %s8536_s19 = scalar_lea.vmem [#allocation33], %s5532_s7 }
 0x37f   : > { %7506 = dma.done.wait (%p9366_p8), %s1461_s17, 272  }
 0x380   : > { %7508 = vsyncadd (%p9366_p8), %s1461_s17, 4294967024  ;;  %s1472_s15 = scalar_lea.vmem [#allocation35], %s8476_s14  ;;  %s1478_s13 = scalar_lea.sflag [#allocation37], %s8473_s11 }
 0x381   : > { %s8545_s12 = scalar_lea.vmem [#allocation36], %s8485_s22 }
 0x382   : > { %7510 = dma.done.wait (%p9366_p8), %s1478_s13, 1040  }
 0x383   : > { %7512 = vsyncadd (%p9366_p8), %s1478_s13, 4294966256  ;;  %s1489_s7 = scalar_lea.vmem [#allocation38], %s8476_s14  ;;  %p9367_p6 = pmov %p9361_p0 }
 0x384   : > { %p9368_p9 = pmov %p9361_p0 }
 0x385   : > { %7514 = dma.done.wait (%p9367_p6), [#allocation40], 32  }
 0x386   : > { %7516 = vsyncadd (%p9368_p9), [#allocation40], 4294967264  ;;  %p9369_p10 = pmov %p9361_p0 }
 0x387   : > { %p9370_p3 = pmov %p9361_p0 }
 0x388   : > { %7518 = dma.done.wait (%p9369_p10), [#allocation43], 384  }
 0x389   : > { %7520 = vsyncadd (%p9370_p3), [#allocation43], 4294966912  ;;  %p9371_p2 = pmov %p9361_p0 }
 0x38a   : > { %p9372_p13 = pmov %p9361_p0 }
 0x38b   : > { %7522 = dma.done.wait (%p9371_p2), [#allocation46], 32  }
 0x38c   : > { %7524 = vsyncadd (%p9372_p13), [#allocation46], 4294967264  ;;  %p9373_p7 = pmov %p9361_p0 }
 0x38d   : > { %p9374_p4 = pmov %p9361_p0 }
 0x38e   : > { %7526 = dma.done.wait (%p9373_p7), [#allocation49], 16  }
 0x38f   : > { %7528 = vsyncadd (%p9374_p4), [#allocation49], 4294967280  ;;  %p9375_p11 = scmp.ne.s32.totalorder %s9355_s1, 0 }
 0x390   : > { %v6475_v0 = vld [vmem:[#allocation6] sm:$0xff] (!%p9375_p11)   ;;  %v7617_v1 = vmov (!%p9375_p11), 0   ;;  %v6476_v2 = vld [vmem:[#allocation6 + $0x8] sm:$0xff] (!%p9375_p11)   ;;  %v6477_v3 = vld [vmem:[#allocation6 + $0x10] sm:$0xff] (!%p9375_p11)   ;;  %vm1771_vm0 = vcmask (!%p9375_p11), 523264   ;;  %vm1818_vm1 = vcmask (!%p9375_p11), 261120  }
 0x391   : > { %1661 = sbr.rel (%p9375_p11) target bundleno = 1493 (0x5d5), region = 264  ;;  %1775 = vmatprep.subr.bf16.mxu0 (!%p9375_p11), %v7617_v1  ;;  %v6478_v4 = vld [vmem:[#allocation6 + $0x18] sm:$0xff] (!%p9375_p11)   ;;  %v6479_v6 = vld [vmem:[#allocation6 + $0x20] sm:$0xff] (!%p9375_p11)   ;;  %v6480_v7 = vld [vmem:[#allocation6 + $0x28] sm:$0xff] (!%p9375_p11)  }
 0x392   : > { %1776 = vmatpush1.bf16.msra.mxu0 (!%p9375_p11), %v6475_v0  ;;  %v6489_v5 = vld [vmem:[#allocation3 + $0x4] ss:$8 sps:$4 sm:$0xff] (!%p9375_p11)   ;;  %v6483_v10 = vld [vmem:[#allocation6 + $0x40] sm:$0xff] (!%p9375_p11)   ;;  %v6484_v11 = vld [vmem:[#allocation6 + $0x48] sm:$0xff] (!%p9375_p11)  }
 0x393   : > { %1777 = vmatprep.subr.bf16.mxu0 (!%p9375_p11), %v7617_v1  ;;  %5557 = vmatprep.mubr.msk.bf16.mxu0 (!%p9375_p11), %vm1771_vm0, %v6489_v5  ;;  %v6481_v8 = vld [vmem:[#allocation6 + $0x30] sm:$0xff] (!%p9375_p11)   ;;  %v6482_v9 = vld [vmem:[#allocation6 + $0x38] sm:$0xff] (!%p9375_p11)   ;;  %v1688_v15 = vld [vmem:[#allocation8] sm:$0xff] (!%p9375_p11) }
 0x394   : > { %v6485_v12 = vld [vmem:[#allocation6 + $0x50] sm:$0xff] (!%p9375_p11)   ;;  %v6486_v13 = vld [vmem:[#allocation6 + $0x58] sm:$0xff] (!%p9375_p11)   ;;  %v1689_v17 = vld [vmem:[#allocation8 + $0x8] sm:$0xff] (!%p9375_p11) }
 0x395   : > { %v6487_v14 = vld [vmem:[#allocation3] ss:$8 sps:$4 sm:$0xff] (!%p9375_p11)   ;;  %v5558_v42 = vld [vmem:[#allocation12] ss:$0 sm:$0xff] (!%p9375_p11)  ;;  %v5559_v44 = vld [vmem:[#allocation14] ss:$0 sm:$0xff] (!%p9375_p11) }
 0x396   : > { %1778 = vmatpush1.bf16.msra.mxu0 (!%p9375_p11), %v6476_v2 }
 0x397   : > { %1779 = vmatprep.subr.bf16.mxu0 (!%p9375_p11), %v7617_v1 }
 0x39a   : > { %1780 = vmatpush1.bf16.msra.mxu0 %v6477_v3 }
 0x39b   : > { %1781 = vmatprep.subr.bf16.mxu0 %v7617_v1 }
 0x39e   : > { %1782 = vmatpush1.bf16.msra.mxu0 %v6478_v4 }
 0x39f   : > { %1783 = vmatprep.subr.bf16.mxu0 %v7617_v1 }
 0x3a2   : > { %1784 = vmatpush1.bf16.msra.mxu0 %v6479_v6 }
 0x3a3   : > { %1785 = vmatprep.subr.bf16.mxu0 %v7617_v1 }
 0x3a6   : > { %1786 = vmatpush1.bf16.msra.mxu0 %v6480_v7 }
 0x3a7   : > { %1787 = vmatprep.subr.bf16.mxu0 %v7617_v1 }
 0x3aa   : > { %1788 = vmatpush1.bf16.msra.mxu0 %v6481_v8 }
 0x3ab   : > { %1789 = vmatprep.subr.bf16.mxu0 %v7617_v1 }
 0x3ae   : > { %1790 = vmatpush1.bf16.msra.mxu0 %v6482_v9 }
 0x3af   : > { %1791 = vmatprep.subr.bf16.mxu0 %v7617_v1 }
 0x3b2   : > { %1792 = vmatpush1.bf16.msra.mxu0 %v6483_v10 }
 0x3b3   : > { %1793 = vmatprep.subr.bf16.mxu0 %v7617_v1 }
 0x3b6   : > { %1794 = vmatpush1.bf16.msra.mxu0 %v6484_v11 }
 0x3b7   : > { %1795 = vmatprep.subr.bf16.mxu0 %v7617_v1 }
 0x3ba   : > { %1796 = vmatpush1.bf16.msra.mxu0 %v6485_v12 }
 0x3bb   : > { %1797 = vmatprep.subr.bf16.mxu0 %v7617_v1 }
 0x3be   : > { %1798 = vmatpush1.bf16.msra.mxu0 %v6486_v13 }
 0x3c1   : > { %1808 = vmatmul.mubr.bf16.vlgmr.msra.gmra.mrb[0].mxu0 %v6487_v14 }
 0x494   : > { %v1809_v16 = vpop.f32.mrb[0].mxu0 }
 0x495   : > { %v1810_v18 = vadd.f32 %v1809_v16, %v1688_v15  ;;  %v1811_v19 = vpop.f32.mrb[1].mxu0 }
 0x496   : > { %v1812_v20 = vpop.f32.mrb[2].mxu0 }
 0x497   : > { %v1813_v21 = vadd.f32 %v1812_v20, %v1689_v17  ;;  %v1814_v22 = vpop.f32.mrb[3].mxu0  ;;  %v1819_v23 = vsel %vm1818_vm1, %v1810_v18, 0.0 }
 0x498   : > { %1820 = vadd.xlane.f32.xlu0 %v1819_v23 }
 0x499   : > { %v1822_v24 = vsel %vm1818_vm1, %v1813_v21, 0.0 }
 0x49c   : > { %1823 = vadd.xlane.f32.xlu0 %v1822_v24 }
 0x525   : > { %v1821_v25 = vpop.xlane.xlu0 %1820 }
 0x526   : > { %v1826_v26 = vmul.f32 0.03125, %v1821_v25 }
 0x528   : > { %v1828_v27 = vsub.f32 %v1810_v18, %v1826_v26 }
 0x529   : > { %v1824_v28 = vpop.xlane.xlu0 %1823 }
 0x52a   : > { %v1827_v29 = vmul.f32 0.03125, %v1824_v28  ;;  %v1830_v30 = vmul.f32 %v1828_v27, %v1828_v27 }
 0x52c   : > { %v1829_v31 = vsub.f32 %v1813_v21, %v1827_v29  ;;  %v1832_v32 = vsel %vm1818_vm1, %v1830_v30, 0.0 }
 0x52d   : > { %1833 = vadd.xlane.f32.xlu1 %v1832_v32 }
 0x52e   : > { %v1831_v33 = vmul.f32 %v1829_v31, %v1829_v31 }
 0x530   : > { %v1835_v34 = vsel %vm1818_vm1, %v1831_v33, 0.0 }
 0x531   : > { %1836 = vadd.xlane.f32.xlu1 %v1835_v34 }
 0x5ba   : > { %v1834_v35 = vpop.xlane.xlu1 %1833 }
 0x5bb   : > { %v1838_v36 = vmul.f32 0.03125, %v1834_v35 }
 0x5bd   : > { %v1840_v37 = vadd.f32 1e-05, %v1838_v36 }
 0x5be   : > { %v1837_v38 = vpop.xlane.xlu1 %1836 }
 0x5bf   : > { %6490 = vrsqrt.f32 %v1840_v37  ;;  %v1839_v39 = vmul.f32 0.03125, %v1837_v38 }
 0x5c1   : > { %v1841_v40 = vadd.f32 1e-05, %v1839_v39 }
 0x5c3   : > { %6492 = vrsqrt.f32 %v1841_v40 }
 0x5c9   : > { %v6491_v41 = vpop.eup %6490 }
 0x5ca   : > { %v1844_v43 = vmul.f32 %v6491_v41, %v1828_v27 }
 0x5cc   : > { %v1852_v45 = vmul.f32 %v5558_v42, %v1844_v43 }
 0x5cd   : > { %v6493_v46 = vpop.eup %6492 }
 0x5ce   : > { %v1860_v47 = vadd.f32 %v5559_v44, %v1852_v45  ;;  %v1845_v48 = vmul.f32 %v6493_v46, %v1829_v31 }
 0x5d0   : > { %1862 = vst.msk [vmem:[#allocation2] sm:$0xff] %vm1818_vm1, %v1860_v47  ;;  %v1853_v49 = vmul.f32 %v5558_v42, %v1845_v48 }
 0x5d2   : > { %v1861_v50 = vadd.f32 %v5559_v44, %v1853_v49 }
 0x5d4   : > { %1863 = vst.msk [vmem:[#allocation2 + $0x8] sm:$0xff] %vm1818_vm1, %v1861_v50 }
 0x5d5 PF: > { %vm1933_vm2 = vcmask 261120   ;;  %v8579_v58 = vld [vmem:[%s8490_s9] sm:$0xff]   ;;  %v8582_v59 = vld [vmem:[%s8490_s9 + $0x30] sm:$0xff]   ;;  %v7618_v60 = vmov 0.0   ;;  %v8591_v61 = vld [vmem:[%s8490_s9 + $0x8] sm:$0xff]   ;;  %vm7619_vm3 = vmmov 0  }
 0x5d6   : > { %5831 = vmatprep.subr.bf16.mxu0 %v7618_v60  ;;  %5855 = vmatprep.subr.bf16.mxu1 %v7618_v60  ;;  %v8594_v62 = vld [vmem:[%s8490_s9 + $0x38] sm:$0xff]   ;;  %s9376_s17 = scalar_lea.vmem [#allocation15], %s8476_s14  ;;  %s9377_s13 = scalar_lea.vmem [#allocation17], %s8476_s14  ;;  %v8615_v8 = vld [vmem:[%s8490_s9 + $0x10] sm:$0xff]   ;;  %v8643_v13 = vld [vmem:[%s8490_s9 + $0x20] sm:$0xff]   ;;  %vm2691_vm4 = vcmask 64512  }
 0x5d7   : > { %v1929_v51 = vld [vmem:[#allocation2] sm:$0xff]  ;;  %5832 = vmatpush3.bf16.msra.mxu0 %v8579_v58  ;;  %5856 = vmatpush3.bf16.msra.mxu1 %v8582_v59  ;;  %v8618_v9 = vld [vmem:[%s8497_s8 + $0x10] sm:$0xff]   ;;  %v8629_v11 = vld [vmem:[%s8490_s9 + $0x18] sm:$0xff]   ;;  %vm2931_vm5 = vcmask 1043456   ;;  %s9379_s1 = scalar_lea.vmem [#allocation30], %s8476_s14 }
 0x5d8   : > { %v1934_v52 = vsel %vm1933_vm2, %v1929_v51, 0.0  ;;  %5833 = vmatprep.subr.bf16.mxu0 %v7618_v60  ;;  %5857 = vmatprep.subr.bf16.mxu1 %v7618_v60  ;;  %v8606_v3 = vld [vmem:[%s9376_s17] ss:$0 sm:$0xff]  ;;  %v8632_v12 = vld [vmem:[%s8497_s8 + $0x18] sm:$0xff]   ;;  %v8646_v14 = vld [vmem:[%s8497_s8 + $0x30] sm:$0xff]  }
 0x5d9   : > { %1935 = vadd.xlane.f32.xlu0 %v1934_v52  ;;  %5835 = vmatprep.mubr.msk.bf16.mxu0 %vm7619_vm3, %v7618_v60  ;;  %v8610_v5 = vld [vmem:[%s9377_s13] ss:$0 sm:$0xff]  ;;  %v8657_v15 = vld [vmem:[%s8490_s9 + $0x28] sm:$0xff]   ;;  %v8660_v16 = vld [vmem:[%s8497_s8 + $0x38] sm:$0xff]  }
 0x5da   : > { %5859 = vmatprep.mubr.msk.bf16.mxu1 %vm7619_vm3, %v7618_v60  ;;  %v8671_v17 = vld [vmem:[%s8497_s8] sm:$0xff]   ;;  %v8674_v18 = vld [vmem:[%s8501_s4 + $0x10] sm:$0xff]   ;;  %v8685_v19 = vld [vmem:[%s8497_s8 + $0x8] sm:$0xff]  }
 0x5db   : > { %5834 = vmatpush3.bf16.msra.mxu0 %v8591_v61  ;;  %5858 = vmatpush3.bf16.msra.mxu1 %v8594_v62  ;;  %v8688_v20 = vld [vmem:[%s8501_s4 + $0x18] sm:$0xff]   ;;  %v8699_v21 = vld [vmem:[%s8497_s8 + $0x20] sm:$0xff]   ;;  %v8702_v22 = vld [vmem:[%s8501_s4 + $0x30] sm:$0xff]  }
 0x5dc   : > { %5839 = vmatprep.subr.bf16.mxu0 %v7618_v60  ;;  %5871 = vmatprep.subr.bf16.mxu1 %v7618_v60  ;;  %v8713_v23 = vld [vmem:[%s8497_s8 + $0x28] sm:$0xff]   ;;  %v8716_v24 = vld [vmem:[%s8501_s4 + $0x38] sm:$0xff]   ;;  %v8727_v25 = vld [vmem:[%s8501_s4] sm:$0xff]  }
 0x5dd   : > { %v8737_v26 = vld [vmem:[%s8501_s4 + $0x8] sm:$0xff]   ;;  %v8746_v27 = vld [vmem:[%s8501_s4 + $0x20] sm:$0xff]  }
 0x5de   : > { %v8753_v28 = vld [vmem:[%s8501_s4 + $0x28] sm:$0xff]   ;;  %v8771_v48 = vld [vmem:[%s8508_s2 + $0x1] ss:$0 sm:$0xff] }
 0x5df   : > { %v8767_v37 = vld [vmem:[%s8511_s0 + $0x1] ss:$0 sm:$0xff]  ;;  %v8775_v50 = vld [vmem:[%s8511_s0 + $0x3] ss:$0 sm:$0xff] }
 0x666   : > { %v1936_v53 = vpop.xlane.xlu0 %1935 }
 0x667   : > { %v1941_v54 = vmul.f32 0.03125, %v1936_v53 }
 0x669   : > { %v1943_v55 = vsub.f32 %v1929_v51, %v1941_v54 }
 0x66b   : > { %v1945_v56 = vmul.f32 %v1943_v55, %v1943_v55 }
 0x66d   : > { %v1947_v57 = vsel %vm1933_vm2, %v1945_v56, 0.0 }
 0x66e   : > { %1948 = vadd.xlane.f32.xlu0 %v1947_v57 }
 0x6fb   : > { %v1949_v63 = vpop.xlane.xlu0 %1948 }
 0x6fc   : > { %v1953_v0 = vmul.f32 0.03125, %v1949_v63 }
 0x6fe   : > { %v1955_v1 = vadd.f32 1e-05, %v1953_v0 }
 0x700   : > { %6528 = vrsqrt.f32 %v1955_v1 }
 0x70a   : > { %v6529_v2 = vpop.eup %6528 }
 0x70b   : > { %v1959_v4 = vmul.f32 %v6529_v2, %v1943_v55 }
 0x70d   : > { %v1967_v6 = vmul.f32 %v8606_v3, %v1959_v4 }
 0x70f   : > { %v1975_v7 = vadd.f32 %v8610_v5, %v1967_v6  ;;  %v8781_v6 = vld [vmem:[%s8508_s2 + $0x3] ss:$0 sm:$0xff] }
 0x711   : > { %v8620_v10 = vpack.c.bf16 %v1975_v7, %v1975_v7 }
 0x713   : > { %5836 = vmatmul.mubr.msk.bf16.vlgmr.msra.gmra.mrb[0].mxu0 %vm1933_vm2, %v8620_v10  ;;  %5860 = vmatmul.mubr.msk.bf16.vlgmr.msra.gmra.mrb[0].mxu1 %vm1933_vm2, %v8620_v10 }
 0x714   : > { %5840 = vmatpush3.bf16.msra.mxu0 %v8615_v8  ;;  %5872 = vmatpush3.bf16.msra.mxu1 %v8618_v9 }
 0x715   : > { %5841 = vmatprep.subr.bf16.mxu0 %v7618_v60  ;;  %5873 = vmatprep.subr.bf16.mxu1 %v7618_v60 }
 0x716   : > { %5843 = vmatprep.mubr.msk.bf16.mxu0 %vm7619_vm3, %v7618_v60  ;;  %5875 = vmatprep.mubr.msk.bf16.mxu1 %vm7619_vm3, %v7618_v60 }
 0x718   : > { %5842 = vmatpush3.bf16.msra.mxu0 %v8629_v11  ;;  %5874 = vmatpush3.bf16.msra.mxu1 %v8632_v12 }
 0x719   : > { %5847 = vmatprep.subr.bf16.mxu0 %v7618_v60  ;;  %5887 = vmatprep.subr.bf16.mxu1 %v7618_v60 }
 0x71b   : > { %5844 = vmatmul.mubr.msk.bf16.vlgmr.msra.gmra.mrb[4].mxu0 %vm1933_vm2, %v8620_v10  ;;  %5876 = vmatmul.mubr.msk.bf16.vlgmr.msra.gmra.mrb[4].mxu1 %vm1933_vm2, %v8620_v10 }
 0x71c   : > { %5848 = vmatpush3.bf16.msra.mxu0 %v8643_v13  ;;  %5888 = vmatpush3.bf16.msra.mxu1 %v8646_v14 }
 0x71d   : > { %5849 = vmatprep.subr.bf16.mxu0 %v7618_v60  ;;  %5889 = vmatprep.subr.bf16.mxu1 %v7618_v60 }
 0x71e   : > { %5851 = vmatprep.mubr.msk.bf16.mxu0 %vm7619_vm3, %v7618_v60  ;;  %5891 = vmatprep.mubr.msk.bf16.mxu1 %vm7619_vm3, %v7618_v60 }
 0x720   : > { %5850 = vmatpush3.bf16.msra.mxu0 %v8657_v15  ;;  %5890 = vmatpush3.bf16.msra.mxu1 %v8660_v16 }
 0x721   : > { %5863 = vmatprep.subr.bf16.mxu0 %v7618_v60  ;;  %5903 = vmatprep.subr.bf16.mxu1 %v7618_v60 }
 0x723   : > { %5852 = vmatmul.mubr.msk.bf16.vlgmr.msra.gmra.mrb[8].mxu0 %vm1933_vm2, %v8620_v10  ;;  %5892 = vmatmul.mubr.msk.bf16.vlgmr.msra.gmra.mrb[8].mxu1 %vm1933_vm2, %v8620_v10 }
 0x724   : > { %5864 = vmatpush3.bf16.msra.mxu0 %v8671_v17  ;;  %5904 = vmatpush3.bf16.msra.mxu1 %v8674_v18 }
 0x725   : > { %5865 = vmatprep.subr.bf16.mxu0 %v7618_v60  ;;  %5905 = vmatprep.subr.bf16.mxu1 %v7618_v60 }
 0x726   : > { %5867 = vmatprep.mubr.msk.bf16.mxu0 %vm7619_vm3, %v7618_v60  ;;  %5907 = vmatprep.mubr.msk.bf16.mxu1 %vm7619_vm3, %v7618_v60 }
 0x728   : > { %5866 = vmatpush3.bf16.msra.mxu0 %v8685_v19  ;;  %5906 = vmatpush3.bf16.msra.mxu1 %v8688_v20 }
 0x729   : > { %5879 = vmatprep.subr.bf16.mxu0 %v7618_v60  ;;  %5919 = vmatprep.subr.bf16.mxu1 %v7618_v60 }
 0x72b   : > { %5868 = vmatmul.mubr.msk.bf16.vlgmr.msra.gmra.mrb[12].mxu0 %vm1933_vm2, %v8620_v10  ;;  %5908 = vmatmul.mubr.msk.bf16.vlgmr.msra.gmra.mrb[12].mxu1 %vm1933_vm2, %v8620_v10 }
 0x72c   : > { %5880 = vmatpush3.bf16.msra.mxu0 %v8699_v21  ;;  %5920 = vmatpush3.bf16.msra.mxu1 %v8702_v22 }
 0x72d   : > { %5881 = vmatprep.subr.bf16.mxu0 %v7618_v60  ;;  %5921 = vmatprep.subr.bf16.mxu1 %v7618_v60 }
 0x72e   : > { %5883 = vmatprep.mubr.msk.bf16.mxu0 %vm7619_vm3, %v7618_v60  ;;  %5923 = vmatprep.mubr.msk.bf16.mxu1 %vm7619_vm3, %v7618_v60 }
 0x730   : > { %5882 = vmatpush3.bf16.msra.mxu0 %v8713_v23  ;;  %5922 = vmatpush3.bf16.msra.mxu1 %v8716_v24 }
 0x731   : > { %5895 = vmatprep.subr.bf16.mxu0 %v7618_v60  ;;  %5933 = vmatprep.subr.bf16.mxu1 %v7618_v60 }
 0x733   : > { %5884 = vmatmul.mubr.msk.bf16.vlgmr.msra.gmra.mrb[16].mxu0 %vm1933_vm2, %v8620_v10  ;;  %5924 = vmatmul.mubr.msk.bf16.vlgmr.msra.gmra.mrb[16].mxu1 %vm1933_vm2, %v8620_v10 }
 0x734   : > { %5896 = vmatpush3.bf16.msra.mxu0 %v8727_v25  ;;  %5899 = vmatprep.mubr.msk.bf16.mxu0 %vm7619_vm3, %v7618_v60 }
 0x735   : > { %5897 = vmatprep.subr.bf16.mxu0 %v7618_v60  ;;  %5935 = vmatprep.mubr.msk.bf16.mxu1 %vm7619_vm3, %v7618_v60 }
 0x738   : > { %5898 = vmatpush3.bf16.msra.mxu0 %v8737_v26 }
 0x739   : > { %5911 = vmatprep.subr.bf16.mxu0 %v7618_v60 }
 0x73b   : > { %5900 = vmatmul.mubr.msk.bf16.vlgmr.msra.gmra.mrb[20].mxu0 %vm1933_vm2, %v8620_v10 }
 0x73c   : > { %5912 = vmatpush3.bf16.msra.mxu0 %v8746_v27  ;;  %5915 = vmatprep.mubr.msk.bf16.mxu0 %vm7619_vm3, %v7618_v60 }
 0x73d   : > { %5913 = vmatprep.subr.bf16.mxu0 %v7618_v60 }
 0x740   : > { %5914 = vmatpush3.bf16.msra.mxu0 %v8753_v28 }
 0x741   : > { %5927 = vmatprep.subr.bf16.mxu0 %v7618_v60 }
 0x743   : > { %5916 = vmatmul.mubr.msk.bf16.vlgmr.msra.gmra.mrb[24].mxu0 %vm1933_vm2, %v8620_v10  ;;  %v8786_v10 = vld [vmem:[%s8511_s0] ss:$0 sm:$0xff] }
 0x744   : > { %5929 = vmatprep.mubr.msk.bf16.mxu0 %vm7619_vm3, %v7618_v60 }
 0x7e6   : > { %v8764_v29 = vpop.f32.mrb[0].mxu0  ;;  %v2207_v30 = vpop.f32.mrb[0].mxu1 }
 0x7e7   : > { %v5837_v31 = vpop.f32.mrb[1].mxu0  ;;  %v5861_v32 = vpop.f32.mrb[1].mxu1 }
 0x7e8   : > { %v2054_v33 = vpop.f32.mrb[2].mxu0  ;;  %v2210_v34 = vpop.f32.mrb[2].mxu1  ;;  %v8789_v31 = vld [vmem:[%s8518_s18 + $0x1] ss:$0 sm:$0xff]  ;;  %v2208_v32 = vadd.f32 %v8781_v6, %v2207_v30 }
 0x7e9   : > { %v5838_v35 = vpop.f32.mrb[3].mxu0  ;;  %v5862_v36 = vpop.f32.mrb[3].mxu1 }
 0x7ee   : > { %v2103_v38 = vpop.f32.mrb[4].mxu0  ;;  %v2335_v39 = vpop.f32.mrb[4].mxu1 }
 0x7ef   : > { %v2336_v40 = vadd.f32 %v8767_v37, %v2335_v39  ;;  %v5845_v41 = vpop.f32.mrb[5].mxu0  ;;  %v5877_v42 = vpop.f32.mrb[5].mxu1  ;;  %v2104_v51 = vadd.f32 %v8771_v48, %v2103_v38 }
 0x7f0   : > { %v2106_v43 = vpop.f32.mrb[6].mxu0  ;;  %v2338_v44 = vpop.f32.mrb[6].mxu1  ;;  %v2680_v42 = vpack.c.bf16 %v2208_v32, %v2208_v32  ;;  %v8816_v32 = vld [vmem:[%s8508_s2 + $0x2] ss:$0 sm:$0xff] }
 0x7f1   : > { %v2682_v45 = vpack.c.bf16 %v2336_v40, %v2336_v40  ;;  %v5846_v46 = vpop.f32.mrb[7].mxu0  ;;  %v5878_v47 = vpop.f32.mrb[7].mxu1  ;;  %v2678_v0 = vpack.c.bf16 %v2104_v51, %v2104_v51  ;;  %v8804_v51 = vld [vmem:[%s8511_s0 + $0x2] ss:$0 sm:$0xff] }
 0x7f2   : > { %v8798_v46 = vld [vmem:[%s8508_s2] ss:$0 sm:$0xff] }
 0x7f3   : > { %v2742_v49 = vsel %vm2691_vm4, %v2682_v45, 0 }
 0x7f4   : > { %5934 = vmatpush3.bf16.xpose.msra.mxu1 %v2742_v49 }
 0x7f5   : > { %5945 = vmatprep.subr.bf16.mxu1 %v7618_v60 }
 0x7f6   : > { %v2155_v52 = vpop.f32.mrb[8].mxu0  ;;  %v2439_v53 = vpop.f32.mrb[8].mxu1 }
 0x7f7   : > { %v2440_v54 = vadd.f32 %v8775_v50, %v2439_v53  ;;  %v5853_v55 = vpop.f32.mrb[9].mxu0  ;;  %v5893_v56 = vpop.f32.mrb[9].mxu1  ;;  %v2052_v53 = vadd.f32 %v8798_v46, %v8764_v29 }
 0x7f8   : > { %v2158_v57 = vpop.f32.mrb[10].mxu0  ;;  %v2442_v63 = vpop.f32.mrb[10].mxu1 }
 0x7f9   : > { %v2684_v1 = vpack.c.bf16 %v2440_v54, %v2440_v54  ;;  %v5854_v2 = vpop.f32.mrb[11].mxu0  ;;  %v5894_v4 = vpop.f32.mrb[11].mxu1 }
 0x7fa   : > { %v2677_v2 = vpack.c.bf16 %v2052_v53, %v2052_v53 }
 0x7fb   : > { %v2834_v7 = vsel %vm2691_vm4, %v2684_v1, 0  ;;  %5936 = vmatmul.mubr.msk.bf16.vlgmr.msra.gmra.mrb[20].mxu1 %vm2691_vm4, %v2678_v0 }
 0x7fc   : > { %5946 = vmatpush3.bf16.xpose.msra.mxu1 %v2834_v7  ;;  %5947 = vmatprep.mubr.msk.bf16.mxu1 %vm7619_vm3, %v7618_v60 }
 0x7fd   : > { %5957 = vmatprep.subr.bf16.mxu1 %v7618_v60 }
 0x7fe   : > { %v2283_v33 = vpop.f32.mrb[12].mxu0  ;;  %v2567_v34 = vpop.f32.mrb[12].mxu1 }
 0x7ff   : > { %v2284_v35 = vadd.f32 %v8786_v10, %v2283_v33  ;;  %v2568_v36 = vadd.f32 %v8789_v31, %v2567_v34  ;;  %v5869_v38 = vpop.f32.mrb[13].mxu0  ;;  %v5909_v39 = vpop.f32.mrb[13].mxu1  ;;  %v8821_v34 = vld [vmem:[%s8518_s18] ss:$0 sm:$0xff] }
 0x800   : > { %v2286_v40 = vpop.f32.mrb[14].mxu0  ;;  %v2570_v41 = vpop.f32.mrb[14].mxu1 }
 0x801   : > { %v2681_v43 = vpack.c.bf16 %v2284_v35, %v2284_v35  ;;  %v2925_v44 = vpack.c.bf16 %v2568_v36, %v2568_v36  ;;  %v5870_v45 = vpop.f32.mrb[15].mxu0  ;;  %v5910_v30 = vpop.f32.mrb[15].mxu1  ;;  %v2156_v35 = vadd.f32 %v8816_v32, %v2155_v52 }
 0x803   : > { %v2696_v47 = vsel %vm2691_vm4, %v2681_v43, 0  ;;  %v2979_v49 = vsel %vm2931_vm5, %v2925_v44, 0  ;;  %5948 = vmatmul.mubr.msk.bf16.vlgmr.msra.gmra.mrb[24].mxu1 %vm2691_vm4, %v2680_v42  ;;  %v2679_v41 = vpack.c.bf16 %v2156_v35, %v2156_v35 }
 0x804   : > { %5928 = vmatpush3.bf16.xpose.msra.mxu0 %v2696_v47  ;;  %5958 = vmatpush3.bf16.msra.mxu1 %v2979_v49 }
 0x805   : > { %5939 = vmatprep.subr.bf16.mxu0 %v7618_v60  ;;  %5959 = vmatprep.mubr.msk.bf16.mxu1 %vm7619_vm3, %v7618_v60 }
 0x806   : > { %v2387_v54 = vpop.f32.mrb[16].mxu0  ;;  %v8811_v55 = vpop.f32.mrb[16].mxu1  ;;  %5969 = vmatprep.subr.bf16.mxu1 %v7618_v60 }
 0x807   : > { %v2388_v56 = vadd.f32 %v8804_v51, %v2387_v54  ;;  %v5885_v57 = vpop.f32.mrb[17].mxu0  ;;  %v5925_v63 = vpop.f32.mrb[17].mxu1 }
 0x808   : > { %v2390_v0 = vpop.f32.mrb[18].mxu0  ;;  %v2674_v1 = vpop.f32.mrb[18].mxu1 }
 0x809   : > { %v2683_v4 = vpack.c.bf16 %v2388_v56, %v2388_v56  ;;  %v5886_v29 = vpop.f32.mrb[19].mxu0  ;;  %v5926_v7 = vpop.f32.mrb[19].mxu1 }
 0x80b   : > { %v2788_v33 = vsel %vm2691_vm4, %v2683_v4, 0  ;;  %5930 = vmatmul.mubr.msk.bf16.vlgmr.msra.gmra.mrb[28].mxu0 %vm2691_vm4, %v2677_v2  ;;  %v8835_v2 = vld [vmem:[#allocation9] ss:$0 sm:$0xff] }
 0x80c   : > { %5940 = vmatpush3.bf16.xpose.msra.mxu0 %v2788_v33  ;;  %5941 = vmatprep.mubr.msk.bf16.mxu0 %vm7619_vm3, %v7618_v60 }
 0x80d   : > { %5951 = vmatprep.subr.bf16.mxu0 %v7618_v60 }
 0x80e   : > { %v2515_v36 = vpop.f32.mrb[20].mxu0 }
 0x80f   : > { %v2516_v38 = vadd.f32 %v8821_v34, %v2515_v36  ;;  %v5901_v39 = vpop.f32.mrb[21].mxu0 }
 0x810   : > { %v2518_v40 = vpop.f32.mrb[22].mxu0 }
 0x811   : > { %v2924_v42 = vpack.c.bf16 %v2516_v38, %v2516_v38  ;;  %v5902_v43 = vpop.f32.mrb[23].mxu0 }
 0x813   : > { %v2933_v44 = vsel %vm2931_vm5, %v2924_v42, 0  ;;  %5942 = vmatmul.mubr.msk.bf16.vlgmr.msra.gmra.mrb[32].mxu0 %vm2691_vm4, %v2679_v41 }
 0x814   : > { %5952 = vmatpush3.bf16.msra.mxu0 %v2933_v44  ;;  %5953 = vmatprep.mubr.msk.bf16.mxu0 %vm7619_vm3, %v7618_v60 }
 0x815   : > { %5963 = vmatprep.subr.bf16.mxu0 %v7618_v60 }
 0x816   : > { %v8833_v52 = vpop.f32.mrb[24].mxu0 }
 0x817   : > { %v5917_v45 = vpop.f32.mrb[25].mxu0 }
 0x818   : > { %v2622_v30 = vpop.f32.mrb[26].mxu0 }
 0x819   : > { %v5918_v47 = vpop.f32.mrb[27].mxu0 }
 0x8ce   : > { %v2778_v49 = vpop.f32.mrb[20].mxu1 }
 0x8cf   : > { %v5937_v53 = vpop.f32.mrb[21].mxu1  ;;  %v2779_v35 = vadd.f32 %v8835_v2, %v2778_v49 }
 0x8d0   : > { %v2781_v54 = vpop.f32.mrb[22].mxu1 }
 0x8d1   : > { %v5938_v56 = vpop.f32.mrb[23].mxu1  ;;  %v2879_v40 = vsel %vm2691_vm4, %v2779_v35, -inf }
 0x8d6   : > { %v2870_v57 = vpop.f32.mrb[24].mxu1 }
 0x8d7   : > { %v5949_v63 = vpop.f32.mrb[25].mxu1  ;;  %v2871_v39 = vadd.f32 %v8835_v2, %v2870_v57 }
 0x8d8   : > { %v2873_v0 = vpop.f32.mrb[26].mxu1 }
 0x8d9   : > { %v5950_v1 = vpop.f32.mrb[27].mxu1  ;;  %v2885_v30 = vsel %vm2691_vm4, %v2871_v39, -inf }
 0x8de   : > { %v2732_v4 = vpop.f32.mrb[28].mxu0 }
 0x8df   : > { %v2733_v29 = vadd.f32 %v8835_v2, %v2732_v4  ;;  %v5931_v7 = vpop.f32.mrb[29].mxu0 }
 0x8e0   : > { %v2735_v33 = vpop.f32.mrb[30].mxu0 }
 0x8e1   : > { %v5932_v36 = vpop.f32.mrb[31].mxu0  ;;  %v2876_v38 = vsel %vm2691_vm4, %v2733_v29, -inf }
 0x8e2   : > { %2877 = vmax.xlane.f32.xlu1 %v2876_v38 }
 0x8e6   : > { %2880 = vmax.xlane.f32.xlu1 %v2879_v40  ;;  %v2824_v41 = vpop.f32.mrb[32].mxu0 }
 0x8e7   : > { %v2825_v42 = vadd.f32 %v8835_v2, %v2824_v41  ;;  %v5943_v43 = vpop.f32.mrb[33].mxu0 }
 0x8e8   : > { %v2827_v44 = vpop.f32.mrb[34].mxu0 }
 0x8e9   : > { %v5944_v45 = vpop.f32.mrb[35].mxu0  ;;  %v2882_v47 = vsel %vm2691_vm4, %v2825_v42, -inf }
 0x8ea   : > { %2886 = vmax.xlane.f32.xlu1 %v2885_v30  ;;  %2883 = vmax.xlane.f32.xlu0 %v2882_v47 }
 0x96f   : > { %v2878_v49 = vpop.xlane.xlu1 %2877 }
 0x970   : > { %v2888_v53 = vsub.f32 %v2733_v29, %v2878_v49  ;;  %v8854_v49 = vld [vmem:[%s8518_s18 + $0x2] ss:$0 sm:$0xff] }
 0x972   : > { %v2892_v54 = vmul.f32 1.442695, %v2888_v53  ;;  %v2620_v53 = vadd.f32 %v8854_v49, %v8833_v52 }
 0x973   : > { %v2881_v56 = vpop.xlane.xlu1 %2880 }
 0x974   : > { %6530 = vpow2.f32 %v2892_v54  ;;  %v2889_v57 = vsub.f32 %v2779_v35, %v2881_v56  ;;  %v8859_v56 = vld [vmem:[%s8518_s18 + $0x3] ss:$0 sm:$0xff] }
 0x976   : > { %v2894_v63 = vmul.f32 1.442695, %v2889_v57 }
 0x977   : > { %v2887_v0 = vpop.xlane.xlu1 %2886  ;;  %v2884_v1 = vpop.xlane.xlu0 %2883 }
 0x978   : > { %6532 = vpow2.f32 %v2894_v63  ;;  %v2891_v4 = vsub.f32 %v2871_v39, %v2887_v0  ;;  %v2890_v7 = vsub.f32 %v2825_v42, %v2884_v1  ;;  %v8848_v39 = vld [vmem:[#allocation2 + $0x8] sm:$0xff]  ;;  %v2672_v0 = vadd.f32 %v8859_v56, %v8811_v55 }
 0x979   : > { %v1937_v45 = vsel %vm1933_vm2, %v8848_v39, 0.0  ;;  %v2926_v1 = vpack.c.bf16 %v2620_v53, %v2620_v53 }
 0x97a   : > { %v2898_v33 = vmul.f32 1.442695, %v2891_v4  ;;  %v2896_v36 = vmul.f32 1.442695, %v2890_v7 }
 0x97c   : > { %6534 = vpow2.f32 %v2898_v33 }
 0x97d   : > { %6536 = vpow2.f32 %v2896_v36 }
 0x97e   : > { %v6531_v38 = vpop.eup %6530 }
 0x97f   : > { %v2900_v40 = vsel %vm2691_vm4, %v6531_v38, 0.0 }
 0x980   : > { %2901 = vadd.xlane.f32.xlu0 %v2900_v40 }
 0x982   : > { %v6533_v29 = vpop.eup %6532 }
 0x983   : > { %v2903_v41 = vsel %vm2691_vm4, %v6533_v29, 0.0 }
 0x984   : > { %2904 = vadd.xlane.f32.xlu1 %v2903_v41  ;;  %v2927_v41 = vpack.c.bf16 %v2672_v0, %v2672_v0  ;;  %v1925_v0 = vld [vmem:[%s8521_s6 + $0x4] sm:$0xf] }
 0x986   : > { %v6535_v35 = vpop.eup %6534 }
 0x987   : > { %v6537_v43 = vpop.eup %6536  ;;  %v2909_v44 = vsel %vm2691_vm4, %v6535_v35, 0.0 }
 0x988   : > { %2910 = vadd.xlane.f32.xlu1 %v2909_v44  ;;  %v2906_v42 = vsel %vm2691_vm4, %v6537_v43, 0.0  ;;  %v3025_v44 = vsel %vm2931_vm5, %v2926_v1, 0  ;;  %v8889_v1 = vsel %vm2931_vm5, %v1925_v0, 0 }
 0x989   : > { %2907 = vadd.xlane.f32.xlu0 %v2906_v42 }
 0x98d   : > { %1938 = vadd.xlane.f32.xlu0 %v1937_v45 }
 0xa0d   : > { %v2902_v30 = vpop.xlane.xlu0 %2901 }
 0xa0e   : > { %6538 = vrcp.f32 %v2902_v30 }
 0xa11   : > { %v2905_v47 = vpop.xlane.xlu1 %2904 }
 0xa12   : > { %6540 = vrcp.f32 %v2905_v47  ;;  %v3071_v47 = vsel %vm2931_vm5, %v2927_v41, 0 }
 0xa15   : > { %v2911_v54 = vpop.xlane.xlu1 %2910 }
 0xa16   : > { %6542 = vrcp.f32 %v2911_v54  ;;  %v2908_v57 = vpop.xlane.xlu0 %2907 }
 0xa17   : > { %6544 = vrcp.f32 %v2908_v57 }
 0xa18   : > { %v6539_v63 = vpop.eup %6538 }
 0xa19   : > { %v2913_v4 = vmul.f32 %v6539_v63, %v6531_v38 }
 0xa1a   : > { %v1939_v7 = vpop.xlane.xlu0 %1938 }
 0xa1b   : > { %v1942_v33 = vmul.f32 0.03125, %v1939_v7  ;;  %v2920_v36 = vpack.c.bf16 %v2913_v4, %v2913_v4 }
 0xa1c   : > { %v6541_v40 = vpop.eup %6540 }
 0xa1d   : > { %v2915_v52 = vmul.f32 %v6541_v40, %v6533_v29  ;;  %v1944_v42 = vsub.f32 %v8848_v39, %v1942_v33  ;;  %5954 = vmatmul.mubr.msk.bf16.vlgmr.msra.gmra.mrb[36].mxu0 %vm2691_vm4, %v2920_v36  ;;  %v1926_v36 = vld [vmem:[%s8521_s6 + $0x8] sm:$0xf] }
 0xa1e   : > { %5964 = vmatpush3.bf16.msra.mxu0 %v3025_v44  ;;  %5965 = vmatprep.mubr.msk.bf16.mxu0 %vm7619_vm3, %v7618_v60 }
 0xa1f   : > { %v2921_v45 = vpack.c.bf16 %v2915_v52, %v2915_v52  ;;  %v1946_v55 = vmul.f32 %v1944_v42, %v1944_v42  ;;  %5975 = vmatprep.subr.bf16.mxu0 %v7618_v60  ;;  %v8895_v52 = vsel %vm2931_vm5, %v1926_v36, 0 }
 0xa20   : > { %v6543_v38 = vpop.eup %6542 }
 0xa21   : > { %v6545_v30 = vpop.eup %6544  ;;  %5960 = vmatmul.mubr.msk.bf16.vlgmr.msra.gmra.mrb[28].mxu1 %vm2691_vm4, %v2921_v45  ;;  %v1950_v29 = vsel %vm1933_vm2, %v1946_v55, 0.0  ;;  %v2919_v54 = vmul.f32 %v6543_v38, %v6535_v35  ;;  %v1927_v55 = vld [vmem:[%s8521_s6 + $0xc] sm:$0xf] }
 0xa22   : > { %v2917_v53 = vmul.f32 %v6545_v30, %v6537_v43  ;;  %5970 = vmatpush3.bf16.msra.mxu1 %v3071_v47  ;;  %1951 = vadd.xlane.f32.xlu1 %v1950_v29  ;;  %v1924_v43 = vld [vmem:[%s8521_s6] sm:$0xf]  ;;  %s9378_s6 = scalar_lea.vmem [#allocation29], %s8476_s14 }
 0xa23   : > { %5971 = vmatprep.mubr.msk.bf16.mxu1 %vm7619_vm3, %v7618_v60  ;;  %5981 = vmatprep.subr.bf16.mxu1 %v7618_v60  ;;  %v2923_v63 = vpack.c.bf16 %v2919_v54, %v2919_v54  ;;  %v8883_v35 = vsel %vm2931_vm5, %v1924_v43, 0  ;;  %v8903_v54 = vsel %vm2931_vm5, %v1927_v55, 0 }
 0xa24   : > { %v2922_v57 = vpack.c.bf16 %v2917_v53, %v2917_v53 }
 0xa26   : > { %5966 = vmatmul.mubr.msk.bf16.vlgmr.msra.gmra.mrb[40].mxu0 %vm2691_vm4, %v2922_v57 }
 0xa27   : > { %5977 = vmatprep.mubr.msk.bf16.mxu0 %vm7619_vm3, %v7618_v60  ;;  %5976 = vmatpush3.bf16.msra.mxu0 %v8883_v35 }
 0xa28   : > { %5987 = vmatprep.subr.bf16.mxu0 %v7618_v60 }
 0xa29   : > { %5972 = vmatmul.mubr.msk.bf16.vlgmr.msra.gmra.mrb[32].mxu1 %vm2691_vm4, %v2923_v63 }
 0xa2a   : > { %5983 = vmatprep.mubr.msk.bf16.mxu1 %vm7619_vm3, %v7618_v60  ;;  %5982 = vmatpush3.bf16.msra.mxu1 %v8889_v1 }
 0xa2b   : > { %5993 = vmatprep.subr.bf16.mxu1 %v7618_v60 }
 0xaaf   : > { %v1952_v4 = vpop.xlane.xlu1 %1951 }
 0xab0   : > { %v1954_v7 = vmul.f32 0.03125, %v1952_v4 }
 0xab2   : > { %v1956_v33 = vadd.f32 1e-05, %v1954_v7 }
 0xab4   : > { %6546 = vrsqrt.f32 %v1956_v33 }
 0xabe   : > { %v6547_v38 = vpop.eup %6546 }
 0xabf   : > { %v1960_v57 = vmul.f32 %v6547_v38, %v1944_v42 }
 0xac1   : > { %v1968_v4 = vmul.f32 %v8606_v3, %v1960_v57 }
 0xaf0   : > { %v2969_v40 = vpop.f32.mrb[36].mxu0 }
 0xaf1   : > { %v3113_v41 = vpack.c.bf16 %v2969_v40, %v2969_v40  ;;  %v5955_v44 = vpop.f32.mrb[37].mxu0 }
 0xaf2   : > { %v2972_v45 = vpop.f32.mrb[38].mxu0 }
 0xaf3   : > { %v5956_v30 = vpop.f32.mrb[39].mxu0  ;;  %5978 = vmatmul.mubr.msk.bf16.vlgmr.msra.gmra.mrb[44].mxu0 %vm2691_vm4, %v3113_v41  ;;  %v1976_v45 = vadd.f32 %v8610_v5, %v1968_v4 }
 0xaf4   : > { %v3015_v47 = vpop.f32.mrb[28].mxu1  ;;  %5988 = vmatpush3.bf16.msra.mxu0 %v8895_v52  ;;  %5989 = vmatprep.mubr.msk.bf16.mxu0 %vm7619_vm3, %v7618_v60 }
 0xaf5   : > { %v3114_v29 = vpack.c.bf16 %v3015_v47, %v3015_v47  ;;  %v5961_v53 = vpop.f32.mrb[29].mxu1  ;;  %5999 = vmatprep.subr.bf16.mxu0 %v7618_v60 }
 0xaf6   : > { %v3018_v63 = vpop.f32.mrb[30].mxu1 }
 0xaf7   : > { %v5962_v43 = vpop.f32.mrb[31].mxu1  ;;  %5984 = vmatmul.mubr.msk.bf16.vlgmr.msra.gmra.mrb[36].mxu1 %vm2691_vm4, %v3114_v29 }
 0xaf8   : > { %5994 = vmatpush3.bf16.msra.mxu1 %v8903_v54  ;;  %5995 = vmatprep.mubr.msk.bf16.mxu1 %vm7619_vm3, %v7618_v60 }
 0xaf9   : > { %v3061_v0 = vpop.f32.mrb[40].mxu0  ;;  %6007 = vmatprep.subr.bf16.mxu1 %v7618_v60 }
 0xafa   : > { %v3115_v7 = vpack.c.bf16 %v3061_v0, %v3061_v0  ;;  %v5967_v33 = vpop.f32.mrb[41].mxu0 }
 0xafb   : > { %v3064_v36 = vpop.f32.mrb[42].mxu0 }
 0xafc   : > { %v5968_v40 = vpop.f32.mrb[43].mxu0  ;;  %5990 = vmatmul.mubr.msk.bf16.vlgmr.msra.gmra.mrb[48].mxu0 %vm2691_vm4, %v3115_v7  ;;  %v3107_v42 = vpop.f32.mrb[32].mxu1 }
 0xafd   : > { %v3116_v41 = vpack.c.bf16 %v3107_v42, %v3107_v42  ;;  %6000 = vmatpush3.bf16.msra.mxu0 %v8579_v58  ;;  %v5973_v44 = vpop.f32.mrb[33].mxu1  ;;  %6003 = vmatprep.mubr.msk.bf16.mxu0 %vm7619_vm3, %v7618_v60  ;;  %v8924_v58 = vpack.c.bf16 %v1976_v45, %v1976_v45 }
 0xafe   : > { %v3110_v55 = vpop.f32.mrb[34].mxu1  ;;  %6001 = vmatprep.subr.bf16.mxu0 %v7618_v60 }
 0xaff   : > { %v5974_v3 = vpop.f32.mrb[35].mxu1  ;;  %5996 = vmatmul.mubr.msk.bf16.vlgmr.msra.gmra.mrb[40].mxu1 %vm2691_vm4, %v3116_v41 }
 0xb00   : > { %6008 = vmatpush3.bf16.msra.mxu1 %v8615_v8  ;;  %6011 = vmatprep.mubr.msk.bf16.mxu1 %vm7619_vm3, %v7618_v60 }
 0xb01   : > { %6002 = vmatpush3.bf16.msra.mxu0 %v8591_v61  ;;  %6009 = vmatprep.subr.bf16.mxu1 %v7618_v60 }
 0xb02   : > { %6015 = vmatprep.subr.bf16.mxu0 %v7618_v60 }
 0xb04   : > { %6004 = vmatmul.mubr.msk.bf16.vlgmr.msra.gmra.mrb[52].mxu0 %vm1933_vm2, %v8924_v58  ;;  %6010 = vmatpush3.bf16.msra.mxu1 %v8629_v11 }
 0xb05   : > { %6016 = vmatpush3.bf16.msra.mxu0 %v8643_v13  ;;  %6023 = vmatprep.subr.bf16.mxu1 %v7618_v60 }
 0xb06   : > { %6017 = vmatprep.subr.bf16.mxu0 %v7618_v60  ;;  %6019 = vmatprep.mubr.msk.bf16.mxu0 %vm7619_vm3, %v7618_v60 }
 0xb07   : > { %6012 = vmatmul.mubr.msk.bf16.vlgmr.msra.gmra.mrb[44].mxu1 %vm1933_vm2, %v8924_v58 }
 0xb08   : > { %6024 = vmatpush3.bf16.msra.mxu1 %v8582_v59  ;;  %6027 = vmatprep.mubr.msk.bf16.mxu1 %vm7619_vm3, %v7618_v60 }
 0xb09   : > { %6018 = vmatpush3.bf16.msra.mxu0 %v8657_v15  ;;  %6025 = vmatprep.subr.bf16.mxu1 %v7618_v60 }
 0xb0a   : > { %6031 = vmatprep.subr.bf16.mxu0 %v7618_v60 }
 0xb0c   : > { %6020 = vmatmul.mubr.msk.bf16.vlgmr.msra.gmra.mrb[56].mxu0 %vm1933_vm2, %v8924_v58  ;;  %6026 = vmatpush3.bf16.msra.mxu1 %v8594_v62 }
 0xb0d   : > { %6032 = vmatpush3.bf16.msra.mxu0 %v8671_v17  ;;  %6039 = vmatprep.subr.bf16.mxu1 %v7618_v60 }
 0xb0e   : > { %6033 = vmatprep.subr.bf16.mxu0 %v7618_v60  ;;  %6035 = vmatprep.mubr.msk.bf16.mxu0 %vm7619_vm3, %v7618_v60 }
 0xb0f   : > { %6028 = vmatmul.mubr.msk.bf16.vlgmr.msra.gmra.mrb[48].mxu1 %vm1933_vm2, %v8924_v58 }
 0xb10   : > { %6040 = vmatpush3.bf16.msra.mxu1 %v8618_v9  ;;  %6043 = vmatprep.mubr.msk.bf16.mxu1 %vm7619_vm3, %v7618_v60 }
 0xb11   : > { %6034 = vmatpush3.bf16.msra.mxu0 %v8685_v19  ;;  %6041 = vmatprep.subr.bf16.mxu1 %v7618_v60 }
 0xb12   : > { %6047 = vmatprep.subr.bf16.mxu0 %v7618_v60 }
 0xb14   : > { %6036 = vmatmul.mubr.msk.bf16.vlgmr.msra.gmra.mrb[60].mxu0 %vm1933_vm2, %v8924_v58  ;;  %6042 = vmatpush3.bf16.msra.mxu1 %v8632_v12 }
 0xb15   : > { %6048 = vmatpush3.bf16.msra.mxu0 %v8699_v21  ;;  %6055 = vmatprep.subr.bf16.mxu1 %v7618_v60 }
 0xb16   : > { %6049 = vmatprep.subr.bf16.mxu0 %v7618_v60  ;;  %6051 = vmatprep.mubr.msk.bf16.mxu0 %vm7619_vm3, %v7618_v60 }
 0xb17   : > { %6044 = vmatmul.mubr.msk.bf16.vlgmr.msra.gmra.mrb[52].mxu1 %vm1933_vm2, %v8924_v58 }
 0xb18   : > { %6056 = vmatpush3.bf16.msra.mxu1 %v8646_v14  ;;  %6059 = vmatprep.mubr.msk.bf16.mxu1 %vm7619_vm3, %v7618_v60 }
 0xb19   : > { %6050 = vmatpush3.bf16.msra.mxu0 %v8713_v23  ;;  %6057 = vmatprep.subr.bf16.mxu1 %v7618_v60 }
 0xb1a   : > { %6063 = vmatprep.subr.bf16.mxu0 %v7618_v60 }
 0xb1c   : > { %6052 = vmatmul.mubr.msk.bf16.vlgmr.msra.gmra.mrb[64].mxu0 %vm1933_vm2, %v8924_v58  ;;  %6058 = vmatpush3.bf16.msra.mxu1 %v8660_v16 }
 0xb1d   : > { %6064 = vmatpush3.bf16.msra.mxu0 %v8727_v25  ;;  %6071 = vmatprep.subr.bf16.mxu1 %v7618_v60 }
 0xb1e   : > { %6065 = vmatprep.subr.bf16.mxu0 %v7618_v60  ;;  %6067 = vmatprep.mubr.msk.bf16.mxu0 %vm7619_vm3, %v7618_v60 }
 0xb1f   : > { %6060 = vmatmul.mubr.msk.bf16.vlgmr.msra.gmra.mrb[56].mxu1 %vm1933_vm2, %v8924_v58 }
 0xb20   : > { %6072 = vmatpush3.bf16.msra.mxu1 %v8674_v18  ;;  %6075 = vmatprep.mubr.msk.bf16.mxu1 %vm7619_vm3, %v7618_v60 }
 0xb21   : > { %6066 = vmatpush3.bf16.msra.mxu0 %v8737_v26  ;;  %6073 = vmatprep.subr.bf16.mxu1 %v7618_v60 }
 0xb22   : > { %6079 = vmatprep.subr.bf16.mxu0 %v7618_v60 }
 0xb24   : > { %6068 = vmatmul.mubr.msk.bf16.vlgmr.msra.gmra.mrb[68].mxu0 %vm1933_vm2, %v8924_v58  ;;  %6074 = vmatpush3.bf16.msra.mxu1 %v8688_v20 }
 0xb25   : > { %6080 = vmatpush3.bf16.msra.mxu0 %v8746_v27  ;;  %6087 = vmatprep.subr.bf16.mxu1 %v7618_v60 }
 0xb26   : > { %6081 = vmatprep.subr.bf16.mxu0 %v7618_v60  ;;  %6083 = vmatprep.mubr.msk.bf16.mxu0 %vm7619_vm3, %v7618_v60 }
 0xb27   : > { %6076 = vmatmul.mubr.msk.bf16.vlgmr.msra.gmra.mrb[60].mxu1 %vm1933_vm2, %v8924_v58 }
 0xb28   : > { %6088 = vmatpush3.bf16.msra.mxu1 %v8702_v22  ;;  %6091 = vmatprep.mubr.msk.bf16.mxu1 %vm7619_vm3, %v7618_v60 }
 0xb29   : > { %6082 = vmatpush3.bf16.msra.mxu0 %v8753_v28  ;;  %6089 = vmatprep.subr.bf16.mxu1 %v7618_v60  ;;  %v3316_v28 = vld [vmem:[#allocation2] sm:$0xff] }
 0xb2a   : > { %6095 = vmatprep.subr.bf16.mxu0 %v7618_v60 }
 0xb2c   : > { %6084 = vmatmul.mubr.msk.bf16.vlgmr.msra.gmra.mrb[72].mxu0 %vm1933_vm2, %v8924_v58  ;;  %6090 = vmatpush3.bf16.msra.mxu1 %v8716_v24  ;;  %v9023_v24 = vld [vmem:[%s9378_s6] ss:$0 sm:$0xff] }
 0xb2d   : > { %6101 = vmatprep.subr.bf16.mxu1 %v7618_v60  ;;  %6097 = vmatprep.mubr.msk.bf16.mxu0 %vm7619_vm3, %v7618_v60 }
 0xb2f   : > { %6092 = vmatmul.mubr.msk.bf16.vlgmr.msra.gmra.mrb[64].mxu1 %vm1933_vm2, %v8924_v58 }
 0xb30   : > { %6103 = vmatprep.mubr.msk.bf16.mxu1 %vm7619_vm3, %v7618_v60 }
 0xbc6   : > { %v3157_v59 = vpop.f32.mrb[44].mxu0 }
 0xbc7   : > { %v5979_v61 = vpop.f32.mrb[45].mxu0  ;;  %v3301_v9 = vsel %vm1933_vm2, %v3157_v59, 0.0 }
 0xbc8   : > { %v3160_v62 = vpop.f32.mrb[46].mxu0 }
 0xbc9   : > { %v5980_v5 = vpop.f32.mrb[47].mxu0 }
 0xbca   : > { %v3203_v8 = vpop.f32.mrb[36].mxu1 }
 0xbcb   : > { %v3302_v11 = vsel %vm1933_vm2, %v3203_v8, 0.0  ;;  %v5985_v12 = vpop.f32.mrb[37].mxu1 }
 0xbcc   : > { %v3303_v13 = vadd.f32 %v3302_v11, %v3301_v9  ;;  %v3206_v14 = vpop.f32.mrb[38].mxu1 }
 0xbcd   : > { %v5986_v15 = vpop.f32.mrb[39].mxu1 }
 0xbcf   : > { %v3249_v16 = vpop.f32.mrb[48].mxu0 }
 0xbd0   : > { %v3304_v17 = vsel %vm1933_vm2, %v3249_v16, 0.0  ;;  %v5991_v18 = vpop.f32.mrb[49].mxu0 }
 0xbd1   : > { %v3305_v19 = vadd.f32 %v3304_v17, %v3303_v13  ;;  %v3252_v20 = vpop.f32.mrb[50].mxu0 }
 0xbd2   : > { %v5992_v21 = vpop.f32.mrb[51].mxu0  ;;  %v3295_v22 = vpop.f32.mrb[40].mxu1 }
 0xbd3   : > { %v3306_v23 = vsel %vm1933_vm2, %v3295_v22, 0.0  ;;  %v5997_v25 = vpop.f32.mrb[41].mxu1 }
 0xbd4   : > { %v3307_v26 = vadd.f32 %v3306_v23, %v3305_v19  ;;  %v3298_v27 = vpop.f32.mrb[42].mxu1 }
 0xbd5   : > { %v5998_v38 = vpop.f32.mrb[43].mxu1 }
 0xbd6   : > { %v3315_v30 = vadd.f32 %v9023_v24, %v3307_v26 }
 0xbd7   : > { %v3357_v47 = vpop.f32.mrb[52].mxu0 }
 0xbd8   : > { %v3317_v29 = vadd.f32 %v3316_v28, %v3315_v30  ;;  %v6005_v53 = vpop.f32.mrb[53].mxu0  ;;  %v3358_v16 = vadd.f32 %v8798_v46, %v3357_v47 }
 0xbd9   : > { %v3360_v57 = vpop.f32.mrb[54].mxu0 }
 0xbda   : > { %3318 = vst.msk [vmem:[#allocation2] sm:$0xff] %vm1933_vm2, %v3317_v29  ;;  %v6006_v63 = vpop.f32.mrb[55].mxu0  ;;  %v3397_v43 = vpop.f32.mrb[44].mxu1  ;;  %v3803_v21 = vpack.c.bf16 %v3358_v16, %v3358_v16 }
 0xbdb   : > { %v6013_v0 = vpop.f32.mrb[45].mxu1 }
 0xbdc   : > { %v3400_v4 = vpop.f32.mrb[46].mxu1 }
 0xbdd   : > { %v6014_v7 = vpop.f32.mrb[47].mxu1 }
 0xbdf   : > { %v3437_v33 = vpop.f32.mrb[56].mxu0 }
 0xbe0   : > { %v6021_v36 = vpop.f32.mrb[57].mxu0 }
 0xbe1   : > { %v3440_v40 = vpop.f32.mrb[58].mxu0 }
 0xbe2   : > { %v6022_v42 = vpop.f32.mrb[59].mxu0  ;;  %v3477_v41 = vpop.f32.mrb[48].mxu1 }
 0xbe3   : > { %v6029_v44 = vpop.f32.mrb[49].mxu1  ;;  %v3478_v57 = vadd.f32 %v8781_v6, %v3477_v41 }
 0xbe4   : > { %v3480_v45 = vpop.f32.mrb[50].mxu1 }
 0xbe5   : > { %v6030_v55 = vpop.f32.mrb[51].mxu1  ;;  %v3806_v40 = vpack.c.bf16 %v3478_v57, %v3478_v57 }
 0xbe7   : > { %v3517_v3 = vpop.f32.mrb[60].mxu0 }
 0xbe8   : > { %v3518_v58 = vadd.f32 %v8786_v10, %v3517_v3  ;;  %v6037_v59 = vpop.f32.mrb[61].mxu0 }
 0xbe9   : > { %v3520_v61 = vpop.f32.mrb[62].mxu0 }
 0xbea   : > { %v3807_v62 = vpack.c.bf16 %v3518_v58, %v3518_v58  ;;  %v6038_v5 = vpop.f32.mrb[63].mxu0  ;;  %v3557_v8 = vpop.f32.mrb[52].mxu1 }
 0xbeb   : > { %v3558_v9 = vadd.f32 %v8767_v37, %v3557_v8  ;;  %v6045_v11 = vpop.f32.mrb[53].mxu1  ;;  %v3398_v37 = vadd.f32 %v8771_v48, %v3397_v43  ;;  %v3438_v48 = vadd.f32 %v8816_v32, %v3437_v33 }
 0xbec   : > { %v3815_v12 = vsel %vm2691_vm4, %v3807_v62, 0  ;;  %v3560_v13 = vpop.f32.mrb[54].mxu1 }
 0xbed   : > { %v3808_v14 = vpack.c.bf16 %v3558_v9, %v3558_v9  ;;  %6096 = vmatpush3.bf16.xpose.msra.mxu0 %v3815_v12  ;;  %v6046_v15 = vpop.f32.mrb[55].mxu1  ;;  %v3805_v32 = vpack.c.bf16 %v3438_v48, %v3438_v48 }
 0xbee   : > { %6107 = vmatprep.subr.bf16.mxu0 %v7618_v60 }
 0xbef   : > { %v3861_v10 = vsel %vm2691_vm4, %v3808_v14, 0  ;;  %v3597_v17 = vpop.f32.mrb[64].mxu0 }
 0xbf0   : > { %v3598_v18 = vadd.f32 %v8804_v51, %v3597_v17  ;;  %v6053_v19 = vpop.f32.mrb[65].mxu0  ;;  %6102 = vmatpush3.bf16.xpose.msra.mxu1 %v3861_v10  ;;  %v3804_v51 = vpack.c.bf16 %v3398_v37, %v3398_v37 }
 0xbf1   : > { %v3600_v20 = vpop.f32.mrb[66].mxu0  ;;  %6113 = vmatprep.subr.bf16.mxu1 %v7618_v60 }
 0xbf2   : > { %v3809_v22 = vpack.c.bf16 %v3598_v18, %v3598_v18  ;;  %v6054_v23 = vpop.f32.mrb[67].mxu0  ;;  %v3637_v25 = vpop.f32.mrb[56].mxu1 }
 0xbf3   : > { %v3638_v46 = vadd.f32 %v8775_v50, %v3637_v25  ;;  %v6061_v26 = vpop.f32.mrb[57].mxu1 }
 0xbf4   : > { %v3907_v27 = vsel %vm2691_vm4, %v3809_v22, 0  ;;  %6098 = vmatmul.mubr.msk.bf16.vlgmr.msra.gmra.mrb[76].mxu0 %vm2691_vm4, %v3803_v21  ;;  %v3640_v28 = vpop.f32.mrb[58].mxu1 }
 0xbf5   : > { %v3810_v38 = vpack.c.bf16 %v3638_v46, %v3638_v46  ;;  %6108 = vmatpush3.bf16.xpose.msra.mxu0 %v3907_v27  ;;  %v6062_v30 = vpop.f32.mrb[59].mxu1  ;;  %6109 = vmatprep.mubr.msk.bf16.mxu0 %vm7619_vm3, %v7618_v60 }
 0xbf6   : > { %6119 = vmatprep.subr.bf16.mxu0 %v7618_v60 }
 0xbf7   : > { %v3953_v47 = vsel %vm2691_vm4, %v3810_v38, 0  ;;  %v3677_v50 = vpop.f32.mrb[68].mxu0  ;;  %6104 = vmatmul.mubr.msk.bf16.vlgmr.msra.gmra.mrb[68].mxu1 %vm2691_vm4, %v3804_v51 }
 0xbf8   : > { %v3678_v29 = vadd.f32 %v8821_v34, %v3677_v50  ;;  %v6069_v53 = vpop.f32.mrb[69].mxu0  ;;  %6114 = vmatpush3.bf16.xpose.msra.mxu1 %v3953_v47  ;;  %6115 = vmatprep.mubr.msk.bf16.mxu1 %vm7619_vm3, %v7618_v60 }
 0xbf9   : > { %v3680_v63 = vpop.f32.mrb[70].mxu0  ;;  %6125 = vmatprep.subr.bf16.mxu1 %v7618_v60 }
 0xbfa   : > { %v4043_v43 = vpack.c.bf16 %v3678_v29, %v3678_v29  ;;  %v6070_v0 = vpop.f32.mrb[71].mxu0  ;;  %v3717_v4 = vpop.f32.mrb[60].mxu1 }
 0xbfb   : > { %v3718_v7 = vadd.f32 %v8789_v31, %v3717_v4  ;;  %v6077_v33 = vpop.f32.mrb[61].mxu1 }
 0xbfc   : > { %v4051_v36 = vsel %vm2931_vm5, %v4043_v43, 0  ;;  %6110 = vmatmul.mubr.msk.bf16.vlgmr.msra.gmra.mrb[80].mxu0 %vm2691_vm4, %v3805_v32  ;;  %v3720_v34 = vpop.f32.mrb[62].mxu1 }
 0xbfd   : > { %v4044_v42 = vpack.c.bf16 %v3718_v7, %v3718_v7  ;;  %6120 = vmatpush3.bf16.msra.mxu0 %v4051_v36  ;;  %v6078_v44 = vpop.f32.mrb[63].mxu1  ;;  %6121 = vmatprep.mubr.msk.bf16.mxu0 %vm7619_vm3, %v7618_v60  ;;  %v9076_v34 = vld [vmem:[#allocation2] sm:$0xff] }
 0xbfe   : > { %6131 = vmatprep.subr.bf16.mxu0 %v7618_v60  ;;  %v4429_v44 = vsel %vm1933_vm2, %v9076_v34, 0.0 }
 0xbff   : > { %v4097_v6 = vsel %vm2931_vm5, %v4044_v42, 0  ;;  %v9057_v41 = vpop.f32.mrb[72].mxu0  ;;  %6116 = vmatmul.mubr.msk.bf16.vlgmr.msra.gmra.mrb[72].mxu1 %vm2691_vm4, %v3806_v40 }
 0xc00   : > { %v6085_v31 = vpop.f32.mrb[73].mxu0  ;;  %6126 = vmatpush3.bf16.msra.mxu1 %v4097_v6  ;;  %6127 = vmatprep.mubr.msk.bf16.mxu1 %vm7619_vm3, %v7618_v60 }
 0xc01   : > { %v3760_v45 = vpop.f32.mrb[74].mxu0  ;;  %6137 = vmatprep.subr.bf16.mxu1 %v7618_v60 }
 0xc02   : > { %v6086_v55 = vpop.f32.mrb[75].mxu0  ;;  %v9063_v3 = vpop.f32.mrb[64].mxu1  ;;  %v3758_v45 = vadd.f32 %v8854_v49, %v9057_v41 }
 0xc03   : > { %v6093_v58 = vpop.f32.mrb[65].mxu1 }
 0xc04   : > { %v3800_v59 = vpop.f32.mrb[66].mxu1 }
 0xc05   : > { %v6094_v61 = vpop.f32.mrb[67].mxu1  ;;  %v3798_v59 = vadd.f32 %v8859_v56, %v9063_v3 }
 0xcc7   : > { %v3851_v62 = vpop.f32.mrb[76].mxu0 }
 0xcc8   : > { %v3852_v5 = vadd.f32 %v8835_v2, %v3851_v62  ;;  %v6099_v8 = vpop.f32.mrb[77].mxu0  ;;  %v4045_v62 = vpack.c.bf16 %v3758_v45, %v3758_v45 }
 0xcc9   : > { %v3854_v9 = vpop.f32.mrb[78].mxu0 }
 0xcca   : > { %v6100_v11 = vpop.f32.mrb[79].mxu0  ;;  %v3897_v12 = vpop.f32.mrb[68].mxu1  ;;  %v3995_v13 = vsel %vm2691_vm4, %v3852_v5, -inf  ;;  %v4143_v49 = vsel %vm2931_vm5, %v4045_v62, 0 }
 0xccb   : > { %v3898_v14 = vadd.f32 %v8835_v2, %v3897_v12  ;;  %3996 = vmax.xlane.f32.xlu0 %v3995_v13  ;;  %v6105_v15 = vpop.f32.mrb[69].mxu1  ;;  %v4046_v13 = vpack.c.bf16 %v3798_v59, %v3798_v59 }
 0xccc   : > { %v3900_v16 = vpop.f32.mrb[70].mxu1 }
 0xccd   : > { %v6106_v10 = vpop.f32.mrb[71].mxu1  ;;  %v3998_v17 = vsel %vm2691_vm4, %v3898_v14, -inf  ;;  %v4189_v16 = vsel %vm2931_vm5, %v4046_v13, 0 }
 0xcce   : > { %3999 = vmax.xlane.f32.xlu1 %v3998_v17 }
 0xccf   : > { %v3943_v18 = vpop.f32.mrb[80].mxu0 }
 0xcd0   : > { %v3944_v19 = vadd.f32 %v8835_v2, %v3943_v18  ;;  %v6111_v37 = vpop.f32.mrb[81].mxu0 }
 0xcd1   : > { %v3946_v20 = vpop.f32.mrb[82].mxu0 }
 0xcd2   : > { %v6112_v21 = vpop.f32.mrb[83].mxu0  ;;  %v3989_v22 = vpop.f32.mrb[72].mxu1  ;;  %v4001_v23 = vsel %vm2691_vm4, %v3944_v19, -inf }
 0xcd3   : > { %v3990_v25 = vadd.f32 %v8835_v2, %v3989_v22  ;;  %4002 = vmax.xlane.f32.xlu0 %v4001_v23  ;;  %v6117_v46 = vpop.f32.mrb[73].mxu1 }
 0xcd4   : > { %v3992_v26 = vpop.f32.mrb[74].mxu1 }
 0xcd5   : > { %v6118_v27 = vpop.f32.mrb[75].mxu1  ;;  %v4004_v28 = vsel %vm2691_vm4, %v3990_v25, -inf }
 0xcd6   : > { %4005 = vmax.xlane.f32.xlu1 %v4004_v28 }
 0xd58   : > { %v3997_v51 = vpop.xlane.xlu0 %3996 }
 0xd59   : > { %v4007_v38 = vsub.f32 %v3852_v5, %v3997_v51 }
 0xd5b   : > { %v4011_v30 = vmul.f32 1.442695, %v4007_v38  ;;  %v4000_v48 = vpop.xlane.xlu1 %3999 }
 0xd5c   : > { %v4008_v47 = vsub.f32 %v3898_v14, %v4000_v48 }
 0xd5d   : > { %6548 = vpow2.f32 %v4011_v30 }
 0xd5e   : > { %v4013_v50 = vmul.f32 1.442695, %v4008_v47 }
 0xd60   : > { %6550 = vpow2.f32 %v4013_v50  ;;  %v4003_v29 = vpop.xlane.xlu0 %4002 }
 0xd61   : > { %v4009_v53 = vsub.f32 %v3944_v19, %v4003_v29 }
 0xd63   : > { %v4015_v57 = vmul.f32 1.442695, %v4009_v53  ;;  %v4006_v63 = vpop.xlane.xlu1 %4005 }
 0xd64   : > { %v4010_v2 = vsub.f32 %v3990_v25, %v4006_v63 }
 0xd65   : > { %6552 = vpow2.f32 %v4015_v57 }
 0xd66   : > { %v4017_v32 = vmul.f32 1.442695, %v4010_v2 }
 0xd67   : > { %v6549_v43 = vpop.eup %6548 }
 0xd68   : > { %6554 = vpow2.f32 %v4017_v32  ;;  %v4019_v0 = vsel %vm2691_vm4, %v6549_v43, 0.0 }
 0xd69   : > { %4020 = vadd.xlane.f32.xlu0 %v4019_v0 }
 0xd6a   : > { %v6551_v4 = vpop.eup %6550 }
 0xd6b   : > { %v4022_v7 = vsel %vm2691_vm4, %v6551_v4, 0.0 }
 0xd6c   : > { %4023 = vadd.xlane.f32.xlu1 %v4022_v7 }
 0xd6f   : > { %v6553_v33 = vpop.eup %6552 }
 0xd70   : > { %v4025_v36 = vsel %vm2691_vm4, %v6553_v33, 0.0 }
 0xd71   : > { %4026 = vadd.xlane.f32.xlu0 %v4025_v36 }
 0xd72   : > { %v6555_v40 = vpop.eup %6554 }
 0xd73   : > { %v4028_v42 = vsel %vm2691_vm4, %v6555_v40, 0.0 }
 0xd74   : > { %4029 = vadd.xlane.f32.xlu1 %v4028_v42 }
 0xd75   : > { %4430 = vadd.xlane.f32.xlu0 %v4429_v44 }
 0xdf6   : > { %v4021_v6 = vpop.xlane.xlu0 %4020 }
 0xdf7   : > { %6556 = vrcp.f32 %v4021_v6 }
 0xdf9   : > { %v4024_v31 = vpop.xlane.xlu1 %4023 }
 0xdfa   : > { %6558 = vrcp.f32 %v4024_v31 }
 0xdfe   : > { %v4027_v55 = vpop.xlane.xlu0 %4026 }
 0xdff   : > { %6560 = vrcp.f32 %v4027_v55 }
 0xe01   : > { %v6557_v58 = vpop.eup %6556  ;;  %v4030_v61 = vpop.xlane.xlu1 %4029 }
 0xe02   : > { %v4032_v5 = vmul.f32 %v6557_v58, %v6549_v43  ;;  %6562 = vrcp.f32 %v4030_v61  ;;  %v4431_v8 = vpop.xlane.xlu0 %4430 }
 0xe03   : > { %v4435_v9 = vmul.f32 0.03125, %v4431_v8 }
 0xe04   : > { %v6559_v11 = vpop.eup %6558  ;;  %v4039_v12 = vpack.c.bf16 %v4032_v5, %v4032_v5 }
 0xe05   : > { %v4034_v14 = vmul.f32 %v6559_v11, %v6551_v4  ;;  %v9086_v15 = vsub.f32 %v9076_v34, %v4435_v9 }
 0xe06   : > { %6122 = vmatmul.mubr.msk.bf16.vlgmr.msra.gmra.mrb[84].mxu0 %vm2691_vm4, %v4039_v12 }
 0xe07   : > { %6132 = vmatpush3.bf16.msra.mxu0 %v4143_v49  ;;  %v4040_v41 = vpack.c.bf16 %v4034_v14, %v4034_v14  ;;  %v4439_v56 = vmul.f32 %v9086_v15, %v9086_v15  ;;  %6133 = vmatprep.mubr.msk.bf16.mxu0 %vm7619_vm3, %v7618_v60 }
 0xe08   : > { %6143 = vmatprep.subr.bf16.mxu0 %v7618_v60 }
 0xe09   : > { %v6561_v3 = vpop.eup %6560  ;;  %6128 = vmatmul.mubr.msk.bf16.vlgmr.msra.gmra.mrb[76].mxu1 %vm2691_vm4, %v4040_v41  ;;  %v4441_v10 = vsel %vm1933_vm2, %v4439_v56, 0.0 }
 0xe0a   : > { %v4036_v17 = vmul.f32 %v6561_v3, %v6553_v33  ;;  %6138 = vmatpush3.bf16.msra.mxu1 %v4189_v16  ;;  %4442 = vadd.xlane.f32.xlu0 %v4441_v10 }
 0xe0b   : > { %6139 = vmatprep.mubr.msk.bf16.mxu1 %vm7619_vm3, %v7618_v60  ;;  %6149 = vmatprep.subr.bf16.mxu1 %v7618_v60 }
 0xe0c   : > { %v6563_v18 = vpop.eup %6562  ;;  %v4041_v19 = vpack.c.bf16 %v4036_v17, %v4036_v17 }
 0xe0d   : > { %v4038_v37 = vmul.f32 %v6563_v18, %v6555_v40 }
 0xe0e   : > { %6134 = vmatmul.mubr.msk.bf16.vlgmr.msra.gmra.mrb[88].mxu0 %vm2691_vm4, %v4041_v19 }
 0xe0f   : > { %v4042_v20 = vpack.c.bf16 %v4038_v37, %v4038_v37  ;;  %6144 = vmatpush3.bf16.msra.mxu0 %v8883_v35  ;;  %6145 = vmatprep.mubr.msk.bf16.mxu0 %vm7619_vm3, %v7618_v60 }
 0xe10   : > { %6155 = vmatprep.subr.bf16.mxu0 %v7618_v60 }
 0xe11   : > { %6140 = vmatmul.mubr.msk.bf16.vlgmr.msra.gmra.mrb[80].mxu1 %vm2691_vm4, %v4042_v20 }
 0xe12   : > { %6150 = vmatpush3.bf16.msra.mxu1 %v8889_v1  ;;  %6151 = vmatprep.mubr.msk.bf16.mxu1 %vm7619_vm3, %v7618_v60 }
 0xe13   : > { %6161 = vmatprep.subr.bf16.mxu1 %v7618_v60 }
 0xe97   : > { %v4443_v16 = vpop.xlane.xlu0 %4442 }
 0xe98   : > { %v4447_v10 = vmul.f32 0.03125, %v4443_v16 }
 0xe9a   : > { %v4449_v17 = vadd.f32 1e-05, %v4447_v10 }
 0xe9c   : > { %6564 = vrsqrt.f32 %v4449_v17 }
 0xea6   : > { %v6565_v20 = vpop.eup %6564 }
 0xed9   : > { %v4087_v21 = vpop.f32.mrb[84].mxu0 }
 0xeda   : > { %v4231_v22 = vpack.c.bf16 %v4087_v21, %v4087_v21  ;;  %v6123_v23 = vpop.f32.mrb[85].mxu0  ;;  %v4453_v21 = vmul.f32 %v6565_v20, %v9086_v15  ;;  %v6521_v15 = vld [vmem:[%s8545_s12 + $0x8] sm:$0xff]  }
 0xedb   : > { %v4090_v25 = vpop.f32.mrb[86].mxu0 }
 0xedc   : > { %v6124_v46 = vpop.f32.mrb[87].mxu0  ;;  %6146 = vmatmul.mubr.msk.bf16.vlgmr.msra.gmra.mrb[92].mxu0 %vm2691_vm4, %v4231_v22  ;;  %v4133_v35 = vpop.f32.mrb[76].mxu1  ;;  %v5649_v22 = vld [vmem:[%s9379_s1] ss:$0 sm:$0xff] }
 0xedd   : > { %v4232_v26 = vpack.c.bf16 %v4133_v35, %v4133_v35  ;;  %v6129_v27 = vpop.f32.mrb[77].mxu1  ;;  %6156 = vmatpush3.bf16.msra.mxu0 %v8895_v52  ;;  %6157 = vmatprep.mubr.msk.bf16.mxu0 %vm7619_vm3, %v7618_v60  ;;  %v4461_v25 = vmul.f32 %v5649_v22, %v4453_v21  ;;  %v5650_v35 = vld [vmem:[%s1455_s3] ss:$0 sm:$0xff] }
 0xede   : > { %v4136_v1 = vpop.f32.mrb[78].mxu1  ;;  %6167 = vmatprep.subr.bf16.mxu0 %v7618_v60 }
 0xedf   : > { %v6130_v28 = vpop.f32.mrb[79].mxu1  ;;  %6152 = vmatmul.mubr.msk.bf16.vlgmr.msra.gmra.mrb[84].mxu1 %vm2691_vm4, %v4232_v26  ;;  %v4469_v27 = vadd.f32 %v5650_v35, %v4461_v25 }
 0xee0   : > { %6162 = vmatpush3.bf16.msra.mxu1 %v8903_v54  ;;  %6163 = vmatprep.mubr.msk.bf16.mxu1 %vm7619_vm3, %v7618_v60 }
 0xee1   : > { %v4179_v51 = vpop.f32.mrb[88].mxu0  ;;  %6175 = vmatprep.subr.bf16.mxu1 %v7618_v60 }
 0xee2   : > { %v4233_v38 = vpack.c.bf16 %v4179_v51, %v4179_v51  ;;  %v6135_v30 = vpop.f32.mrb[89].mxu0  ;;  %v6520_v51 = vld [vmem:[%s8545_s12] sm:$0xff]  }
 0xee3   : > { %v4182_v52 = vpop.f32.mrb[90].mxu0  ;;  %v6523_v30 = vld [vmem:[%s8545_s12 + $0x18] sm:$0xff]  }
 0xee4   : > { %v6136_v48 = vpop.f32.mrb[91].mxu0  ;;  %6158 = vmatmul.mubr.msk.bf16.vlgmr.msra.gmra.mrb[96].mxu0 %vm2691_vm4, %v4233_v38  ;;  %v4225_v47 = vpop.f32.mrb[80].mxu1  ;;  %v6522_v38 = vld [vmem:[%s8545_s12 + $0x10] sm:$0xff]   ;;  %v6524_v52 = vld [vmem:[%s8545_s12 + $0x20] sm:$0xff]  }
 0xee5   : > { %v4234_v50 = vpack.c.bf16 %v4225_v47, %v4225_v47  ;;  %v6141_v29 = vpop.f32.mrb[81].mxu1  ;;  %6171 = vmatprep.mubr.msk.bf16.mxu0 %vm7619_vm3, %v7618_v60  ;;  %v6525_v48 = vld [vmem:[%s8545_s12 + $0x28] sm:$0xff]   ;;  %v6526_v47 = vld [vmem:[%s8545_s12 + $0x30] sm:$0xff]  }
 0xee6   : > { %v4228_v53 = vpop.f32.mrb[82].mxu1  ;;  %v5651_v29 = vld [vmem:[%s1472_s15] ss:$0 sm:$0xff] }
 0xee7   : > { %v6142_v54 = vpop.f32.mrb[83].mxu1  ;;  %6164 = vmatmul.mubr.msk.bf16.vlgmr.msra.gmra.mrb[88].mxu1 %vm2691_vm4, %v4234_v50  ;;  %v6527_v50 = vld [vmem:[%s8545_s12 + $0x38] sm:$0xff]   ;;  %s9380_s12 = sld [smem:[#allocation95_spill]] }
 0xee8   : > { %6191 = vmatprep.mubr.msk.bf16.mxu1 %vm7619_vm3, %v7618_v60  ;;  %6176 = vmatpush3.bf16.msra.mxu1 %v6520_v51 }
 0xee9   : > { %6177 = vmatprep.subr.bf16.mxu1 %v7618_v60 }
 0xeec   : > { %6178 = vmatpush3.bf16.msra.mxu1 %v6521_v15 }
 0xeed   : > { %6179 = vmatprep.subr.bf16.mxu1 %v7618_v60  ;;  %p5666_p12 = scmp.ne.s32.totalorder %s9380_s12, 1 }
 0xeee   : > { %vm7621_vm6 = vmmov (!%p5666_p12), 0   ;;  %vm4681_vm7 = vcmask (!%p5666_p12), 130048   ;;  %vm4757_vm8 = vcmask (!%p5666_p12), 254976   ;;  %v6578_v20 = vld [vmem:[#allocation44] sm:$0xff] (!%p5666_p12)   ;;  %vm4904_vm9 = vcmask (!%p5666_p12), 58368  }
 0xef0   : > { %6180 = vmatpush3.bf16.msra.mxu1 %v6522_v38 }
 0xef1   : > { %6181 = vmatprep.subr.bf16.mxu1 %v7618_v60 }
 0xef4   : > { %6182 = vmatpush3.bf16.msra.mxu1 %v6523_v30 }
 0xef5   : > { %6183 = vmatprep.subr.bf16.mxu1 %v7618_v60 }
 0xef8   : > { %6184 = vmatpush3.bf16.msra.mxu1 %v6524_v52 }
 0xef9   : > { %6185 = vmatprep.subr.bf16.mxu1 %v7618_v60 }
 0xefc   : > { %6186 = vmatpush3.bf16.msra.mxu1 %v6525_v48  ;;  %v5673_v48 = vld [vmem:[#allocation45] ss:$0 sm:$0xff] (!%p5666_p12) }
 0xefd   : > { %6187 = vmatprep.subr.bf16.mxu1 %v7618_v60 }
 0xf00   : > { %6188 = vmatpush3.bf16.msra.mxu1 %v6526_v47 }
 0xf01   : > { %6189 = vmatprep.subr.bf16.mxu1 %v7618_v60 }
 0xf04   : > { %6190 = vmatpush3.bf16.msra.mxu1 %v6527_v50 }
 0xfaf   : > { %v4272_v57 = vpop.f32.mrb[92].mxu0 }
 0xfb0   : > { %v6147_v63 = vpop.f32.mrb[93].mxu0  ;;  %v4407_v0 = vsel %vm1933_vm2, %v4272_v57, 0.0 }
 0xfb1   : > { %v4275_v2 = vpop.f32.mrb[94].mxu0 }
 0xfb2   : > { %v6148_v32 = vpop.f32.mrb[95].mxu0  ;;  %v4315_v43 = vpop.f32.mrb[84].mxu1 }
 0xfb3   : > { %v4408_v4 = vsel %vm1933_vm2, %v4315_v43, 0.0  ;;  %v6153_v7 = vpop.f32.mrb[85].mxu1 }
 0xfb4   : > { %v4409_v33 = vadd.f32 %v4408_v4, %v4407_v0  ;;  %v4318_v36 = vpop.f32.mrb[86].mxu1 }
 0xfb5   : > { %v6154_v40 = vpop.f32.mrb[87].mxu1 }
 0xfb7   : > { %v4358_v42 = vpop.f32.mrb[96].mxu0 }
 0xfb8   : > { %v4410_v44 = vsel %vm1933_vm2, %v4358_v42, 0.0  ;;  %v6159_v6 = vpop.f32.mrb[97].mxu0 }
 0xfb9   : > { %v4411_v31 = vadd.f32 %v4410_v44, %v4409_v33  ;;  %v4361_v45 = vpop.f32.mrb[98].mxu0 }
 0xfba   : > { %v6160_v55 = vpop.f32.mrb[99].mxu0  ;;  %v4401_v58 = vpop.f32.mrb[88].mxu1 }
 0xfbb   : > { %v4412_v59 = vsel %vm1933_vm2, %v4401_v58, 0.0  ;;  %v6165_v61 = vpop.f32.mrb[89].mxu1  ;;  %v5665_v58 = vld [vmem:[%s1489_s7] ss:$0 sm:$0xff] }
 0xfbc   : > { %v4413_v62 = vadd.f32 %v4412_v59, %v4411_v31  ;;  %v4404_v5 = vpop.f32.mrb[90].mxu1 }
 0xfbd   : > { %v6166_v8 = vpop.f32.mrb[91].mxu1 }
 0xfbe   : > { %v4421_v9 = vadd.f32 %v9023_v24, %v4413_v62  ;;  %v6518_v24 = vld [vmem:[%s8536_s19] sm:$0xff]  }
 0xfbf   : > { %6168 = vmatpush3.bf16.msra.mxu0 %v6518_v24 }
 0xfc0   : > { %v4423_v11 = vadd.f32 %v4421_v9, %v8848_v39  ;;  %v6519_v39 = vld [vmem:[%s8536_s19 + $0x8] sm:$0xff]   ;;  %6169 = vmatprep.subr.bf16.mxu0 %v7618_v60 }
 0xfc2   : > { %4424 = vst.msk [vmem:[#allocation2 + $0x8] sm:$0xff] %vm1933_vm2, %v4423_v11 }
 0xfc3   : > { %6170 = vmatpush3.bf16.msra.mxu0 %v6519_v39 }
 0xfc9   : > { %v9134_v12 = vld [vmem:[#allocation2 + $0x8] sm:$0xff] }
 0xfca   : > { %v4432_v13 = vsel %vm1933_vm2, %v9134_v12, 0.0 }
 0xfcb   : > { %4433 = vadd.xlane.f32.xlu1 %v4432_v13 }
0x1058   : > { %v4434_v14 = vpop.xlane.xlu1 %4433 }
0x1059   : > { %v4436_v49 = vmul.f32 0.03125, %v4434_v14 }
0x105b   : > { %v4438_v41 = vsub.f32 %v9134_v12, %v4436_v49  ;;  %v7620_v49 = vmov (!%p5666_p12), 0.0|0.0  }
0x105c   : > { %6216 = vmatprep.subr.bf16.mxu0 (!%p5666_p12), %v7620_v49 }
0x105d   : > { %v4440_v56 = vmul.f32 %v4438_v41, %v4438_v41 }
0x105f   : > { %v4444_v3 = vsel %vm1933_vm2, %v4440_v56, 0.0 }
0x1060   : > { %4445 = vadd.xlane.f32.xlu1 %v4444_v3 }
0x10ed   : > { %v4446_v18 = vpop.xlane.xlu1 %4445 }
0x10ee   : > { %v4448_v19 = vmul.f32 0.03125, %v4446_v18 }
0x10f0   : > { %v4450_v37 = vadd.f32 1e-05, %v4448_v19  ;;  %v6576_v19 = vld [vmem:[#allocation42] sm:$0xff] (!%p5666_p12)  }
0x10f2   : > { %6566 = vrsqrt.f32 %v4450_v37  ;;  %v6577_v37 = vld [vmem:[#allocation42 + $0x8] sm:$0xff] (!%p5666_p12)  }
0x10fc   : > { %v6567_v23 = vpop.eup %6566 }
0x10fd   : > { %v4454_v46 = vmul.f32 %v6567_v23, %v4438_v41 }
0x10ff   : > { %v4462_v26 = vmul.f32 %v5649_v22, %v4454_v46  ;;  %v5668_v46 = vld [vmem:[#allocation39] ss:$0 sm:$0xff] (!%p5666_p12) }
0x1101   : > { %v4470_v1 = vadd.f32 %v5650_v35, %v4462_v26  ;;  %v5669_v26 = vld [vmem:[#allocation41] ss:$0 sm:$0xff] (!%p5666_p12) }
0x1103   : > { %v4471_v28 = vpack.c.bf16 %v4470_v1, %v4469_v27 }
0x1105   : > { %6172 = vmatmul.mubr.msk.bf16.vlgmr.msra.gmra.mrb[100].mxu0 %vm1933_vm2, %v4471_v28 }
0x11d8   : > { %v4532_v53 = vpop.f32.mrb[100].mxu0 }
0x11d9   : > { %v4533_v54 = vadd.f32 %v5651_v29, %v4532_v53  ;;  %v6173_v57 = vpop.f32.mrb[101].mxu0 }
0x11da   : > { %v4535_v63 = vpop.f32.mrb[102].mxu0 }
0x11db   : > { %v5655_v2 = vmul.f32 -1.702, %v4533_v54  ;;  %v4536_v32 = vadd.f32 %v5651_v29, %v4535_v63  ;;  %v6174_v43 = vpop.f32.mrb[103].mxu0 }
0x11dd   : > { %v4543_v0 = vmul.f32 1.442695, %v5655_v2  ;;  %v5656_v4 = vmul.f32 -1.702, %v4536_v32 }
0x11df   : > { %6568 = vpow2.f32 %v4543_v0  ;;  %v4545_v7 = vmul.f32 1.442695, %v5656_v4 }
0x11e1   : > { %6570 = vpow2.f32 %v4545_v7 }
0x11e9   : > { %v6569_v33 = vpop.eup %6568 }
0x11ea   : > { %v4547_v36 = vadd.f32 1.0, %v6569_v33 }
0x11eb   : > { %v6571_v60 = vpop.eup %6570 }
0x11ec   : > { %6572 = vrcp.f32 %v4547_v36  ;;  %v4548_v40 = vadd.f32 1.0, %v6571_v60 }
0x11ee   : > { %6574 = vrcp.f32 %v4548_v40 }
0x11f6   : > { %v6573_v42 = vpop.eup %6572 }
0x11f7   : > { %v4553_v6 = vmul.f32 %v6573_v42, %v4533_v54 }
0x11f8   : > { %v6575_v44 = vpop.eup %6574 }
0x11f9   : > { %v4554_v31 = vmul.f32 %v6575_v44, %v4536_v32 }
0x11fb   : > { %v4555_v45 = vpack.c.bf16 %v4554_v31, %v4553_v6 }
0x11fd   : > { %6192 = vmatmul.mubr.bf16.vlgmr.msra.gmra.mrb[92].mxu1 %v4555_v45 }
0x12d0   : > { %v4654_v55 = vpop.f32.mrb[92].mxu1 }
0x12d1   : > { %v4661_v59 = vadd.f32 %v4654_v55, %v9076_v34  ;;  %v6193_v61 = vpop.f32.mrb[93].mxu1  ;;  %4677 = sbr.rel (%p5666_p12) target bundleno = 5845 (0x16d5), region = 268  ;;  %v7622_v34 = vmov (!%p5666_p12), 0.0  }
0x12d2   : > { %v4657_v62 = vpop.f32.mrb[94].mxu1  ;;  %6199 = vmatprep.mubr.msk.f32.mxu0 (!%p5666_p12), %vm7621_vm6, %v7622_v34  ;;  %6202 = vmatprep.subr.bf16.mxu1 (!%p5666_p12), %v7622_v34  ;;  %v5676_v61 = vld [vmem:[#allocation47] ss:$0 sm:$0xff] (!%p5666_p12) }
0x12d3   : > { %v4670_v5 = vadd.f32 %v5665_v58, %v4661_v59  ;;  %v4662_v8 = vadd.f32 %v4657_v62, %v9134_v12  ;;  %v6194_v9 = vpop.f32.mrb[95].mxu1  ;;  %6206 = vmatprep.mubr.msk.bf16.mxu1 (!%p5666_p12), %vm7621_vm6, %v7622_v34  ;;  %v4680_v12 = vld [vmem:[#allocation11] sm:$0x3] (!%p5666_p12)  ;;  %6203 = vmatpush3.bf16.msra.mxu1 (!%p5666_p12), %v6576_v19 }
0x12d4   : > { %6204 = vmatprep.subr.bf16.mxu1 (!%p5666_p12), %v7622_v34 }
0x12d5   : > { %4672 = vst.msk [vmem:[#allocation2] sm:$0xff] %vm1933_vm2, %v4670_v5  ;;  %v4671_v11 = vadd.f32 %v5665_v58, %v4662_v8  ;;  %v5677_v5 = vld [vmem:[#allocation48] ss:$0 sm:$0xff] (!%p5666_p12) }
0x12d7   : > { %4673 = vst.msk [vmem:[#allocation2 + $0x8] sm:$0xff] %vm1933_vm2, %v4671_v11  ;;  %6205 = vmatpush3.bf16.msra.mxu1 (!%p5666_p12), %v6577_v37 }
0x12dc   : > { %v4678_v13 = vld [vmem:[#allocation2] sm:$0xff] }
0x12de   : > { %v4679_v14 = vld [vmem:[#allocation2 + $0x8] sm:$0xff] }
0x12df   : > { %v6217_v41 = vpack.c.bf16 %v4679_v14, %v4678_v13 }
0x12e1   : > { %6218 = vmatpush3.bf16.msra.mxu0 %v6217_v41 }
0x12e2   : > { %6210 = vmatprep.subr.bf16.mxu0 %v7622_v34 }
0x12e4   : > { %6200 = vmatmul.mubr.msk.f32.vlgmr.msra.gmra.mrb[0].mxu0 %vm4681_vm7, %v4680_v12 }
0x12e5   : > { %6212 = vmatprep.mubr.msk.bf16.mxu0 %vm7621_vm6, %v7622_v34  ;;  %6211 = vmatpush3.bf16.msra.mxu0 %v6578_v20 }
0x13b7   : > { %v4751_v56 = vpop.f32.mrb[0].mxu0 }
0x13b8   : > { %v6201_v3 = vpop.f32.mrb[1].mxu0  ;;  %v4758_v24 = vsel %vm4757_vm8, %v4751_v56, 0.0 }
0x13b9   : > { %4759 = vadd.xlane.f32.xlu0 %v4758_v24 }
0x1446   : > { %v4760_v39 = vpop.xlane.xlu0 %4759 }
0x1447   : > { %v4761_v16 = vmul.f32 0.03125, %v4760_v39 }
0x1449   : > { %v4762_v10 = vsub.f32 %v4751_v56, %v4761_v16 }
0x144b   : > { %v4763_v17 = vmul.f32 %v4762_v10, %v4762_v10 }
0x144d   : > { %v4764_v18 = vsel %vm4757_vm8, %v4763_v17, 0.0 }
0x144e   : > { %4765 = vadd.xlane.f32.xlu0 %v4764_v18 }
0x14db   : > { %v4766_v21 = vpop.xlane.xlu0 %4765 }
0x14dc   : > { %v4767_v22 = vmul.f32 0.03125, %v4766_v21 }
0x14de   : > { %v4768_v23 = vadd.f32 1e-05, %v4767_v22 }
0x14e0   : > { %6579 = vrsqrt.f32 %v4768_v23 }
0x14ea   : > { %v6580_v25 = vpop.eup %6579 }
0x14eb   : > { %v4770_v35 = vmul.f32 %v6580_v25, %v4762_v10 }
0x14ed   : > { %v4777_v27 = vmul.f32 %v5668_v46, %v4770_v35 }
0x14ef   : > { %v4784_v1 = vadd.f32 %v5669_v26, %v4777_v27 }
0x14f1   : > { %v4785_v28 = vpack.c.bf16 %v4784_v1, %v4784_v1 }
0x14f3   : > { %6207 = vmatmul.mubr.msk.bf16.vlgmr.msra.gmra.mrb[0].mxu1 %vm1933_vm2, %v4785_v28 }
0x15c6   : > { %v4839_v51 = vpop.f32.mrb[0].mxu1 }
0x15c7   : > { %v4845_v15 = vpack.c.bf16 %v4839_v51, %v4839_v51  ;;  %v6208_v38 = vpop.f32.mrb[1].mxu1 }
0x15c8   : > { %v4842_v30 = vpop.f32.mrb[2].mxu1 }
0x15c9   : > { %v6209_v52 = vpop.f32.mrb[3].mxu1  ;;  %6213 = vmatmul.mubr.msk.bf16.vlgmr.msra.gmra.mrb[4].mxu0 %vm4681_vm7, %v4845_v15 }
0x169c   : > { %v4898_v47 = vpop.f32.mrb[4].mxu0 }
0x169d   : > { %v4899_v50 = vadd.f32 %v5673_v48, %v4898_v47  ;;  %v6214_v29 = vpop.f32.mrb[5].mxu0 }
0x169e   : > { %v4901_v53 = vpop.f32.mrb[6].mxu0 }
0x169f   : > { %v4905_v54 = vsel %vm4904_vm9, %v4899_v50, 0.0  ;;  %v6215_v57 = vpop.f32.mrb[7].mxu0 }
0x16a0   : > { %v4906_v63 = vrot.slane %v4905_v54, 4 }
0x16a2   : > { %v4907_v2 = vadd.f32 %v4906_v63, %v4905_v54 }
0x16a4   : > { %v4908_v32 = vrot.slane %v4907_v2, 2 }
0x16a6   : > { %v4909_v43 = vadd.f32 %v4908_v32, %v4907_v2 }
0x16a8   : > { %v4910_v0 = vrot.slane %v4909_v43, 1 }
0x16aa   : > { %v4911_v4 = vadd.f32 %v4910_v0, %v4909_v43 }
0x16ac   : > { %v4913_v7 = vmul.f32 0.5, %v4911_v4 }
0x16ae   : > { %v4914_v33 = vsub.f32 %v4899_v50, %v4913_v7 }
0x16b0   : > { %v4915_v36 = vmul.f32 %v4914_v33, %v4914_v33 }
0x16b2   : > { %v4916_v60 = vsel %vm4904_vm9, %v4915_v36, 0.0 }
0x16b3   : > { %v4917_v40 = vrot.slane %v4916_v60, 4 }
0x16b5   : > { %v4918_v42 = vadd.f32 %v4917_v40, %v4916_v60 }
0x16b7   : > { %v4919_v44 = vrot.slane %v4918_v42, 2 }
0x16b9   : > { %v4920_v6 = vadd.f32 %v4919_v44, %v4918_v42 }
0x16bb   : > { %v4921_v31 = vrot.slane %v4920_v6, 1 }
0x16bd   : > { %v4922_v45 = vadd.f32 %v4921_v31, %v4920_v6 }
0x16bf   : > { %v4923_v55 = vmul.f32 0.5, %v4922_v45 }
0x16c1   : > { %v4924_v58 = vadd.f32 1e-05, %v4923_v55 }
0x16c3   : > { %6581 = vrsqrt.f32 %v4924_v58 }
0x16cd   : > { %v6582_v59 = vpop.eup %6581 }
0x16ce   : > { %v4926_v62 = vmul.f32 %v6582_v59, %v4914_v33 }
0x16d0   : > { %v4934_v8 = vmul.f32 %v5676_v61, %v4926_v62 }
0x16d2   : > { %v4942_v9 = vadd.f32 %v5677_v5, %v4934_v8 }
0x16d4   : > { %4943 = vst.msk [vmem:[#allocation50] sm:$0x3] %vm4904_vm9, %v4942_v9 }
0x16d5 PF: > { %s9381_s19 = sld [smem:[#allocation95_spill]]  ;;  %s7623_s10 = smov [#allocation50]  }
0x16d6   : > { %s4951_s11 = sshll.u32 %s7623_s10, 4  ;;  %s4952_s11 = int_to_ptr.vmem [resolvable:$true] %s4951_s11 }
0x16d7   : > { %s7423_s14 = scalar_lea.vmem %s4952_s11, 32  ;;  %p7430_p6 = scmp.lt.s32.totalorder %s4952_s11, %s4952_s11 }
0x16d8   : > { %p7424_p1 = scmp.ne.s32.totalorder %s4952_s11, %s7423_s14  ;;  %p7431_p9 = scmp.lt.s32.totalorder %s7423_s14, %s7423_s14 }
0x16da   : > { %p7432_p10 = por %p7431_p9, %p7430_p6 }
0x16db   : > { %p6382_p0 = scmp.eq.s32.totalorder %s9381_s19, 1 }
0x16dd   : > { %p7425_p5 = pnand %p7424_p1, %p6382_p0 }
0x16df   : > { %p7426_p8 = pneg %p7425_p5 }
0x16e1   : > { %p7433_p3 = pnand %p7432_p10, %p7426_p8 }
0x16e3   : > { %7436 = shalt.err (!%p7433_p3)
}
0x16e4   : > { %s9382_s18 = sld [smem:[#allocation93_spill]] }
0x16ea   : > { %s9383_s22 = smov %s9382_s18  ;;  %s7437_s9 = scalar_lea.hbm %s9382_s18, 32 }
0x16eb   : > { %p7438_p2 = scmp.ne.s32.totalorder %s9383_s22, %s7437_s9  ;;  %p7443_p4 = scmp.lt.u32.totalorder %s7437_s9, %s9383_s22 }
0x16ed   : > { %p7439_p13 = pnand %p7438_p2, %p6382_p0 }
0x16ef   : > { %p7440_p7 = pneg %p7439_p13 }
0x16f1   : > { %p7445_p11 = pnand %p7443_p4, %p7440_p7 }
0x16f3   : > { %7448 = shalt.err (!%p7445_p11)
}
0x16f4   : > { %6308 = dma.vmem_to_hbm [thread:$0]  (%p6382_p0), %s4952_s11, 32, %s9383_s22, [#allocation5]  }
0x16f5   : > { %7530 = dma.done.wait (%p6382_p0), [#allocation5], 32  }
0x16f6   : > { %7532 = vsyncadd (%p6382_p0), [#allocation5], 4294967264 }
0x16f7 PF: > { %s9384_s18 = sld [smem:[#allocation96_spill]]  ;;  %s9385_s0 = sld [smem:[#allocation94_spill]] }
0x16f8   : > { %s9386_s8 = sld [smem:[#allocation97_spill]]  ;;  %s9387_s15 = smov %s7543_s16 }
0x16fd   : > { %p101_p12 = scmp.ge.s32.totalorder %s9384_s18, 4  }
0x16fe   : > { %s9388_s16 = smov %s9386_s8 }
0x16ff   :  { %103 = sbr.rel (!%p101_p12) target bundleno = 85 (0x55), region = 451 }
0x1706   :  { %4964 = vsyncpa [#allocation4], 1 }
0x1707   :  { %4966 = vsyncpa [#allocation4 + $0x1], 1 }
0x1708   :  { %4967 = vsyncpa [#allocation7], 1 }
0x1709   :  { %4968 = vsyncpa [#allocation10], 1 }
0x170a   :  { %4969 = vsyncpa [#allocation13], 1 }
0x170b   :  { %4970 = vsyncpa [#allocation16], 1 }
0x170c   :  { %4972 = vsyncpa [#allocation16 + $0x1], 1 }
0x170d   :  { %4973 = vsyncpa [#allocation19], 1 }
0x170e   :  { %4975 = vsyncpa [#allocation19 + $0x1], 1 }
0x170f   :  { %4976 = vsyncpa [#allocation22], 1 }
0x1710   :  { %4978 = vsyncpa [#allocation22 + $0x1], 1 }
0x1711   :  { %4979 = vsyncpa [#allocation25], 1 }
0x1712   :  { %4981 = vsyncpa [#allocation25 + $0x1], 1 }
0x1713   :  { %4982 = vsyncpa [#allocation28], 1 }
0x1714   :  { %4984 = vsyncpa [#allocation28 + $0x1], 1 }
0x1715   :  { %4985 = vsyncpa [#allocation31], 1 }
0x1716   :  { %4987 = vsyncpa [#allocation31 + $0x1], 1 }
0x1717   :  { %4988 = vsyncpa [#allocation34], 1 }
0x1718   :  { %4990 = vsyncpa [#allocation34 + $0x1], 1 }
0x1719   :  { %4991 = vsyncpa [#allocation37], 1 }
0x171a   :  { %4993 = vsyncpa [#allocation37 + $0x1], 1 }
0x171b   :  { %4994 = vsyncpa [#allocation40], 1 }
0x171c   :  { %4995 = vsyncpa [#allocation43], 1 }
0x171d   :  { %4996 = vsyncpa [#allocation46], 1 }
0x171e   :  { %4997 = vsyncpa [#allocation49], 1 }
0x171f   :  { %4998 = vsyncpa [#allocation5], 1 }
0x1720   :  { %5000 = vsyncpa [#allocation5 + $0x1], 1 }

</bundles_post_ra>
